<compile_context>
chip_gen: v5e
topology: v5e:2x2
jax: 0.10.0
libtpu: 0.0.40
codegen_flags: <defaults>
</compile_context>

<pallas_src>
import functools
import math

import jax
import jax.numpy as jnp
from jax.experimental import pallas as pl
from jax.experimental.pallas import tpu as pltpu


# --------------------------------------------------------------------------
# Config (small, but structurally faithful to LFM2Config)
# --------------------------------------------------------------------------
CFG = dict(
    vocab_size=256,
    hidden_size=64,
    num_hidden_layers=4,
    intermediate_size=128,
    num_attention_heads=4,
    num_key_value_heads=2,
    norm_eps=1e-6,
    rope_theta=10000.0,
    max_position_embeddings=64,
    conv_kernel=4,
    full_attn_idxs=(1, 3),   # layers 1,3 = attention, layers 0,2 = short conv
    pad_token_id=0,
)


def _round128(n):
    return ((n + 127) // 128) * 128


# --------------------------------------------------------------------------
# In-kernel helpers
# --------------------------------------------------------------------------
def _rmsnorm(x, w, eps):
    var = jnp.mean(x * x, axis=-1, keepdims=True)
    return (x * jax.lax.rsqrt(var + eps)) * w


def _mlp_body(xn, wgu, wd, inter):
    # fused gate|up matmul -> [T, 2I]; SiLU via EUP reciprocal
    gu = jnp.dot(xn, wgu, preferred_element_type=jnp.float32)
    g = gu[:, :inter]
    u = gu[:, inter:2 * inter]
    act = g * pl.reciprocal(1.0 + jnp.exp(-g), approx=True) * u
    return jnp.dot(act, wd, preferred_element_type=jnp.float32)


# --------------------------------------------------------------------------
# Fused whole-model kernel: all decoder layers + final norm + lm_head,
# one batch element per grid step.
# --------------------------------------------------------------------------
def _lfm2_fused_kernel(x_ref, w_ref, wd_ref, vec_ref, rope_ref, mr_ref, o_ref,
                       *, eps, nh, nkv, hd, inter, K, layer_types,
                       LW, MIX_OFF, WO_OFF, VROWS):
    x = x_ref[...].astype(jnp.float32)                       # [T, H]
    T, H = x.shape
    qdim = nh * hd
    kdim = nkv * hd
    n_rep = nh // nkv
    nL = len(layer_types)
    V = o_ref.shape[-1]

    # Small constant slabs: one load each, value-sliced afterwards.
    vecs = vec_ref[...]                                      # (nL*VROWS+1, H)
    mr = mr_ref[...]                                         # (H, 2H) = [Mq|Rq]
    rope = rope_ref[...]                                     # (T, 2H) = [cos|sin]
    cos_q = rope[:, :qdim]
    sin_q = rope[:, qdim:2 * qdim]
    cos_k = cos_q[:, :kdim]
    sin_k = sin_q[:, :kdim]
    Mq = mr[:, :qdim]
    Rq = mr[:, qdim:2 * qdim]
    Mk = Mq[:kdim, :kdim]
    Rk = Rq[:kdim, :kdim]

    # Hoisted iotas / causal mask, shared by every layer & head.
    rTT = jax.lax.broadcasted_iota(jnp.int32, (T, T), 0)
    cTT = jax.lax.broadcasted_iota(jnp.int32, (T, T), 1)
    neg_mask = jnp.where(cTT > rTT, jnp.float32(-1e30), jnp.float32(0.0))
    rTH = jax.lax.broadcasted_iota(jnp.int32, (T, H), 0)

    scale = 1.0 / math.sqrt(hd)
    h = x
    for li, ltype in enumerate(layer_types):                 # static unroll
        wb = li * LW
        vb = li * VROWS
        in_ln = vecs[vb + 0:vb + 1, :]
        post_ln = vecs[vb + 1:vb + 2, :]

        xn = _rmsnorm(h, in_ln, eps)

        if ltype == 'attn':
            # fused QKV projection (aligned ref window)
            wqkv = w_ref[:, wb + MIX_OFF: wb + MIX_OFF + qdim + 2 * kdim]
            qkv = jnp.dot(xn, wqkv, preferred_element_type=jnp.float32)
            q = qkv[:, :qdim]
            k = qkv[:, qdim:qdim + kdim]
            v = qkv[:, qdim + kdim:qdim + 2 * kdim]
            qln = vecs[vb + 2:vb + 3, :qdim]
            kln = vecs[vb + 3:vb + 4, :kdim]
            # per-head RMSNorm via block-diagonal sum matmuls (full lane width)
            qn = q * jax.lax.rsqrt(
                jnp.dot(q * q, Mq, preferred_element_type=jnp.float32) / hd + eps) * qln
            kn = k * jax.lax.rsqrt(
                jnp.dot(k * k, Mk, preferred_element_type=jnp.float32) / hd + eps) * kln
            # RoPE: x*cos + rotate_half(x)*sin, rotate_half via R matmul
            qr = qn * cos_q + jnp.dot(qn, Rq, preferred_element_type=jnp.float32) * sin_q
            kr = kn * cos_k + jnp.dot(kn, Rk, preferred_element_type=jnp.float32) * sin_k

            # per-head attention; outputs lane-packed, ONE o_proj matmul after
            heads = []
            for hh in range(nh):
                g = hh // n_rep
                qh = qr[:, hh * hd:(hh + 1) * hd]
                kh = kr[:, g * hd:(g + 1) * hd]
                vh = v[:, g * hd:(g + 1) * hd]
                s = jax.lax.dot_general(qh, kh, (((1,), (1,)), ((), ())),
                                        preferred_element_type=jnp.float32) * scale
                s = s + neg_mask
                s = s - jnp.max(s, axis=-1, keepdims=True)
                p = jnp.exp(s)
                p = p * pl.reciprocal(jnp.sum(p, axis=-1, keepdims=True),
                                      approx=True)
                heads.append(jnp.dot(p, vh, preferred_element_type=jnp.float32))
            attn_out = jnp.concatenate(heads, axis=1)        # (T, H) lane-packed
            wo = w_ref[:, wb + WO_OFF: wb + WO_OFF + H]
            mix = jnp.dot(attn_out, wo, preferred_element_type=jnp.float32)
        else:
            # fused B|C|x in_proj
            wbcx = w_ref[:, wb + MIX_OFF: wb + MIX_OFF + 3 * H]
            bcx = jnp.dot(xn, wbcx, preferred_element_type=jnp.float32)
            Bg = bcx[:, :H] + vecs[vb + 2:vb + 3, :]
            Cg = bcx[:, H:2 * H] + vecs[vb + 3:vb + 4, :]
            Xg = bcx[:, 2 * H:3 * H] + vecs[vb + 4:vb + 5, :]
            Bx = Bg * Xg
            # causal depthwise conv (time on sublanes, channels on lanes)
            conv = vecs[vb + 5:vb + 6, :]                    # conv bias row
            for j in range(K):                               # static unroll
                shift = K - 1 - j
                tap = vecs[vb + 7 + j:vb + 8 + j, :]         # (1, H) tap j
                if shift == 0:
                    shifted = Bx
                else:
                    shifted = jnp.where(rTH >= shift,
                                        pltpu.roll(Bx, shift, axis=0), 0.0)
                conv = conv + tap * shifted
            y = Cg * conv
            wo = w_ref[:, wb + WO_OFF: wb + WO_OFF + H]
            mix = (jnp.dot(y, wo, preferred_element_type=jnp.float32)
                   + vecs[vb + 6:vb + 7, :])

        h1 = h + mix
        xn2 = _rmsnorm(h1, post_ln, eps)
        wgu = w_ref[:, wb: wb + 2 * inter]
        wd = wd_ref[li * inter:(li + 1) * inter, :]
        h = h1 + _mlp_body(xn2, wgu, wd, inter)

    # final RMSNorm + lm_head on the LAST token only (fused — no extra launch)
    norm_w = vecs[nL * VROWS: nL * VROWS + 1, :]
    hn = _rmsnorm(h[T - 1:T, :], norm_w, eps)
    lm = w_ref[:, nL * LW: nL * LW + V]
    o_ref[...] = jnp.dot(hn, lm,
                         preferred_element_type=jnp.float32).astype(o_ref.dtype)


# --------------------------------------------------------------------------
# One-time weight packing (hoists all concats/tiles/consts out of the forward)
# --------------------------------------------------------------------------
def _head_block_matrices(n_heads, head_dim):
    W = n_heads * head_dim
    i = jnp.arange(W)[:, None]
    j = jnp.arange(W)[None, :]
    same = (i // head_dim) == (j // head_dim)
    il = i % head_dim
    jl = j % head_dim
    half = head_dim // 2
    M = same.astype(jnp.float32)                    # block-diag of ones
    R = (jnp.where(same & (il == jl + half), -1.0, 0.0)
         + jnp.where(same & (jl == il + half), 1.0, 0.0))
    return M, R.astype(jnp.float32)                 # x @ R == rotate_half(x)


def prepare_packed(params, cfg, seq_len):
    H = cfg['hidden_size']
    I = cfg['intermediate_size']
    V = cfg['vocab_size']
    nh = cfg['num_attention_heads']
    nkv = cfg['num_key_value_heads']
    D = H // nh
    K = cfg['conv_kernel']
    nL = cfg['num_hidden_layers']

    qkvw = nh * D + 2 * nkv * D
    # per-layer sub-slab layout (all offsets 128-lane aligned):
    #   [0, 2I)           : wgu = gate|up
    #   [MIX_OFF, ...)    : wqkv (attn) or wbcx (conv)
    #   [WO_OFF, WO_OFF+H): wo
    MIX_OFF = _round128(2 * I)
    WO_OFF = MIX_OFF + _round128(max(qkvw, 3 * H))
    LW = WO_OFF + _round128(H)
    VROWS = 7 + K                                    # small-vector rows / layer

    W = jnp.zeros((H, nL * LW + _round128(V)), jnp.float32)
    Wd = jnp.zeros((nL * I, H), jnp.float32)
    vec = jnp.zeros((nL * VROWS + 1, H), jnp.float32)

    for li, lp in enumerate(params['layers']):
        wb = li * LW
        vb = li * VROWS
        wgu = jnp.concatenate([lp['wg'], lp['wu']], axis=1)
        W = W.at[:, wb:wb + 2 * I].set(wgu)
        Wd = Wd.at[li * I:(li + 1) * I, :].set(lp['wd'])
        vec = vec.at[vb + 0].set(lp['in_ln'])
        vec = vec.at[vb + 1].set(lp['post_ln'])
        if lp['type'] == 'attn':
            wqkv = jnp.concatenate([lp['wq'], lp['wk'], lp['wv']], axis=1)
            W = W.at[:, wb + MIX_OFF:wb + MIX_OFF + qkvw].set(wqkv)
            W = W.at[:, wb + WO_OFF:wb + WO_OFF + H].set(lp['wo'])
            vec = vec.at[vb + 2, :nh * D].set(jnp.tile(lp['q_ln'], nh))
            vec = vec.at[vb + 3, :nkv * D].set(jnp.tile(lp['k_ln'], nkv))
        else:
            wbcx = jnp.concatenate([lp['wB'], lp['wC'], lp['wX']], axis=1)
            W = W.at[:, wb + MIX_OFF:wb + MIX_OFF + 3 * H].set(wbcx)
            W = W.at[:, wb + WO_OFF:wb + WO_OFF + H].set(lp['wo'])
            vec = vec.at[vb + 2].set(lp['bB'])
            vec = vec.at[vb + 3].set(lp['bC'])
            vec = vec.at[vb + 4].set(lp['bX'])
            vec = vec.at[vb + 5].set(lp['cb'])
            vec = vec.at[vb + 6].set(lp['bo'])
            vec = vec.at[vb + 7:vb + 7 + K, :].set(lp['cw'])

    W = W.at[:, nL * LW:nL * LW + V].set(params['lm_head'])
    vec = vec.at[nL * VROWS].set(params['norm_w'])

    cos = params['cos'][:seq_len]
    sin = params['sin'][:seq_len]
    rope = jnp.concatenate([jnp.tile(cos, (1, nh)), jnp.tile(sin, (1, nh))],
                           axis=1)                                   # (T, 2H)
    Mq, Rq = _head_block_matrices(nh, D)
    MR = jnp.concatenate([Mq, Rq], axis=1)                           # (H, 2H)

    packed = dict(embed=params['embed'], W=W, Wd=Wd, vec=vec, rope=rope, MR=MR)
    meta = dict(LW=LW, MIX_OFF=MIX_OFF, WO_OFF=WO_OFF, VROWS=VROWS,
                layer_types=tuple(lp['type'] for lp in params['layers']),
                seq_len=seq_len)
    return packed, meta


# --------------------------------------------------------------------------
# Jitted forward: embedding gather (plain JAX) + ONE fused pallas_call
# --------------------------------------------------------------------------
def lfm2_pallas_forward(packed, idx, *, cfg, meta):
    B, T = idx.shape
    H = cfg['hidden_size']
    V = cfg['vocab_size']
    assert T == meta['seq_len']

    # TODO(synk): embedding lookup kept as plain-JAX gather glue (no in-kernel
    # DMA-gather implemented).
    h = packed['embed'][idx]                                        # (B, T, H)

    kern = functools.partial(
        _lfm2_fused_kernel,
        eps=cfg['norm_eps'],
        nh=cfg['num_attention_heads'],
        nkv=cfg['num_key_value_heads'],
        hd=H // cfg['num_attention_heads'],
        inter=cfg['intermediate_size'],
        K=cfg['conv_kernel'],
        layer_types=meta['layer_types'],
        LW=meta['LW'], MIX_OFF=meta['MIX_OFF'], WO_OFF=meta['WO_OFF'],
        VROWS=meta['VROWS'])

    # grid=(B,) parallel: on v7x each TensorCore takes one batch element.
    # TODO(synk): on 1-TC v5e/v6e, row-stacking the batch (grid=(1,)) would
    # halve grid-step overhead; kept batch-parallel for v7x.
    return pl.pallas_call(
        kern,
        out_shape=jax.ShapeDtypeStruct((B, 1, V), jnp.float32),
        grid=(B,),
        in_specs=[pl.BlockSpec((None, T, H), lambda b: (b, 0, 0))]
                 + [pl.BlockSpec(packed[k].shape, lambda b: (0, 0))
                    for k in ('W', 'Wd', 'vec', 'rope', 'MR')],
        out_specs=pl.BlockSpec((None, 1, V), lambda b: (b, 0, 0)),
        compiler_params=pltpu.CompilerParams(
            dimension_semantics=("parallel",)),
    )(h, packed['W'], packed['Wd'], packed['vec'], packed['rope'], packed['MR'])


# --------------------------------------------------------------------------
# Parameter init (deterministic, synthetic).  Linear weights stored (in, out).
# --------------------------------------------------------------------------
def init_params(key, cfg):
    H = cfg['hidden_size']
    V = cfg['vocab_size']
    I = cfg['intermediate_size']
    nh = cfg['num_attention_heads']
    nkv = cfg['num_key_value_heads']
    D = H // nh
    K = cfg['conv_kernel']
    std = 0.02
    kit = iter(jax.random.split(key, 256))

    def nrm(shape):
        return std * jax.random.normal(next(kit), shape, jnp.float32)

    embed = nrm((V, H))
    embed = embed.at[cfg['pad_token_id']].set(0.0)

    # RoPE cache (matches LFM2RotaryEmbedding)
    inv_freq = 1.0 / (cfg['rope_theta'] **
                      (jnp.arange(0, D, 2, dtype=jnp.float32) / D))
    t = jnp.arange(cfg['max_position_embeddings'], dtype=jnp.float32)
    freqs = jnp.outer(t, inv_freq)
    emb = jnp.concatenate([freqs, freqs], axis=-1)

    layers = []
    for li in range(cfg['num_hidden_layers']):
        lp = {'in_ln': jnp.ones((H,), jnp.float32),
              'post_ln': jnp.ones((H,), jnp.float32),
              'wg': nrm((H, I)), 'wu': nrm((H, I)), 'wd': nrm((I, H))}
        if li in cfg['full_attn_idxs']:
            lp.update(type='attn',
                      wq=nrm((H, nh * D)), wk=nrm((H, nkv * D)),
                      wv=nrm((H, nkv * D)), wo=nrm((nh * D, H)),
                      q_ln=jnp.ones((D,), jnp.float32),
                      k_ln=jnp.ones((D,), jnp.float32))
        else:
            lp.update(type='conv',
                      wB=nrm((H, H)), bB=jnp.zeros((H,), jnp.float32),
                      wC=nrm((H, H)), bC=jnp.zeros((H,), jnp.float32),
                      wX=nrm((H, H)), bX=jnp.zeros((H,), jnp.float32),
                      cw=nrm((K, H)), cb=nrm((H,)),
                      wo=nrm((H, H)), bo=jnp.zeros((H,), jnp.float32))
        layers.append(lp)

    return {'embed': embed, 'cos': jnp.cos(emb), 'sin': jnp.sin(emb),
            'layers': layers,
            'norm_w': jnp.ones((H,), jnp.float32),
            'lm_head': nrm((H, V))}


# --------------------------------------------------------------------------
# Pure-JAX reference (mirrors the PyTorch module) for verification
# --------------------------------------------------------------------------
def _hp(a, b):
    return jnp.matmul(a, b, precision=jax.lax.Precision.HIGHEST)


def ref_forward(params, idx, cfg):
    B, T = idx.shape
    H = cfg['hidden_size']
    nh = cfg['num_attention_heads']
    nkv = cfg['num_key_value_heads']
    D = H // nh
    n_rep = nh // nkv
    eps = cfg['norm_eps']
    K = cfg['conv_kernel']

    h = params['embed'][idx]
    cos = params['cos'][:T][None, None]
    sin = params['sin'][:T][None, None]

    def rmsn(x, w):
        xf = x.astype(jnp.float32)
        return w * (xf * jax.lax.rsqrt(jnp.mean(xf * xf, -1, keepdims=True) + eps))

    def rot_half(x):
        return jnp.concatenate([-x[..., D // 2:], x[..., :D // 2]], axis=-1)

    for lp in params['layers']:
        res = h
        x = rmsn(h, lp['in_ln'])
        if lp['type'] == 'attn':
            q = _hp(x, lp['wq']).reshape(B, T, nh, D)
            k = _hp(x, lp['wk']).reshape(B, T, nkv, D)
            v = _hp(x, lp['wv']).reshape(B, T, nkv, D)
            q = rmsn(q, lp['q_ln']).transpose(0, 2, 1, 3)
            k = rmsn(k, lp['k_ln']).transpose(0, 2, 1, 3)
            v = v.transpose(0, 2, 1, 3)
            q = q * cos + rot_half(q) * sin
            k = k * cos + rot_half(k) * sin
            k = jnp.repeat(k, n_rep, axis=1)
            v = jnp.repeat(v, n_rep, axis=1)
            s = jnp.einsum('bhqd,bhkd->bhqk', q, k,
                           precision=jax.lax.Precision.HIGHEST) / math.sqrt(D)
            mask = jnp.triu(jnp.full((T, T), -jnp.inf, jnp.float32), k=1)
            p = jax.nn.softmax(s + mask, axis=-1)
            o = jnp.einsum('bhqk,bhkd->bhqd', p, v,
                           precision=jax.lax.Precision.HIGHEST)
            mix = _hp(o.transpose(0, 2, 1, 3).reshape(B, T, H), lp['wo'])
        else:
            Bg = _hp(x, lp['wB']) + lp['bB']
            Cg = _hp(x, lp['wC']) + lp['bC']
            Xg = _hp(x, lp['wX']) + lp['bX']
            Bx = Bg * Xg
            conv = jnp.zeros_like(Bx) + lp['cb']
            for j in range(K):
                shift = K - 1 - j
                shifted = jnp.pad(Bx, ((0, 0), (shift, 0), (0, 0)))[:, :T] if shift else Bx
                conv = conv + lp['cw'][j] * shifted
            mix = _hp(Cg * conv, lp['wo']) + lp['bo']
        h = res + mix

        res = h
        x = rmsn(h, lp['post_ln'])
        m = _hp(jax.nn.silu(_hp(x, lp['wg'])) * _hp(x, lp['wu']), lp['wd'])
        h = res + m

    h = rmsn(h, params['norm_w'])
    return _hp(h[:, -1:, :], params['lm_head'])


# --------------------------------------------------------------------------
if __name__ == "__main__":
    key = jax.random.PRNGKey(0)
    pkey, ikey = jax.random.split(key)
    params = init_params(pkey, CFG)

    B, T = 2, 8
    idx = jax.random.randint(ikey, (B, T), 1, CFG['vocab_size'], dtype=jnp.int32)

    # One-time packing of all weights/consts (hoisted out of the hot path).
    packed, meta = prepare_packed(params, CFG, T)
    fwd = jax.jit(functools.partial(lfm2_pallas_forward, cfg=CFG, meta=meta))

    logits = fwd(packed, idx)
    logits = jax.block_until_ready(logits)

    assert logits.shape == (B, 1, CFG['vocab_size'])
    assert bool(jnp.all(jnp.isfinite(logits)))

    ref = ref_forward(params, idx, CFG)
    max_err = float(jnp.max(jnp.abs(logits - ref)))
    if not bool(jnp.allclose(logits, ref, rtol=2e-2, atol=2e-2)):
        raise AssertionError(f"Pallas output mismatch vs reference (max abs err {max_err})")

    print("KERNEL_OK")
</pallas_src>

<mosaic_0001>
module attributes {stable_mosaic.version = 11 : i64} {
  func.func @_lfm2_fused_kernel(%arg0: i32, %arg1: memref<1x8x64xf32, #tpu.memory_space<vmem>>, %arg2: memref<64x2816xf32, #tpu.memory_space<vmem>>, %arg3: memref<512x64xf32, #tpu.memory_space<vmem>>, %arg4: memref<45x64xf32, #tpu.memory_space<vmem>>, %arg5: memref<8x128xf32, #tpu.memory_space<vmem>>, %arg6: memref<64x128xf32, #tpu.memory_space<vmem>>, %arg7: memref<1x1x256xf32, #tpu.memory_space<vmem>>) attributes {dimension_semantics = [#tpu.dimension_semantics<parallel>], iteration_bounds = array<i64: 2>, scalar_prefetch = 0 : i64, scratch_operands = 0 : i64, tpu.core_type = #tpu.core_type<tc>, window_params = [{transform_indices = @transform_0, window_bounds = array<i64: 1, 8, 64>}, {pipeline_mode = #tpu.pipeline_mode<synchronous>, transform_indices = @transform_1, window_bounds = array<i64: 64, 2816>}, {pipeline_mode = #tpu.pipeline_mode<synchronous>, transform_indices = @transform_2, window_bounds = array<i64: 512, 64>}, {pipeline_mode = #tpu.pipeline_mode<synchronous>, transform_indices = @transform_3, window_bounds = array<i64: 45, 64>}, {pipeline_mode = #tpu.pipeline_mode<synchronous>, transform_indices = @transform_4, window_bounds = array<i64: 8, 128>}, {pipeline_mode = #tpu.pipeline_mode<synchronous>, transform_indices = @transform_5, window_bounds = array<i64: 64, 128>}, {transform_indices = @transform_6, window_bounds = array<i64: 1, 1, 256>}]} {
    %c0 = arith.constant 0 : index
    %c0_0 = arith.constant 0 : index
    %c0_1 = arith.constant 0 : index
    %0 = vector.load %arg1[%c0, %c0_0, %c0_1] : memref<1x8x64xf32, #tpu.memory_space<vmem>>, vector<1x8x64xf32>
    %1 = vector.shape_cast %0 : vector<1x8x64xf32> to vector<8x64xf32>
    %c0_2 = arith.constant 0 : index
    %c0_3 = arith.constant 0 : index
    %2 = vector.load %arg4[%c0_2, %c0_3] : memref<45x64xf32, #tpu.memory_space<vmem>>, vector<45x64xf32>
    %c0_4 = arith.constant 0 : index
    %c0_5 = arith.constant 0 : index
    %3 = vector.load %arg6[%c0_4, %c0_5] : memref<64x128xf32, #tpu.memory_space<vmem>>, vector<64x128xf32>
    %c0_6 = arith.constant 0 : index
    %c0_7 = arith.constant 0 : index
    %4 = vector.load %arg5[%c0_6, %c0_7] : memref<8x128xf32, #tpu.memory_space<vmem>>, vector<8x128xf32>
    %5 = vector.extract_strided_slice %4 {offsets = [0, 0], sizes = [8, 64], strides = [1, 1]} : vector<8x128xf32> to vector<8x64xf32>
    %6 = vector.extract_strided_slice %4 {offsets = [0, 64], sizes = [8, 64], strides = [1, 1]} : vector<8x128xf32> to vector<8x64xf32>
    %7 = vector.extract_strided_slice %5 {offsets = [0, 0], sizes = [8, 32], strides = [1, 1]} : vector<8x64xf32> to vector<8x32xf32>
    %8 = vector.extract_strided_slice %6 {offsets = [0, 0], sizes = [8, 32], strides = [1, 1]} : vector<8x64xf32> to vector<8x32xf32>
    %9 = vector.extract_strided_slice %3 {offsets = [0, 0], sizes = [64, 64], strides = [1, 1]} : vector<64x128xf32> to vector<64x64xf32>
    %10 = vector.extract_strided_slice %3 {offsets = [0, 64], sizes = [64, 64], strides = [1, 1]} : vector<64x128xf32> to vector<64x64xf32>
    %11 = vector.extract_strided_slice %9 {offsets = [0, 0], sizes = [32, 32], strides = [1, 1]} : vector<64x64xf32> to vector<32x32xf32>
    %12 = vector.extract_strided_slice %10 {offsets = [0, 0], sizes = [32, 32], strides = [1, 1]} : vector<64x64xf32> to vector<32x32xf32>
    %13 = tpu.iota {dimensions = array<i32: 0>} : vector<8x8xi32>
    %14 = tpu.iota {dimensions = array<i32: 1>} : vector<8x8xi32>
    %15 = arith.cmpi sgt, %14, %13 : vector<8x8xi32>
    %cst = arith.constant -1.000000e+30 : f32
    %cst_8 = arith.constant 0.000000e+00 : f32
    %16 = vector.broadcast %cst : f32 to vector<8x8xf32>
    %17 = vector.broadcast %cst_8 : f32 to vector<8x8xf32>
    %18 = arith.select %15, %16, %17 : vector<8x8xi1>, vector<8x8xf32>
    %19 = tpu.iota {dimensions = array<i32: 0>} : vector<8x64xi32>
    %20 = vector.extract_strided_slice %2 {offsets = [0, 0], sizes = [1, 64], strides = [1, 1]} : vector<45x64xf32> to vector<1x64xf32>
    %21 = vector.extract_strided_slice %2 {offsets = [1, 0], sizes = [1, 64], strides = [1, 1]} : vector<45x64xf32> to vector<1x64xf32>
    %22 = arith.mulf %1, %1 : vector<8x64xf32>
    %cst_9 = arith.constant dense<0.000000e+00> : vector<8xf32>
    %23 = vector.multi_reduction <add>, %22, %cst_9 [1] : vector<8x64xf32> to vector<8xf32>
    %24 = vector.shape_cast %23 : vector<8xf32> to vector<8x1xf32>
    %cst_10 = arith.constant 6.400000e+01 : f32
    %25 = vector.broadcast %cst_10 : f32 to vector<8x1xf32>
    %26 = arith.divf %24, %25 : vector<8x1xf32>
    %cst_11 = arith.constant 9.99999997E-7 : f32
    %27 = vector.broadcast %cst_11 : f32 to vector<8x1xf32>
    %28 = arith.addf %26, %27 : vector<8x1xf32>
    %29 = math.rsqrt %28 : vector<8x1xf32>
    %30 = vector.broadcast %29 : vector<8x1xf32> to vector<8x64xf32>
    %31 = arith.mulf %1, %30 : vector<8x64xf32>
    %32 = vector.broadcast %20 : vector<1x64xf32> to vector<8x64xf32>
    %33 = arith.mulf %31, %32 : vector<8x64xf32>
    %c0_12 = arith.constant 0 : index
    %c256 = arith.constant 256 : index
    %34 = vector.load %arg2[%c0_12, %c256] : memref<64x2816xf32, #tpu.memory_space<vmem>>, vector<64x192xf32>
    %cst_13 = arith.constant dense<0.000000e+00> : vector<8x192xf32>
    %35 = tpu.matmul %33, %34, %cst_13 {dimension_numbers = #tpu.dot_dimension_numbers<[1], [0], [0], [1], [0, 0, 1, 1], [], []>} : vector<8x64xf32>, vector<64x192xf32>, vector<8x192xf32> -> vector<8x192xf32>
    %36 = vector.extract_strided_slice %35 {offsets = [0, 0], sizes = [8, 64], strides = [1, 1]} : vector<8x192xf32> to vector<8x64xf32>
    %37 = vector.extract_strided_slice %2 {offsets = [2, 0], sizes = [1, 64], strides = [1, 1]} : vector<45x64xf32> to vector<1x64xf32>
    %38 = vector.broadcast %37 : vector<1x64xf32> to vector<8x64xf32>
    %39 = arith.addf %36, %38 : vector<8x64xf32>
    %40 = vector.extract_strided_slice %35 {offsets = [0, 64], sizes = [8, 64], strides = [1, 1]} : vector<8x192xf32> to vector<8x64xf32>
    %41 = vector.extract_strided_slice %2 {offsets = [3, 0], sizes = [1, 64], strides = [1, 1]} : vector<45x64xf32> to vector<1x64xf32>
    %42 = vector.broadcast %41 : vector<1x64xf32> to vector<8x64xf32>
    %43 = arith.addf %40, %42 : vector<8x64xf32>
    %44 = vector.extract_strided_slice %35 {offsets = [0, 128], sizes = [8, 64], strides = [1, 1]} : vector<8x192xf32> to vector<8x64xf32>
    %45 = vector.extract_strided_slice %2 {offsets = [4, 0], sizes = [1, 64], strides = [1, 1]} : vector<45x64xf32> to vector<1x64xf32>
    %46 = vector.broadcast %45 : vector<1x64xf32> to vector<8x64xf32>
    %47 = arith.addf %44, %46 : vector<8x64xf32>
    %48 = arith.mulf %39, %47 : vector<8x64xf32>
    %49 = vector.extract_strided_slice %2 {offsets = [5, 0], sizes = [1, 64], strides = [1, 1]} : vector<45x64xf32> to vector<1x64xf32>
    %50 = vector.extract_strided_slice %2 {offsets = [7, 0], sizes = [1, 64], strides = [1, 1]} : vector<45x64xf32> to vector<1x64xf32>
    %c3_i32 = arith.constant 3 : i32
    %51 = vector.broadcast %c3_i32 : i32 to vector<8x64xi32>
    %52 = arith.cmpi sge, %19, %51 : vector<8x64xi32>
    %c3_i32_14 = arith.constant 3 : i32
    %53 = tpu.dynamic_rotate %48 by %c3_i32_14 dim 0 : vector<8x64xf32>, i32 -> vector<8x64xf32>
    %cst_15 = arith.constant 0.000000e+00 : f32
    %54 = vector.broadcast %cst_15 : f32 to vector<8x64xf32>
    %55 = arith.select %52, %53, %54 : vector<8x64xi1>, vector<8x64xf32>
    %56 = vector.broadcast %50 : vector<1x64xf32> to vector<8x64xf32>
    %57 = arith.mulf %56, %55 : vector<8x64xf32>
    %58 = vector.broadcast %49 : vector<1x64xf32> to vector<8x64xf32>
    %59 = arith.addf %58, %57 : vector<8x64xf32>
    %60 = vector.extract_strided_slice %2 {offsets = [8, 0], sizes = [1, 64], strides = [1, 1]} : vector<45x64xf32> to vector<1x64xf32>
    %c2_i32 = arith.constant 2 : i32
    %61 = vector.broadcast %c2_i32 : i32 to vector<8x64xi32>
    %62 = arith.cmpi sge, %19, %61 : vector<8x64xi32>
    %c2_i32_16 = arith.constant 2 : i32
    %63 = tpu.dynamic_rotate %48 by %c2_i32_16 dim 0 : vector<8x64xf32>, i32 -> vector<8x64xf32>
    %cst_17 = arith.constant 0.000000e+00 : f32
    %64 = vector.broadcast %cst_17 : f32 to vector<8x64xf32>
    %65 = arith.select %62, %63, %64 : vector<8x64xi1>, vector<8x64xf32>
    %66 = vector.broadcast %60 : vector<1x64xf32> to vector<8x64xf32>
    %67 = arith.mulf %66, %65 : vector<8x64xf32>
    %68 = arith.addf %59, %67 : vector<8x64xf32>
    %69 = vector.extract_strided_slice %2 {offsets = [9, 0], sizes = [1, 64], strides = [1, 1]} : vector<45x64xf32> to vector<1x64xf32>
    %c1_i32 = arith.constant 1 : i32
    %70 = vector.broadcast %c1_i32 : i32 to vector<8x64xi32>
    %71 = arith.cmpi sge, %19, %70 : vector<8x64xi32>
    %c1_i32_18 = arith.constant 1 : i32
    %72 = tpu.dynamic_rotate %48 by %c1_i32_18 dim 0 : vector<8x64xf32>, i32 -> vector<8x64xf32>
    %cst_19 = arith.constant 0.000000e+00 : f32
    %73 = vector.broadcast %cst_19 : f32 to vector<8x64xf32>
    %74 = arith.select %71, %72, %73 : vector<8x64xi1>, vector<8x64xf32>
    %75 = vector.broadcast %69 : vector<1x64xf32> to vector<8x64xf32>
    %76 = arith.mulf %75, %74 : vector<8x64xf32>
    %77 = arith.addf %68, %76 : vector<8x64xf32>
    %78 = vector.extract_strided_slice %2 {offsets = [10, 0], sizes = [1, 64], strides = [1, 1]} : vector<45x64xf32> to vector<1x64xf32>
    %79 = vector.broadcast %78 : vector<1x64xf32> to vector<8x64xf32>
    %80 = arith.mulf %79, %48 : vector<8x64xf32>
    %81 = arith.addf %77, %80 : vector<8x64xf32>
    %82 = arith.mulf %43, %81 : vector<8x64xf32>
    %c0_20 = arith.constant 0 : index
    %c512 = arith.constant 512 : index
    %83 = vector.load %arg2[%c0_20, %c512] : memref<64x2816xf32, #tpu.memory_space<vmem>>, vector<64x64xf32>
    %cst_21 = arith.constant dense<0.000000e+00> : vector<8x64xf32>
    %84 = tpu.matmul %82, %83, %cst_21 {dimension_numbers = #tpu.dot_dimension_numbers<[1], [0], [0], [1], [0, 0, 1, 1], [], []>} : vector<8x64xf32>, vector<64x64xf32>, vector<8x64xf32> -> vector<8x64xf32>
    %85 = vector.extract_strided_slice %2 {offsets = [6, 0], sizes = [1, 64], strides = [1, 1]} : vector<45x64xf32> to vector<1x64xf32>
    %86 = vector.broadcast %85 : vector<1x64xf32> to vector<8x64xf32>
    %87 = arith.addf %84, %86 : vector<8x64xf32>
    %88 = arith.addf %1, %87 : vector<8x64xf32>
    %89 = arith.mulf %88, %88 : vector<8x64xf32>
    %cst_22 = arith.constant dense<0.000000e+00> : vector<8xf32>
    %90 = vector.multi_reduction <add>, %89, %cst_22 [1] : vector<8x64xf32> to vector<8xf32>
    %91 = vector.shape_cast %90 : vector<8xf32> to vector<8x1xf32>
    %cst_23 = arith.constant 6.400000e+01 : f32
    %92 = vector.broadcast %cst_23 : f32 to vector<8x1xf32>
    %93 = arith.divf %91, %92 : vector<8x1xf32>
    %cst_24 = arith.constant 9.99999997E-7 : f32
    %94 = vector.broadcast %cst_24 : f32 to vector<8x1xf32>
    %95 = arith.addf %93, %94 : vector<8x1xf32>
    %96 = math.rsqrt %95 : vector<8x1xf32>
    %97 = vector.broadcast %96 : vector<8x1xf32> to vector<8x64xf32>
    %98 = arith.mulf %88, %97 : vector<8x64xf32>
    %99 = vector.broadcast %21 : vector<1x64xf32> to vector<8x64xf32>
    %100 = arith.mulf %98, %99 : vector<8x64xf32>
    %c0_25 = arith.constant 0 : index
    %c0_26 = arith.constant 0 : index
    %101 = vector.load %arg2[%c0_25, %c0_26] : memref<64x2816xf32, #tpu.memory_space<vmem>>, vector<64x256xf32>
    %c0_27 = arith.constant 0 : index
    %c0_28 = arith.constant 0 : index
    %102 = vector.load %arg3[%c0_27, %c0_28] : memref<512x64xf32, #tpu.memory_space<vmem>>, vector<128x64xf32>
    %cst_29 = arith.constant dense<0.000000e+00> : vector<8x256xf32>
    %103 = tpu.matmul %100, %101, %cst_29 {dimension_numbers = #tpu.dot_dimension_numbers<[1], [0], [0], [1], [0, 0, 1, 1], [], []>} : vector<8x64xf32>, vector<64x256xf32>, vector<8x256xf32> -> vector<8x256xf32>
    %104 = vector.extract_strided_slice %103 {offsets = [0, 0], sizes = [8, 128], strides = [1, 1]} : vector<8x256xf32> to vector<8x128xf32>
    %105 = vector.extract_strided_slice %103 {offsets = [0, 128], sizes = [8, 128], strides = [1, 1]} : vector<8x256xf32> to vector<8x128xf32>
    %cst_30 = arith.constant 0.000000e+00 : f32
    %106 = vector.broadcast %cst_30 : f32 to vector<8x128xf32>
    %107 = arith.subf %106, %104 : vector<8x128xf32>
    %108 = math.exp %107 : vector<8x128xf32>
    %cst_31 = arith.constant 1.000000e+00 : f32
    %109 = vector.broadcast %cst_31 : f32 to vector<8x128xf32>
    %110 = arith.addf %109, %108 : vector<8x128xf32>
    %111 = tpu.reciprocal %110 {approx = true} : vector<8x128xf32> -> vector<8x128xf32>
    %112 = arith.mulf %104, %111 : vector<8x128xf32>
    %113 = arith.mulf %112, %105 : vector<8x128xf32>
    %cst_32 = arith.constant dense<0.000000e+00> : vector<8x64xf32>
    %114 = tpu.matmul %113, %102, %cst_32 {dimension_numbers = #tpu.dot_dimension_numbers<[1], [0], [0], [1], [0, 0, 1, 1], [], []>} : vector<8x128xf32>, vector<128x64xf32>, vector<8x64xf32> -> vector<8x64xf32>
    %115 = arith.addf %88, %114 : vector<8x64xf32>
    %116 = vector.extract_strided_slice %2 {offsets = [11, 0], sizes = [1, 64], strides = [1, 1]} : vector<45x64xf32> to vector<1x64xf32>
    %117 = vector.extract_strided_slice %2 {offsets = [12, 0], sizes = [1, 64], strides = [1, 1]} : vector<45x64xf32> to vector<1x64xf32>
    %118 = arith.mulf %115, %115 : vector<8x64xf32>
    %cst_33 = arith.constant dense<0.000000e+00> : vector<8xf32>
    %119 = vector.multi_reduction <add>, %118, %cst_33 [1] : vector<8x64xf32> to vector<8xf32>
    %120 = vector.shape_cast %119 : vector<8xf32> to vector<8x1xf32>
    %cst_34 = arith.constant 6.400000e+01 : f32
    %121 = vector.broadcast %cst_34 : f32 to vector<8x1xf32>
    %122 = arith.divf %120, %121 : vector<8x1xf32>
    %cst_35 = arith.constant 9.99999997E-7 : f32
    %123 = vector.broadcast %cst_35 : f32 to vector<8x1xf32>
    %124 = arith.addf %122, %123 : vector<8x1xf32>
    %125 = math.rsqrt %124 : vector<8x1xf32>
    %126 = vector.broadcast %125 : vector<8x1xf32> to vector<8x64xf32>
    %127 = arith.mulf %115, %126 : vector<8x64xf32>
    %128 = vector.broadcast %116 : vector<1x64xf32> to vector<8x64xf32>
    %129 = arith.mulf %127, %128 : vector<8x64xf32>
    %c0_36 = arith.constant 0 : index
    %c896 = arith.constant 896 : index
    %130 = vector.load %arg2[%c0_36, %c896] : memref<64x2816xf32, #tpu.memory_space<vmem>>, vector<64x128xf32>
    %cst_37 = arith.constant dense<0.000000e+00> : vector<8x128xf32>
    %131 = tpu.matmul %129, %130, %cst_37 {dimension_numbers = #tpu.dot_dimension_numbers<[1], [0], [0], [1], [0, 0, 1, 1], [], []>} : vector<8x64xf32>, vector<64x128xf32>, vector<8x128xf32> -> vector<8x128xf32>
    %132 = vector.extract_strided_slice %131 {offsets = [0, 0], sizes = [8, 64], strides = [1, 1]} : vector<8x128xf32> to vector<8x64xf32>
    %133 = vector.extract_strided_slice %131 {offsets = [0, 64], sizes = [8, 32], strides = [1, 1]} : vector<8x128xf32> to vector<8x32xf32>
    %134 = vector.extract_strided_slice %131 {offsets = [0, 96], sizes = [8, 32], strides = [1, 1]} : vector<8x128xf32> to vector<8x32xf32>
    %135 = vector.extract_strided_slice %2 {offsets = [13, 0], sizes = [1, 64], strides = [1, 1]} : vector<45x64xf32> to vector<1x64xf32>
    %136 = vector.extract_strided_slice %2 {offsets = [14, 0], sizes = [1, 32], strides = [1, 1]} : vector<45x64xf32> to vector<1x32xf32>
    %137 = arith.mulf %132, %132 : vector<8x64xf32>
    %cst_38 = arith.constant dense<0.000000e+00> : vector<8x64xf32>
    %138 = tpu.matmul %137, %9, %cst_38 {dimension_numbers = #tpu.dot_dimension_numbers<[1], [0], [0], [1], [0, 0, 1, 1], [], []>} : vector<8x64xf32>, vector<64x64xf32>, vector<8x64xf32> -> vector<8x64xf32>
    %cst_39 = arith.constant 1.600000e+01 : f32
    %139 = vector.broadcast %cst_39 : f32 to vector<8x64xf32>
    %140 = arith.divf %138, %139 : vector<8x64xf32>
    %cst_40 = arith.constant 9.99999997E-7 : f32
    %141 = vector.broadcast %cst_40 : f32 to vector<8x64xf32>
    %142 = arith.addf %140, %141 : vector<8x64xf32>
    %143 = math.rsqrt %142 : vector<8x64xf32>
    %144 = arith.mulf %132, %143 : vector<8x64xf32>
    %145 = vector.broadcast %135 : vector<1x64xf32> to vector<8x64xf32>
    %146 = arith.mulf %144, %145 : vector<8x64xf32>
    %147 = arith.mulf %133, %133 : vector<8x32xf32>
    %cst_41 = arith.constant dense<0.000000e+00> : vector<8x32xf32>
    %148 = tpu.matmul %147, %11, %cst_41 {dimension_numbers = #tpu.dot_dimension_numbers<[1], [0], [0], [1], [0, 0, 1, 1], [], []>} : vector<8x32xf32>, vector<32x32xf32>, vector<8x32xf32> -> vector<8x32xf32>
    %cst_42 = arith.constant 1.600000e+01 : f32
    %149 = vector.broadcast %cst_42 : f32 to vector<8x32xf32>
    %150 = arith.divf %148, %149 : vector<8x32xf32>
    %cst_43 = arith.constant 9.99999997E-7 : f32
    %151 = vector.broadcast %cst_43 : f32 to vector<8x32xf32>
    %152 = arith.addf %150, %151 : vector<8x32xf32>
    %153 = math.rsqrt %152 : vector<8x32xf32>
    %154 = arith.mulf %133, %153 : vector<8x32xf32>
    %155 = vector.broadcast %136 : vector<1x32xf32> to vector<8x32xf32>
    %156 = arith.mulf %154, %155 : vector<8x32xf32>
    %157 = arith.mulf %146, %5 : vector<8x64xf32>
    %cst_44 = arith.constant dense<0.000000e+00> : vector<8x64xf32>
    %158 = tpu.matmul %146, %10, %cst_44 {dimension_numbers = #tpu.dot_dimension_numbers<[1], [0], [0], [1], [0, 0, 1, 1], [], []>} : vector<8x64xf32>, vector<64x64xf32>, vector<8x64xf32> -> vector<8x64xf32>
    %159 = arith.mulf %158, %6 : vector<8x64xf32>
    %160 = arith.addf %157, %159 : vector<8x64xf32>
    %161 = arith.mulf %156, %7 : vector<8x32xf32>
    %cst_45 = arith.constant dense<0.000000e+00> : vector<8x32xf32>
    %162 = tpu.matmul %156, %12, %cst_45 {dimension_numbers = #tpu.dot_dimension_numbers<[1], [0], [0], [1], [0, 0, 1, 1], [], []>} : vector<8x32xf32>, vector<32x32xf32>, vector<8x32xf32> -> vector<8x32xf32>
    %163 = arith.mulf %162, %8 : vector<8x32xf32>
    %164 = arith.addf %161, %163 : vector<8x32xf32>
    %165 = vector.extract_strided_slice %160 {offsets = [0, 0], sizes = [8, 16], strides = [1, 1]} : vector<8x64xf32> to vector<8x16xf32>
    %166 = vector.extract_strided_slice %164 {offsets = [0, 0], sizes = [8, 16], strides = [1, 1]} : vector<8x32xf32> to vector<8x16xf32>
    %167 = vector.extract_strided_slice %134 {offsets = [0, 0], sizes = [8, 16], strides = [1, 1]} : vector<8x32xf32> to vector<8x16xf32>
    %cst_46 = arith.constant dense<0.000000e+00> : vector<8x8xf32>
    %168 = tpu.matmul %165, %166, %cst_46 {dimension_numbers = #tpu.dot_dimension_numbers<[1], [1], [0], [0], [0, 0, 1, 0], [], []>} : vector<8x16xf32>, vector<8x16xf32>, vector<8x8xf32> -> vector<8x8xf32>
    %cst_47 = arith.constant 2.500000e-01 : f32
    %169 = vector.broadcast %cst_47 : f32 to vector<8x8xf32>
    %170 = arith.mulf %168, %169 : vector<8x8xf32>
    %171 = arith.addf %170, %18 : vector<8x8xf32>
    %cst_48 = arith.constant dense<0xFF800000> : vector<8xf32>
    %172 = vector.multi_reduction <maximumf>, %171, %cst_48 [1] : vector<8x8xf32> to vector<8xf32>
    %173 = vector.shape_cast %172 : vector<8xf32> to vector<8x1xf32>
    %174 = vector.broadcast %173 : vector<8x1xf32> to vector<8x8xf32>
    %175 = arith.subf %171, %174 : vector<8x8xf32>
    %176 = math.exp %175 : vector<8x8xf32>
    %cst_49 = arith.constant dense<0.000000e+00> : vector<8xf32>
    %177 = vector.multi_reduction <add>, %176, %cst_49 [1] : vector<8x8xf32> to vector<8xf32>
    %178 = vector.shape_cast %177 : vector<8xf32> to vector<8x1xf32>
    %179 = tpu.reciprocal %178 {approx = true} : vector<8x1xf32> -> vector<8x1xf32>
    %180 = vector.broadcast %179 : vector<8x1xf32> to vector<8x8xf32>
    %181 = arith.mulf %176, %180 : vector<8x8xf32>
    %cst_50 = arith.constant dense<0.000000e+00> : vector<8x16xf32>
    %182 = tpu.matmul %181, %167, %cst_50 {dimension_numbers = #tpu.dot_dimension_numbers<[1], [0], [0], [1], [0, 0, 1, 1], [], []>} : vector<8x8xf32>, vector<8x16xf32>, vector<8x16xf32> -> vector<8x16xf32>
    %183 = vector.extract_strided_slice %160 {offsets = [0, 16], sizes = [8, 16], strides = [1, 1]} : vector<8x64xf32> to vector<8x16xf32>
    %184 = vector.extract_strided_slice %164 {offsets = [0, 0], sizes = [8, 16], strides = [1, 1]} : vector<8x32xf32> to vector<8x16xf32>
    %185 = vector.extract_strided_slice %134 {offsets = [0, 0], sizes = [8, 16], strides = [1, 1]} : vector<8x32xf32> to vector<8x16xf32>
    %cst_51 = arith.constant dense<0.000000e+00> : vector<8x8xf32>
    %186 = tpu.matmul %183, %184, %cst_51 {dimension_numbers = #tpu.dot_dimension_numbers<[1], [1], [0], [0], [0, 0, 1, 0], [], []>} : vector<8x16xf32>, vector<8x16xf32>, vector<8x8xf32> -> vector<8x8xf32>
    %cst_52 = arith.constant 2.500000e-01 : f32
    %187 = vector.broadcast %cst_52 : f32 to vector<8x8xf32>
    %188 = arith.mulf %186, %187 : vector<8x8xf32>
    %189 = arith.addf %188, %18 : vector<8x8xf32>
    %cst_53 = arith.constant dense<0xFF800000> : vector<8xf32>
    %190 = vector.multi_reduction <maximumf>, %189, %cst_53 [1] : vector<8x8xf32> to vector<8xf32>
    %191 = vector.shape_cast %190 : vector<8xf32> to vector<8x1xf32>
    %192 = vector.broadcast %191 : vector<8x1xf32> to vector<8x8xf32>
    %193 = arith.subf %189, %192 : vector<8x8xf32>
    %194 = math.exp %193 : vector<8x8xf32>
    %cst_54 = arith.constant dense<0.000000e+00> : vector<8xf32>
    %195 = vector.multi_reduction <add>, %194, %cst_54 [1] : vector<8x8xf32> to vector<8xf32>
    %196 = vector.shape_cast %195 : vector<8xf32> to vector<8x1xf32>
    %197 = tpu.reciprocal %196 {approx = true} : vector<8x1xf32> -> vector<8x1xf32>
    %198 = vector.broadcast %197 : vector<8x1xf32> to vector<8x8xf32>
    %199 = arith.mulf %194, %198 : vector<8x8xf32>
    %cst_55 = arith.constant dense<0.000000e+00> : vector<8x16xf32>
    %200 = tpu.matmul %199, %185, %cst_55 {dimension_numbers = #tpu.dot_dimension_numbers<[1], [0], [0], [1], [0, 0, 1, 1], [], []>} : vector<8x8xf32>, vector<8x16xf32>, vector<8x16xf32> -> vector<8x16xf32>
    %201 = vector.extract_strided_slice %160 {offsets = [0, 32], sizes = [8, 16], strides = [1, 1]} : vector<8x64xf32> to vector<8x16xf32>
    %202 = vector.extract_strided_slice %164 {offsets = [0, 16], sizes = [8, 16], strides = [1, 1]} : vector<8x32xf32> to vector<8x16xf32>
    %203 = vector.extract_strided_slice %134 {offsets = [0, 16], sizes = [8, 16], strides = [1, 1]} : vector<8x32xf32> to vector<8x16xf32>
    %cst_56 = arith.constant dense<0.000000e+00> : vector<8x8xf32>
    %204 = tpu.matmul %201, %202, %cst_56 {dimension_numbers = #tpu.dot_dimension_numbers<[1], [1], [0], [0], [0, 0, 1, 0], [], []>} : vector<8x16xf32>, vector<8x16xf32>, vector<8x8xf32> -> vector<8x8xf32>
    %cst_57 = arith.constant 2.500000e-01 : f32
    %205 = vector.broadcast %cst_57 : f32 to vector<8x8xf32>
    %206 = arith.mulf %204, %205 : vector<8x8xf32>
    %207 = arith.addf %206, %18 : vector<8x8xf32>
    %cst_58 = arith.constant dense<0xFF800000> : vector<8xf32>
    %208 = vector.multi_reduction <maximumf>, %207, %cst_58 [1] : vector<8x8xf32> to vector<8xf32>
    %209 = vector.shape_cast %208 : vector<8xf32> to vector<8x1xf32>
    %210 = vector.broadcast %209 : vector<8x1xf32> to vector<8x8xf32>
    %211 = arith.subf %207, %210 : vector<8x8xf32>
    %212 = math.exp %211 : vector<8x8xf32>
    %cst_59 = arith.constant dense<0.000000e+00> : vector<8xf32>
    %213 = vector.multi_reduction <add>, %212, %cst_59 [1] : vector<8x8xf32> to vector<8xf32>
    %214 = vector.shape_cast %213 : vector<8xf32> to vector<8x1xf32>
    %215 = tpu.reciprocal %214 {approx = true} : vector<8x1xf32> -> vector<8x1xf32>
    %216 = vector.broadcast %215 : vector<8x1xf32> to vector<8x8xf32>
    %217 = arith.mulf %212, %216 : vector<8x8xf32>
    %cst_60 = arith.constant dense<0.000000e+00> : vector<8x16xf32>
    %218 = tpu.matmul %217, %203, %cst_60 {dimension_numbers = #tpu.dot_dimension_numbers<[1], [0], [0], [1], [0, 0, 1, 1], [], []>} : vector<8x8xf32>, vector<8x16xf32>, vector<8x16xf32> -> vector<8x16xf32>
    %219 = vector.extract_strided_slice %160 {offsets = [0, 48], sizes = [8, 16], strides = [1, 1]} : vector<8x64xf32> to vector<8x16xf32>
    %220 = vector.extract_strided_slice %164 {offsets = [0, 16], sizes = [8, 16], strides = [1, 1]} : vector<8x32xf32> to vector<8x16xf32>
    %221 = vector.extract_strided_slice %134 {offsets = [0, 16], sizes = [8, 16], strides = [1, 1]} : vector<8x32xf32> to vector<8x16xf32>
    %cst_61 = arith.constant dense<0.000000e+00> : vector<8x8xf32>
    %222 = tpu.matmul %219, %220, %cst_61 {dimension_numbers = #tpu.dot_dimension_numbers<[1], [1], [0], [0], [0, 0, 1, 0], [], []>} : vector<8x16xf32>, vector<8x16xf32>, vector<8x8xf32> -> vector<8x8xf32>
    %cst_62 = arith.constant 2.500000e-01 : f32
    %223 = vector.broadcast %cst_62 : f32 to vector<8x8xf32>
    %224 = arith.mulf %222, %223 : vector<8x8xf32>
    %225 = arith.addf %224, %18 : vector<8x8xf32>
    %cst_63 = arith.constant dense<0xFF800000> : vector<8xf32>
    %226 = vector.multi_reduction <maximumf>, %225, %cst_63 [1] : vector<8x8xf32> to vector<8xf32>
    %227 = vector.shape_cast %226 : vector<8xf32> to vector<8x1xf32>
    %228 = vector.broadcast %227 : vector<8x1xf32> to vector<8x8xf32>
    %229 = arith.subf %225, %228 : vector<8x8xf32>
    %230 = math.exp %229 : vector<8x8xf32>
    %cst_64 = arith.constant dense<0.000000e+00> : vector<8xf32>
    %231 = vector.multi_reduction <add>, %230, %cst_64 [1] : vector<8x8xf32> to vector<8xf32>
    %232 = vector.shape_cast %231 : vector<8xf32> to vector<8x1xf32>
    %233 = tpu.reciprocal %232 {approx = true} : vector<8x1xf32> -> vector<8x1xf32>
    %234 = vector.broadcast %233 : vector<8x1xf32> to vector<8x8xf32>
    %235 = arith.mulf %230, %234 : vector<8x8xf32>
    %cst_65 = arith.constant dense<0.000000e+00> : vector<8x16xf32>
    %236 = tpu.matmul %235, %221, %cst_65 {dimension_numbers = #tpu.dot_dimension_numbers<[1], [0], [0], [1], [0, 0, 1, 1], [], []>} : vector<8x8xf32>, vector<8x16xf32>, vector<8x16xf32> -> vector<8x16xf32>
    %237 = tpu.concatenate %182, %200, %218, %236 in 1 : vector<8x16xf32>, vector<8x16xf32>, vector<8x16xf32>, vector<8x16xf32> -> vector<8x64xf32>
    %c0_66 = arith.constant 0 : index
    %c1152 = arith.constant 1152 : index
    %238 = vector.load %arg2[%c0_66, %c1152] : memref<64x2816xf32, #tpu.memory_space<vmem>>, vector<64x64xf32>
    %cst_67 = arith.constant dense<0.000000e+00> : vector<8x64xf32>
    %239 = tpu.matmul %237, %238, %cst_67 {dimension_numbers = #tpu.dot_dimension_numbers<[1], [0], [0], [1], [0, 0, 1, 1], [], []>} : vector<8x64xf32>, vector<64x64xf32>, vector<8x64xf32> -> vector<8x64xf32>
    %240 = arith.addf %115, %239 : vector<8x64xf32>
    %241 = arith.mulf %240, %240 : vector<8x64xf32>
    %cst_68 = arith.constant dense<0.000000e+00> : vector<8xf32>
    %242 = vector.multi_reduction <add>, %241, %cst_68 [1] : vector<8x64xf32> to vector<8xf32>
    %243 = vector.shape_cast %242 : vector<8xf32> to vector<8x1xf32>
    %cst_69 = arith.constant 6.400000e+01 : f32
    %244 = vector.broadcast %cst_69 : f32 to vector<8x1xf32>
    %245 = arith.divf %243, %244 : vector<8x1xf32>
    %cst_70 = arith.constant 9.99999997E-7 : f32
    %246 = vector.broadcast %cst_70 : f32 to vector<8x1xf32>
    %247 = arith.addf %245, %246 : vector<8x1xf32>
    %248 = math.rsqrt %247 : vector<8x1xf32>
    %249 = vector.broadcast %248 : vector<8x1xf32> to vector<8x64xf32>
    %250 = arith.mulf %240, %249 : vector<8x64xf32>
    %251 = vector.broadcast %117 : vector<1x64xf32> to vector<8x64xf32>
    %252 = arith.mulf %250, %251 : vector<8x64xf32>
    %c0_71 = arith.constant 0 : index
    %c640 = arith.constant 640 : index
    %253 = vector.load %arg2[%c0_71, %c640] : memref<64x2816xf32, #tpu.memory_space<vmem>>, vector<64x256xf32>
    %c128 = arith.constant 128 : index
    %c0_72 = arith.constant 0 : index
    %254 = vector.load %arg3[%c128, %c0_72] : memref<512x64xf32, #tpu.memory_space<vmem>>, vector<128x64xf32>
    %cst_73 = arith.constant dense<0.000000e+00> : vector<8x256xf32>
    %255 = tpu.matmul %252, %253, %cst_73 {dimension_numbers = #tpu.dot_dimension_numbers<[1], [0], [0], [1], [0, 0, 1, 1], [], []>} : vector<8x64xf32>, vector<64x256xf32>, vector<8x256xf32> -> vector<8x256xf32>
    %256 = vector.extract_strided_slice %255 {offsets = [0, 0], sizes = [8, 128], strides = [1, 1]} : vector<8x256xf32> to vector<8x128xf32>
    %257 = vector.extract_strided_slice %255 {offsets = [0, 128], sizes = [8, 128], strides = [1, 1]} : vector<8x256xf32> to vector<8x128xf32>
    %cst_74 = arith.constant 0.000000e+00 : f32
    %258 = vector.broadcast %cst_74 : f32 to vector<8x128xf32>
    %259 = arith.subf %258, %256 : vector<8x128xf32>
    %260 = math.exp %259 : vector<8x128xf32>
    %cst_75 = arith.constant 1.000000e+00 : f32
    %261 = vector.broadcast %cst_75 : f32 to vector<8x128xf32>
    %262 = arith.addf %261, %260 : vector<8x128xf32>
    %263 = tpu.reciprocal %262 {approx = true} : vector<8x128xf32> -> vector<8x128xf32>
    %264 = arith.mulf %256, %263 : vector<8x128xf32>
    %265 = arith.mulf %264, %257 : vector<8x128xf32>
    %cst_76 = arith.constant dense<0.000000e+00> : vector<8x64xf32>
    %266 = tpu.matmul %265, %254, %cst_76 {dimension_numbers = #tpu.dot_dimension_numbers<[1], [0], [0], [1], [0, 0, 1, 1], [], []>} : vector<8x128xf32>, vector<128x64xf32>, vector<8x64xf32> -> vector<8x64xf32>
    %267 = arith.addf %240, %266 : vector<8x64xf32>
    %268 = vector.extract_strided_slice %2 {offsets = [22, 0], sizes = [1, 64], strides = [1, 1]} : vector<45x64xf32> to vector<1x64xf32>
    %269 = vector.extract_strided_slice %2 {offsets = [23, 0], sizes = [1, 64], strides = [1, 1]} : vector<45x64xf32> to vector<1x64xf32>
    %270 = arith.mulf %267, %267 : vector<8x64xf32>
    %cst_77 = arith.constant dense<0.000000e+00> : vector<8xf32>
    %271 = vector.multi_reduction <add>, %270, %cst_77 [1] : vector<8x64xf32> to vector<8xf32>
    %272 = vector.shape_cast %271 : vector<8xf32> to vector<8x1xf32>
    %cst_78 = arith.constant 6.400000e+01 : f32
    %273 = vector.broadcast %cst_78 : f32 to vector<8x1xf32>
    %274 = arith.divf %272, %273 : vector<8x1xf32>
    %cst_79 = arith.constant 9.99999997E-7 : f32
    %275 = vector.broadcast %cst_79 : f32 to vector<8x1xf32>
    %276 = arith.addf %274, %275 : vector<8x1xf32>
    %277 = math.rsqrt %276 : vector<8x1xf32>
    %278 = vector.broadcast %277 : vector<8x1xf32> to vector<8x64xf32>
    %279 = arith.mulf %267, %278 : vector<8x64xf32>
    %280 = vector.broadcast %268 : vector<1x64xf32> to vector<8x64xf32>
    %281 = arith.mulf %279, %280 : vector<8x64xf32>
    %c0_80 = arith.constant 0 : index
    %c1536 = arith.constant 1536 : index
    %282 = vector.load %arg2[%c0_80, %c1536] : memref<64x2816xf32, #tpu.memory_space<vmem>>, vector<64x192xf32>
    %cst_81 = arith.constant dense<0.000000e+00> : vector<8x192xf32>
    %283 = tpu.matmul %281, %282, %cst_81 {dimension_numbers = #tpu.dot_dimension_numbers<[1], [0], [0], [1], [0, 0, 1, 1], [], []>} : vector<8x64xf32>, vector<64x192xf32>, vector<8x192xf32> -> vector<8x192xf32>
    %284 = vector.extract_strided_slice %283 {offsets = [0, 0], sizes = [8, 64], strides = [1, 1]} : vector<8x192xf32> to vector<8x64xf32>
    %285 = vector.extract_strided_slice %2 {offsets = [24, 0], sizes = [1, 64], strides = [1, 1]} : vector<45x64xf32> to vector<1x64xf32>
    %286 = vector.broadcast %285 : vector<1x64xf32> to vector<8x64xf32>
    %287 = arith.addf %284, %286 : vector<8x64xf32>
    %288 = vector.extract_strided_slice %283 {offsets = [0, 64], sizes = [8, 64], strides = [1, 1]} : vector<8x192xf32> to vector<8x64xf32>
    %289 = vector.extract_strided_slice %2 {offsets = [25, 0], sizes = [1, 64], strides = [1, 1]} : vector<45x64xf32> to vector<1x64xf32>
    %290 = vector.broadcast %289 : vector<1x64xf32> to vector<8x64xf32>
    %291 = arith.addf %288, %290 : vector<8x64xf32>
    %292 = vector.extract_strided_slice %283 {offsets = [0, 128], sizes = [8, 64], strides = [1, 1]} : vector<8x192xf32> to vector<8x64xf32>
    %293 = vector.extract_strided_slice %2 {offsets = [26, 0], sizes = [1, 64], strides = [1, 1]} : vector<45x64xf32> to vector<1x64xf32>
    %294 = vector.broadcast %293 : vector<1x64xf32> to vector<8x64xf32>
    %295 = arith.addf %292, %294 : vector<8x64xf32>
    %296 = arith.mulf %287, %295 : vector<8x64xf32>
    %297 = vector.extract_strided_slice %2 {offsets = [27, 0], sizes = [1, 64], strides = [1, 1]} : vector<45x64xf32> to vector<1x64xf32>
    %298 = vector.extract_strided_slice %2 {offsets = [29, 0], sizes = [1, 64], strides = [1, 1]} : vector<45x64xf32> to vector<1x64xf32>
    %c3_i32_82 = arith.constant 3 : i32
    %299 = vector.broadcast %c3_i32_82 : i32 to vector<8x64xi32>
    %300 = arith.cmpi sge, %19, %299 : vector<8x64xi32>
    %c3_i32_83 = arith.constant 3 : i32
    %301 = tpu.dynamic_rotate %296 by %c3_i32_83 dim 0 : vector<8x64xf32>, i32 -> vector<8x64xf32>
    %cst_84 = arith.constant 0.000000e+00 : f32
    %302 = vector.broadcast %cst_84 : f32 to vector<8x64xf32>
    %303 = arith.select %300, %301, %302 : vector<8x64xi1>, vector<8x64xf32>
    %304 = vector.broadcast %298 : vector<1x64xf32> to vector<8x64xf32>
    %305 = arith.mulf %304, %303 : vector<8x64xf32>
    %306 = vector.broadcast %297 : vector<1x64xf32> to vector<8x64xf32>
    %307 = arith.addf %306, %305 : vector<8x64xf32>
    %308 = vector.extract_strided_slice %2 {offsets = [30, 0], sizes = [1, 64], strides = [1, 1]} : vector<45x64xf32> to vector<1x64xf32>
    %c2_i32_85 = arith.constant 2 : i32
    %309 = vector.broadcast %c2_i32_85 : i32 to vector<8x64xi32>
    %310 = arith.cmpi sge, %19, %309 : vector<8x64xi32>
    %c2_i32_86 = arith.constant 2 : i32
    %311 = tpu.dynamic_rotate %296 by %c2_i32_86 dim 0 : vector<8x64xf32>, i32 -> vector<8x64xf32>
    %cst_87 = arith.constant 0.000000e+00 : f32
    %312 = vector.broadcast %cst_87 : f32 to vector<8x64xf32>
    %313 = arith.select %310, %311, %312 : vector<8x64xi1>, vector<8x64xf32>
    %314 = vector.broadcast %308 : vector<1x64xf32> to vector<8x64xf32>
    %315 = arith.mulf %314, %313 : vector<8x64xf32>
    %316 = arith.addf %307, %315 : vector<8x64xf32>
    %317 = vector.extract_strided_slice %2 {offsets = [31, 0], sizes = [1, 64], strides = [1, 1]} : vector<45x64xf32> to vector<1x64xf32>
    %c1_i32_88 = arith.constant 1 : i32
    %318 = vector.broadcast %c1_i32_88 : i32 to vector<8x64xi32>
    %319 = arith.cmpi sge, %19, %318 : vector<8x64xi32>
    %c1_i32_89 = arith.constant 1 : i32
    %320 = tpu.dynamic_rotate %296 by %c1_i32_89 dim 0 : vector<8x64xf32>, i32 -> vector<8x64xf32>
    %cst_90 = arith.constant 0.000000e+00 : f32
    %321 = vector.broadcast %cst_90 : f32 to vector<8x64xf32>
    %322 = arith.select %319, %320, %321 : vector<8x64xi1>, vector<8x64xf32>
    %323 = vector.broadcast %317 : vector<1x64xf32> to vector<8x64xf32>
    %324 = arith.mulf %323, %322 : vector<8x64xf32>
    %325 = arith.addf %316, %324 : vector<8x64xf32>
    %326 = vector.extract_strided_slice %2 {offsets = [32, 0], sizes = [1, 64], strides = [1, 1]} : vector<45x64xf32> to vector<1x64xf32>
    %327 = vector.broadcast %326 : vector<1x64xf32> to vector<8x64xf32>
    %328 = arith.mulf %327, %296 : vector<8x64xf32>
    %329 = arith.addf %325, %328 : vector<8x64xf32>
    %330 = arith.mulf %291, %329 : vector<8x64xf32>
    %c0_91 = arith.constant 0 : index
    %c1792 = arith.constant 1792 : index
    %331 = vector.load %arg2[%c0_91, %c1792] : memref<64x2816xf32, #tpu.memory_space<vmem>>, vector<64x64xf32>
    %cst_92 = arith.constant dense<0.000000e+00> : vector<8x64xf32>
    %332 = tpu.matmul %330, %331, %cst_92 {dimension_numbers = #tpu.dot_dimension_numbers<[1], [0], [0], [1], [0, 0, 1, 1], [], []>} : vector<8x64xf32>, vector<64x64xf32>, vector<8x64xf32> -> vector<8x64xf32>
    %333 = vector.extract_strided_slice %2 {offsets = [28, 0], sizes = [1, 64], strides = [1, 1]} : vector<45x64xf32> to vector<1x64xf32>
    %334 = vector.broadcast %333 : vector<1x64xf32> to vector<8x64xf32>
    %335 = arith.addf %332, %334 : vector<8x64xf32>
    %336 = arith.addf %267, %335 : vector<8x64xf32>
    %337 = arith.mulf %336, %336 : vector<8x64xf32>
    %cst_93 = arith.constant dense<0.000000e+00> : vector<8xf32>
    %338 = vector.multi_reduction <add>, %337, %cst_93 [1] : vector<8x64xf32> to vector<8xf32>
    %339 = vector.shape_cast %338 : vector<8xf32> to vector<8x1xf32>
    %cst_94 = arith.constant 6.400000e+01 : f32
    %340 = vector.broadcast %cst_94 : f32 to vector<8x1xf32>
    %341 = arith.divf %339, %340 : vector<8x1xf32>
    %cst_95 = arith.constant 9.99999997E-7 : f32
    %342 = vector.broadcast %cst_95 : f32 to vector<8x1xf32>
    %343 = arith.addf %341, %342 : vector<8x1xf32>
    %344 = math.rsqrt %343 : vector<8x1xf32>
    %345 = vector.broadcast %344 : vector<8x1xf32> to vector<8x64xf32>
    %346 = arith.mulf %336, %345 : vector<8x64xf32>
    %347 = vector.broadcast %269 : vector<1x64xf32> to vector<8x64xf32>
    %348 = arith.mulf %346, %347 : vector<8x64xf32>
    %c0_96 = arith.constant 0 : index
    %c1280 = arith.constant 1280 : index
    %349 = vector.load %arg2[%c0_96, %c1280] : memref<64x2816xf32, #tpu.memory_space<vmem>>, vector<64x256xf32>
    %c256_97 = arith.constant 256 : index
    %c0_98 = arith.constant 0 : index
    %350 = vector.load %arg3[%c256_97, %c0_98] : memref<512x64xf32, #tpu.memory_space<vmem>>, vector<128x64xf32>
    %cst_99 = arith.constant dense<0.000000e+00> : vector<8x256xf32>
    %351 = tpu.matmul %348, %349, %cst_99 {dimension_numbers = #tpu.dot_dimension_numbers<[1], [0], [0], [1], [0, 0, 1, 1], [], []>} : vector<8x64xf32>, vector<64x256xf32>, vector<8x256xf32> -> vector<8x256xf32>
    %352 = vector.extract_strided_slice %351 {offsets = [0, 0], sizes = [8, 128], strides = [1, 1]} : vector<8x256xf32> to vector<8x128xf32>
    %353 = vector.extract_strided_slice %351 {offsets = [0, 128], sizes = [8, 128], strides = [1, 1]} : vector<8x256xf32> to vector<8x128xf32>
    %cst_100 = arith.constant 0.000000e+00 : f32
    %354 = vector.broadcast %cst_100 : f32 to vector<8x128xf32>
    %355 = arith.subf %354, %352 : vector<8x128xf32>
    %356 = math.exp %355 : vector<8x128xf32>
    %cst_101 = arith.constant 1.000000e+00 : f32
    %357 = vector.broadcast %cst_101 : f32 to vector<8x128xf32>
    %358 = arith.addf %357, %356 : vector<8x128xf32>
    %359 = tpu.reciprocal %358 {approx = true} : vector<8x128xf32> -> vector<8x128xf32>
    %360 = arith.mulf %352, %359 : vector<8x128xf32>
    %361 = arith.mulf %360, %353 : vector<8x128xf32>
    %cst_102 = arith.constant dense<0.000000e+00> : vector<8x64xf32>
    %362 = tpu.matmul %361, %350, %cst_102 {dimension_numbers = #tpu.dot_dimension_numbers<[1], [0], [0], [1], [0, 0, 1, 1], [], []>} : vector<8x128xf32>, vector<128x64xf32>, vector<8x64xf32> -> vector<8x64xf32>
    %363 = arith.addf %336, %362 : vector<8x64xf32>
    %364 = vector.extract_strided_slice %2 {offsets = [33, 0], sizes = [1, 64], strides = [1, 1]} : vector<45x64xf32> to vector<1x64xf32>
    %365 = vector.extract_strided_slice %2 {offsets = [34, 0], sizes = [1, 64], strides = [1, 1]} : vector<45x64xf32> to vector<1x64xf32>
    %366 = arith.mulf %363, %363 : vector<8x64xf32>
    %cst_103 = arith.constant dense<0.000000e+00> : vector<8xf32>
    %367 = vector.multi_reduction <add>, %366, %cst_103 [1] : vector<8x64xf32> to vector<8xf32>
    %368 = vector.shape_cast %367 : vector<8xf32> to vector<8x1xf32>
    %cst_104 = arith.constant 6.400000e+01 : f32
    %369 = vector.broadcast %cst_104 : f32 to vector<8x1xf32>
    %370 = arith.divf %368, %369 : vector<8x1xf32>
    %cst_105 = arith.constant 9.99999997E-7 : f32
    %371 = vector.broadcast %cst_105 : f32 to vector<8x1xf32>
    %372 = arith.addf %370, %371 : vector<8x1xf32>
    %373 = math.rsqrt %372 : vector<8x1xf32>
    %374 = vector.broadcast %373 : vector<8x1xf32> to vector<8x64xf32>
    %375 = arith.mulf %363, %374 : vector<8x64xf32>
    %376 = vector.broadcast %364 : vector<1x64xf32> to vector<8x64xf32>
    %377 = arith.mulf %375, %376 : vector<8x64xf32>
    %c0_106 = arith.constant 0 : index
    %c2176 = arith.constant 2176 : index
    %378 = vector.load %arg2[%c0_106, %c2176] : memref<64x2816xf32, #tpu.memory_space<vmem>>, vector<64x128xf32>
    %cst_107 = arith.constant dense<0.000000e+00> : vector<8x128xf32>
    %379 = tpu.matmul %377, %378, %cst_107 {dimension_numbers = #tpu.dot_dimension_numbers<[1], [0], [0], [1], [0, 0, 1, 1], [], []>} : vector<8x64xf32>, vector<64x128xf32>, vector<8x128xf32> -> vector<8x128xf32>
    %380 = vector.extract_strided_slice %379 {offsets = [0, 0], sizes = [8, 64], strides = [1, 1]} : vector<8x128xf32> to vector<8x64xf32>
    %381 = vector.extract_strided_slice %379 {offsets = [0, 64], sizes = [8, 32], strides = [1, 1]} : vector<8x128xf32> to vector<8x32xf32>
    %382 = vector.extract_strided_slice %379 {offsets = [0, 96], sizes = [8, 32], strides = [1, 1]} : vector<8x128xf32> to vector<8x32xf32>
    %383 = vector.extract_strided_slice %2 {offsets = [35, 0], sizes = [1, 64], strides = [1, 1]} : vector<45x64xf32> to vector<1x64xf32>
    %384 = vector.extract_strided_slice %2 {offsets = [36, 0], sizes = [1, 32], strides = [1, 1]} : vector<45x64xf32> to vector<1x32xf32>
    %385 = arith.mulf %380, %380 : vector<8x64xf32>
    %cst_108 = arith.constant dense<0.000000e+00> : vector<8x64xf32>
    %386 = tpu.matmul %385, %9, %cst_108 {dimension_numbers = #tpu.dot_dimension_numbers<[1], [0], [0], [1], [0, 0, 1, 1], [], []>} : vector<8x64xf32>, vector<64x64xf32>, vector<8x64xf32> -> vector<8x64xf32>
    %cst_109 = arith.constant 1.600000e+01 : f32
    %387 = vector.broadcast %cst_109 : f32 to vector<8x64xf32>
    %388 = arith.divf %386, %387 : vector<8x64xf32>
    %cst_110 = arith.constant 9.99999997E-7 : f32
    %389 = vector.broadcast %cst_110 : f32 to vector<8x64xf32>
    %390 = arith.addf %388, %389 : vector<8x64xf32>
    %391 = math.rsqrt %390 : vector<8x64xf32>
    %392 = arith.mulf %380, %391 : vector<8x64xf32>
    %393 = vector.broadcast %383 : vector<1x64xf32> to vector<8x64xf32>
    %394 = arith.mulf %392, %393 : vector<8x64xf32>
    %395 = arith.mulf %381, %381 : vector<8x32xf32>
    %cst_111 = arith.constant dense<0.000000e+00> : vector<8x32xf32>
    %396 = tpu.matmul %395, %11, %cst_111 {dimension_numbers = #tpu.dot_dimension_numbers<[1], [0], [0], [1], [0, 0, 1, 1], [], []>} : vector<8x32xf32>, vector<32x32xf32>, vector<8x32xf32> -> vector<8x32xf32>
    %cst_112 = arith.constant 1.600000e+01 : f32
    %397 = vector.broadcast %cst_112 : f32 to vector<8x32xf32>
    %398 = arith.divf %396, %397 : vector<8x32xf32>
    %cst_113 = arith.constant 9.99999997E-7 : f32
    %399 = vector.broadcast %cst_113 : f32 to vector<8x32xf32>
    %400 = arith.addf %398, %399 : vector<8x32xf32>
    %401 = math.rsqrt %400 : vector<8x32xf32>
    %402 = arith.mulf %381, %401 : vector<8x32xf32>
    %403 = vector.broadcast %384 : vector<1x32xf32> to vector<8x32xf32>
    %404 = arith.mulf %402, %403 : vector<8x32xf32>
    %405 = arith.mulf %394, %5 : vector<8x64xf32>
    %cst_114 = arith.constant dense<0.000000e+00> : vector<8x64xf32>
    %406 = tpu.matmul %394, %10, %cst_114 {dimension_numbers = #tpu.dot_dimension_numbers<[1], [0], [0], [1], [0, 0, 1, 1], [], []>} : vector<8x64xf32>, vector<64x64xf32>, vector<8x64xf32> -> vector<8x64xf32>
    %407 = arith.mulf %406, %6 : vector<8x64xf32>
    %408 = arith.addf %405, %407 : vector<8x64xf32>
    %409 = arith.mulf %404, %7 : vector<8x32xf32>
    %cst_115 = arith.constant dense<0.000000e+00> : vector<8x32xf32>
    %410 = tpu.matmul %404, %12, %cst_115 {dimension_numbers = #tpu.dot_dimension_numbers<[1], [0], [0], [1], [0, 0, 1, 1], [], []>} : vector<8x32xf32>, vector<32x32xf32>, vector<8x32xf32> -> vector<8x32xf32>
    %411 = arith.mulf %410, %8 : vector<8x32xf32>
    %412 = arith.addf %409, %411 : vector<8x32xf32>
    %413 = vector.extract_strided_slice %408 {offsets = [0, 0], sizes = [8, 16], strides = [1, 1]} : vector<8x64xf32> to vector<8x16xf32>
    %414 = vector.extract_strided_slice %412 {offsets = [0, 0], sizes = [8, 16], strides = [1, 1]} : vector<8x32xf32> to vector<8x16xf32>
    %415 = vector.extract_strided_slice %382 {offsets = [0, 0], sizes = [8, 16], strides = [1, 1]} : vector<8x32xf32> to vector<8x16xf32>
    %cst_116 = arith.constant dense<0.000000e+00> : vector<8x8xf32>
    %416 = tpu.matmul %413, %414, %cst_116 {dimension_numbers = #tpu.dot_dimension_numbers<[1], [1], [0], [0], [0, 0, 1, 0], [], []>} : vector<8x16xf32>, vector<8x16xf32>, vector<8x8xf32> -> vector<8x8xf32>
    %cst_117 = arith.constant 2.500000e-01 : f32
    %417 = vector.broadcast %cst_117 : f32 to vector<8x8xf32>
    %418 = arith.mulf %416, %417 : vector<8x8xf32>
    %419 = arith.addf %418, %18 : vector<8x8xf32>
    %cst_118 = arith.constant dense<0xFF800000> : vector<8xf32>
    %420 = vector.multi_reduction <maximumf>, %419, %cst_118 [1] : vector<8x8xf32> to vector<8xf32>
    %421 = vector.shape_cast %420 : vector<8xf32> to vector<8x1xf32>
    %422 = vector.broadcast %421 : vector<8x1xf32> to vector<8x8xf32>
    %423 = arith.subf %419, %422 : vector<8x8xf32>
    %424 = math.exp %423 : vector<8x8xf32>
    %cst_119 = arith.constant dense<0.000000e+00> : vector<8xf32>
    %425 = vector.multi_reduction <add>, %424, %cst_119 [1] : vector<8x8xf32> to vector<8xf32>
    %426 = vector.shape_cast %425 : vector<8xf32> to vector<8x1xf32>
    %427 = tpu.reciprocal %426 {approx = true} : vector<8x1xf32> -> vector<8x1xf32>
    %428 = vector.broadcast %427 : vector<8x1xf32> to vector<8x8xf32>
    %429 = arith.mulf %424, %428 : vector<8x8xf32>
    %cst_120 = arith.constant dense<0.000000e+00> : vector<8x16xf32>
    %430 = tpu.matmul %429, %415, %cst_120 {dimension_numbers = #tpu.dot_dimension_numbers<[1], [0], [0], [1], [0, 0, 1, 1], [], []>} : vector<8x8xf32>, vector<8x16xf32>, vector<8x16xf32> -> vector<8x16xf32>
    %431 = vector.extract_strided_slice %408 {offsets = [0, 16], sizes = [8, 16], strides = [1, 1]} : vector<8x64xf32> to vector<8x16xf32>
    %432 = vector.extract_strided_slice %412 {offsets = [0, 0], sizes = [8, 16], strides = [1, 1]} : vector<8x32xf32> to vector<8x16xf32>
    %433 = vector.extract_strided_slice %382 {offsets = [0, 0], sizes = [8, 16], strides = [1, 1]} : vector<8x32xf32> to vector<8x16xf32>
    %cst_121 = arith.constant dense<0.000000e+00> : vector<8x8xf32>
    %434 = tpu.matmul %431, %432, %cst_121 {dimension_numbers = #tpu.dot_dimension_numbers<[1], [1], [0], [0], [0, 0, 1, 0], [], []>} : vector<8x16xf32>, vector<8x16xf32>, vector<8x8xf32> -> vector<8x8xf32>
    %cst_122 = arith.constant 2.500000e-01 : f32
    %435 = vector.broadcast %cst_122 : f32 to vector<8x8xf32>
    %436 = arith.mulf %434, %435 : vector<8x8xf32>
    %437 = arith.addf %436, %18 : vector<8x8xf32>
    %cst_123 = arith.constant dense<0xFF800000> : vector<8xf32>
    %438 = vector.multi_reduction <maximumf>, %437, %cst_123 [1] : vector<8x8xf32> to vector<8xf32>
    %439 = vector.shape_cast %438 : vector<8xf32> to vector<8x1xf32>
    %440 = vector.broadcast %439 : vector<8x1xf32> to vector<8x8xf32>
    %441 = arith.subf %437, %440 : vector<8x8xf32>
    %442 = math.exp %441 : vector<8x8xf32>
    %cst_124 = arith.constant dense<0.000000e+00> : vector<8xf32>
    %443 = vector.multi_reduction <add>, %442, %cst_124 [1] : vector<8x8xf32> to vector<8xf32>
    %444 = vector.shape_cast %443 : vector<8xf32> to vector<8x1xf32>
    %445 = tpu.reciprocal %444 {approx = true} : vector<8x1xf32> -> vector<8x1xf32>
    %446 = vector.broadcast %445 : vector<8x1xf32> to vector<8x8xf32>
    %447 = arith.mulf %442, %446 : vector<8x8xf32>
    %cst_125 = arith.constant dense<0.000000e+00> : vector<8x16xf32>
    %448 = tpu.matmul %447, %433, %cst_125 {dimension_numbers = #tpu.dot_dimension_numbers<[1], [0], [0], [1], [0, 0, 1, 1], [], []>} : vector<8x8xf32>, vector<8x16xf32>, vector<8x16xf32> -> vector<8x16xf32>
    %449 = vector.extract_strided_slice %408 {offsets = [0, 32], sizes = [8, 16], strides = [1, 1]} : vector<8x64xf32> to vector<8x16xf32>
    %450 = vector.extract_strided_slice %412 {offsets = [0, 16], sizes = [8, 16], strides = [1, 1]} : vector<8x32xf32> to vector<8x16xf32>
    %451 = vector.extract_strided_slice %382 {offsets = [0, 16], sizes = [8, 16], strides = [1, 1]} : vector<8x32xf32> to vector<8x16xf32>
    %cst_126 = arith.constant dense<0.000000e+00> : vector<8x8xf32>
    %452 = tpu.matmul %449, %450, %cst_126 {dimension_numbers = #tpu.dot_dimension_numbers<[1], [1], [0], [0], [0, 0, 1, 0], [], []>} : vector<8x16xf32>, vector<8x16xf32>, vector<8x8xf32> -> vector<8x8xf32>
    %cst_127 = arith.constant 2.500000e-01 : f32
    %453 = vector.broadcast %cst_127 : f32 to vector<8x8xf32>
    %454 = arith.mulf %452, %453 : vector<8x8xf32>
    %455 = arith.addf %454, %18 : vector<8x8xf32>
    %cst_128 = arith.constant dense<0xFF800000> : vector<8xf32>
    %456 = vector.multi_reduction <maximumf>, %455, %cst_128 [1] : vector<8x8xf32> to vector<8xf32>
    %457 = vector.shape_cast %456 : vector<8xf32> to vector<8x1xf32>
    %458 = vector.broadcast %457 : vector<8x1xf32> to vector<8x8xf32>
    %459 = arith.subf %455, %458 : vector<8x8xf32>
    %460 = math.exp %459 : vector<8x8xf32>
    %cst_129 = arith.constant dense<0.000000e+00> : vector<8xf32>
    %461 = vector.multi_reduction <add>, %460, %cst_129 [1] : vector<8x8xf32> to vector<8xf32>
    %462 = vector.shape_cast %461 : vector<8xf32> to vector<8x1xf32>
    %463 = tpu.reciprocal %462 {approx = true} : vector<8x1xf32> -> vector<8x1xf32>
    %464 = vector.broadcast %463 : vector<8x1xf32> to vector<8x8xf32>
    %465 = arith.mulf %460, %464 : vector<8x8xf32>
    %cst_130 = arith.constant dense<0.000000e+00> : vector<8x16xf32>
    %466 = tpu.matmul %465, %451, %cst_130 {dimension_numbers = #tpu.dot_dimension_numbers<[1], [0], [0], [1], [0, 0, 1, 1], [], []>} : vector<8x8xf32>, vector<8x16xf32>, vector<8x16xf32> -> vector<8x16xf32>
    %467 = vector.extract_strided_slice %408 {offsets = [0, 48], sizes = [8, 16], strides = [1, 1]} : vector<8x64xf32> to vector<8x16xf32>
    %468 = vector.extract_strided_slice %412 {offsets = [0, 16], sizes = [8, 16], strides = [1, 1]} : vector<8x32xf32> to vector<8x16xf32>
    %469 = vector.extract_strided_slice %382 {offsets = [0, 16], sizes = [8, 16], strides = [1, 1]} : vector<8x32xf32> to vector<8x16xf32>
    %cst_131 = arith.constant dense<0.000000e+00> : vector<8x8xf32>
    %470 = tpu.matmul %467, %468, %cst_131 {dimension_numbers = #tpu.dot_dimension_numbers<[1], [1], [0], [0], [0, 0, 1, 0], [], []>} : vector<8x16xf32>, vector<8x16xf32>, vector<8x8xf32> -> vector<8x8xf32>
    %cst_132 = arith.constant 2.500000e-01 : f32
    %471 = vector.broadcast %cst_132 : f32 to vector<8x8xf32>
    %472 = arith.mulf %470, %471 : vector<8x8xf32>
    %473 = arith.addf %472, %18 : vector<8x8xf32>
    %cst_133 = arith.constant dense<0xFF800000> : vector<8xf32>
    %474 = vector.multi_reduction <maximumf>, %473, %cst_133 [1] : vector<8x8xf32> to vector<8xf32>
    %475 = vector.shape_cast %474 : vector<8xf32> to vector<8x1xf32>
    %476 = vector.broadcast %475 : vector<8x1xf32> to vector<8x8xf32>
    %477 = arith.subf %473, %476 : vector<8x8xf32>
    %478 = math.exp %477 : vector<8x8xf32>
    %cst_134 = arith.constant dense<0.000000e+00> : vector<8xf32>
    %479 = vector.multi_reduction <add>, %478, %cst_134 [1] : vector<8x8xf32> to vector<8xf32>
    %480 = vector.shape_cast %479 : vector<8xf32> to vector<8x1xf32>
    %481 = tpu.reciprocal %480 {approx = true} : vector<8x1xf32> -> vector<8x1xf32>
    %482 = vector.broadcast %481 : vector<8x1xf32> to vector<8x8xf32>
    %483 = arith.mulf %478, %482 : vector<8x8xf32>
    %cst_135 = arith.constant dense<0.000000e+00> : vector<8x16xf32>
    %484 = tpu.matmul %483, %469, %cst_135 {dimension_numbers = #tpu.dot_dimension_numbers<[1], [0], [0], [1], [0, 0, 1, 1], [], []>} : vector<8x8xf32>, vector<8x16xf32>, vector<8x16xf32> -> vector<8x16xf32>
    %485 = tpu.concatenate %430, %448, %466, %484 in 1 : vector<8x16xf32>, vector<8x16xf32>, vector<8x16xf32>, vector<8x16xf32> -> vector<8x64xf32>
    %c0_136 = arith.constant 0 : index
    %c2432 = arith.constant 2432 : index
    %486 = vector.load %arg2[%c0_136, %c2432] : memref<64x2816xf32, #tpu.memory_space<vmem>>, vector<64x64xf32>
    %cst_137 = arith.constant dense<0.000000e+00> : vector<8x64xf32>
    %487 = tpu.matmul %485, %486, %cst_137 {dimension_numbers = #tpu.dot_dimension_numbers<[1], [0], [0], [1], [0, 0, 1, 1], [], []>} : vector<8x64xf32>, vector<64x64xf32>, vector<8x64xf32> -> vector<8x64xf32>
    %488 = arith.addf %363, %487 : vector<8x64xf32>
    %489 = arith.mulf %488, %488 : vector<8x64xf32>
    %cst_138 = arith.constant dense<0.000000e+00> : vector<8xf32>
    %490 = vector.multi_reduction <add>, %489, %cst_138 [1] : vector<8x64xf32> to vector<8xf32>
    %491 = vector.shape_cast %490 : vector<8xf32> to vector<8x1xf32>
    %cst_139 = arith.constant 6.400000e+01 : f32
    %492 = vector.broadcast %cst_139 : f32 to vector<8x1xf32>
    %493 = arith.divf %491, %492 : vector<8x1xf32>
    %cst_140 = arith.constant 9.99999997E-7 : f32
    %494 = vector.broadcast %cst_140 : f32 to vector<8x1xf32>
    %495 = arith.addf %493, %494 : vector<8x1xf32>
    %496 = math.rsqrt %495 : vector<8x1xf32>
    %497 = vector.broadcast %496 : vector<8x1xf32> to vector<8x64xf32>
    %498 = arith.mulf %488, %497 : vector<8x64xf32>
    %499 = vector.broadcast %365 : vector<1x64xf32> to vector<8x64xf32>
    %500 = arith.mulf %498, %499 : vector<8x64xf32>
    %c0_141 = arith.constant 0 : index
    %c1920 = arith.constant 1920 : index
    %501 = vector.load %arg2[%c0_141, %c1920] : memref<64x2816xf32, #tpu.memory_space<vmem>>, vector<64x256xf32>
    %c384 = arith.constant 384 : index
    %c0_142 = arith.constant 0 : index
    %502 = vector.load %arg3[%c384, %c0_142] : memref<512x64xf32, #tpu.memory_space<vmem>>, vector<128x64xf32>
    %cst_143 = arith.constant dense<0.000000e+00> : vector<8x256xf32>
    %503 = tpu.matmul %500, %501, %cst_143 {dimension_numbers = #tpu.dot_dimension_numbers<[1], [0], [0], [1], [0, 0, 1, 1], [], []>} : vector<8x64xf32>, vector<64x256xf32>, vector<8x256xf32> -> vector<8x256xf32>
    %504 = vector.extract_strided_slice %503 {offsets = [0, 0], sizes = [8, 128], strides = [1, 1]} : vector<8x256xf32> to vector<8x128xf32>
    %505 = vector.extract_strided_slice %503 {offsets = [0, 128], sizes = [8, 128], strides = [1, 1]} : vector<8x256xf32> to vector<8x128xf32>
    %cst_144 = arith.constant 0.000000e+00 : f32
    %506 = vector.broadcast %cst_144 : f32 to vector<8x128xf32>
    %507 = arith.subf %506, %504 : vector<8x128xf32>
    %508 = math.exp %507 : vector<8x128xf32>
    %cst_145 = arith.constant 1.000000e+00 : f32
    %509 = vector.broadcast %cst_145 : f32 to vector<8x128xf32>
    %510 = arith.addf %509, %508 : vector<8x128xf32>
    %511 = tpu.reciprocal %510 {approx = true} : vector<8x128xf32> -> vector<8x128xf32>
    %512 = arith.mulf %504, %511 : vector<8x128xf32>
    %513 = arith.mulf %512, %505 : vector<8x128xf32>
    %cst_146 = arith.constant dense<0.000000e+00> : vector<8x64xf32>
    %514 = tpu.matmul %513, %502, %cst_146 {dimension_numbers = #tpu.dot_dimension_numbers<[1], [0], [0], [1], [0, 0, 1, 1], [], []>} : vector<8x128xf32>, vector<128x64xf32>, vector<8x64xf32> -> vector<8x64xf32>
    %515 = arith.addf %488, %514 : vector<8x64xf32>
    %516 = vector.extract_strided_slice %2 {offsets = [44, 0], sizes = [1, 64], strides = [1, 1]} : vector<45x64xf32> to vector<1x64xf32>
    %517 = vector.extract_strided_slice %515 {offsets = [7, 0], sizes = [1, 64], strides = [1, 1]} : vector<8x64xf32> to vector<1x64xf32>
    %518 = arith.mulf %517, %517 : vector<1x64xf32>
    %cst_147 = arith.constant dense<0.000000e+00> : vector<1xf32>
    %519 = vector.multi_reduction <add>, %518, %cst_147 [1] : vector<1x64xf32> to vector<1xf32>
    %520 = vector.shape_cast %519 : vector<1xf32> to vector<1x1xf32>
    %cst_148 = arith.constant 6.400000e+01 : f32
    %521 = vector.broadcast %cst_148 : f32 to vector<1x1xf32>
    %522 = arith.divf %520, %521 : vector<1x1xf32>
    %cst_149 = arith.constant 9.99999997E-7 : f32
    %523 = vector.broadcast %cst_149 : f32 to vector<1x1xf32>
    %524 = arith.addf %522, %523 : vector<1x1xf32>
    %525 = math.rsqrt %524 : vector<1x1xf32>
    %526 = vector.broadcast %525 : vector<1x1xf32> to vector<1x64xf32>
    %527 = arith.mulf %517, %526 : vector<1x64xf32>
    %528 = arith.mulf %527, %516 : vector<1x64xf32>
    %c0_150 = arith.constant 0 : index
    %c2560 = arith.constant 2560 : index
    %529 = vector.load %arg2[%c0_150, %c2560] : memref<64x2816xf32, #tpu.memory_space<vmem>>, vector<64x256xf32>
    %cst_151 = arith.constant dense<0.000000e+00> : vector<1x256xf32>
    %530 = tpu.matmul %528, %529, %cst_151 {dimension_numbers = #tpu.dot_dimension_numbers<[1], [0], [0], [1], [0, 0, 1, 1], [], []>} : vector<1x64xf32>, vector<64x256xf32>, vector<1x256xf32> -> vector<1x256xf32>
    %c0_152 = arith.constant 0 : index
    %c0_153 = arith.constant 0 : index
    %c0_154 = arith.constant 0 : index
    %531 = vector.load %arg7[%c0_152, %c0_153, %c0_154] : memref<1x1x256xf32, #tpu.memory_space<vmem>>, vector<1x1x256xf32>
    %532 = vector.shape_cast %531 : vector<1x1x256xf32> to vector<1x256xf32>
    %533 = vector.shape_cast %530 : vector<1x256xf32> to vector<1x1x256xf32>
    tpu.vector_store %arg7[%c0_152, %c0_153, %c0_154], %533 {strides = array<i32>} : memref<1x1x256xf32, #tpu.memory_space<vmem>>, vector<1x1x256xf32>,
    return
  }
  func.func @transform_0(%arg0: i32) -> (i32, i32, i32) {
    %c0_i32 = arith.constant 0 : i32
    %c0_i32_0 = arith.constant 0 : i32
    %c0_i32_1 = arith.constant 0 : i32
    return %arg0, %c0_i32, %c0_i32_0 : i32, i32, i32
  }
  func.func @transform_1(%arg0: i32) -> (i32, i32) {
    %c0_i32 = arith.constant 0 : i32
    %c0_i32_0 = arith.constant 0 : i32
    %c0_i32_1 = arith.constant 0 : i32
    return %c0_i32, %c0_i32_0 : i32, i32
  }
  func.func @transform_2(%arg0: i32) -> (i32, i32) {
    %c0_i32 = arith.constant 0 : i32
    %c0_i32_0 = arith.constant 0 : i32
    %c0_i32_1 = arith.constant 0 : i32
    return %c0_i32, %c0_i32_0 : i32, i32
  }
  func.func @transform_3(%arg0: i32) -> (i32, i32) {
    %c0_i32 = arith.constant 0 : i32
    %c0_i32_0 = arith.constant 0 : i32
    %c0_i32_1 = arith.constant 0 : i32
    return %c0_i32, %c0_i32_0 : i32, i32
  }
  func.func @transform_4(%arg0: i32) -> (i32, i32) {
    %c0_i32 = arith.constant 0 : i32
    %c0_i32_0 = arith.constant 0 : i32
    %c0_i32_1 = arith.constant 0 : i32
    return %c0_i32, %c0_i32_0 : i32, i32
  }
  func.func @transform_5(%arg0: i32) -> (i32, i32) {
    %c0_i32 = arith.constant 0 : i32
    %c0_i32_0 = arith.constant 0 : i32
    %c0_i32_1 = arith.constant 0 : i32
    return %c0_i32, %c0_i32_0 : i32, i32
  }
  func.func @transform_6(%arg0: i32) -> (i32, i32, i32) {
    %c0_i32 = arith.constant 0 : i32
    %c0_i32_0 = arith.constant 0 : i32
    %c0_i32_1 = arith.constant 0 : i32
    return %arg0, %c0_i32, %c0_i32_0 : i32, i32, i32
  }
}

</mosaic_0001>

<bundles_post_ra>
// kernel: lfm2_pallas_forward.1
= control target key start
LH: loop header
LB: loop body
LE: loop exit
PB: predicated region body
PF: predicated region fallthrough
CT: control target
= control target key end

     0   :  { %11 = vsyncpa [#allocation3], 0  ;;  %s3377_s0 = inlined_call_operand.vmem [shape: f32[2,8,64], index: 0, kind: input, shape index: {}]   ;;  %s3378_s1 = inlined_call_operand.hbm [shape: f32[64,2816], index: 1, kind: input, shape index: {}]   ;;  %s3379_s2 = inlined_call_operand.vmem [shape: f32[512,64], index: 2, kind: input, shape index: {}]   ;;  %s3380_s3 = inlined_call_operand.vmem [shape: f32[45,64], index: 3, kind: input, shape index: {}]   ;;  %s3381_s4 = inlined_call_operand.vmem [shape: f32[8,128], index: 4, kind: input, shape index: {}]   ;;  %s3382_s5 = inlined_call_operand.vmem [shape: f32[64,128], index: 5, kind: input, shape index: {}]   ;;  %s3383_s6 = inlined_call_operand.hbm [shape: f32[2,1,256], index: 6, kind: output, shape index: {}]  }
   0x1   :  { %12 = vsyncpa [#allocation4], 0 }
   0x2   :  { %14 = vsyncpa [#allocation4 + $0x1], 0  ;;  %s2679_s21 = smov 0   ;;  %s2681_s22 = smov 0  }
   0x3   :  { %s2683_s23 = smov 0   ;;  %s2685_s24 = smov 0  }
   0x4 LB: > { %s2700_s25 = sadd.s32 4294967295, %s2629_s24   ;;  %s2300_s26 = sadd.s32 4294967294, %s2629_s24   ;;  %s2629_s24 = sphi %s2685_s24, %s3395_s24   ;;  %s2625_s23 = sphi %s2683_s23, %s3394_s23   ;;  %s2621_s22 = sphi %s2681_s22, %s3393_s22   ;;  %s2617_s21 = sphi %s2679_s21, %s3392_s21  }
   0x5   : > { %s2704_s27 = sadd.s32 1, %s2629_s24   ;;  %s158_s28 = sadd.s32 1, %s2625_s23 }
   0x6   : > { %s155_s29 = ssub.s32 %s2629_s24, %s2704_s27  ;;  %p168_p0 = scmp.ne.s32.totalorder %s2625_s23, %s2621_s22 }
   0x7   : > { %p156_p1 = scmp.eq.s32.totalorder %s155_s29, 0  ;;  %p169_p2 = scmp.eq.s32.totalorder %s2700_s25, 1 }
   0x8   : > { %p174_p3 = scmp.ne.s32.totalorder %s2621_s22, %s2617_s21  ;;  %p175_p4 = scmp.eq.s32.totalorder %s2300_s26, 1 }
   0x9   : > { %s2715_s30 = scalar_select %p156_p1, %s2625_s23, %s158_s28  }
   0xa   : > { %p2717_p5 = por %p169_p2, %p168_p0  ;;  %p2721_p6 = por %p175_p4, %p174_p3 }
   0xb   : > { %p2301_p7 = scmp.ge.s32.totalorder %s2629_s24, 1  ;;  %p182_p8 = scmp.lt.s32.totalorder %s2629_s24, 3 }
   0xc   : > { %p2378_p9 = scmp.eq.s32.totalorder %s2700_s25, 0  ;;  %s193_s11 = sshll.u32 %s3378_s1, 4  ;;  %s194_s11 = int_to_ptr.hbm [resolvable:$true] %s193_s11 }
   0xd   : > { %p183_p10 = pnand %p2301_p7, %p182_p8  ;;  %s2631_s12 = smov [#allocation2]  }
   0xe   : > { %s195_s13 = sshll.u32 %s2631_s12, 4  ;;  %s2632_s14 = smov 2816   ;;  %s196_s13 = int_to_ptr.vmem [resolvable:$true] %s195_s13 }
   0xf   : > { %p2370_p11 = pneg %p183_p10  ;;  %s2633_s15 = smov 176  }
  0x10   : > { %230 = sbr.rel (%p183_p10) target bundleno = 7481 (0x1d39), region = 44 }
  0x11   : > { %p2371_p12 = pnand %p2378_p9, %p2370_p11 }
  0x13   : > { %2373 = dma.hbm_to_vmem [thread:$0]  (!%p2371_p12), %s194_s11, 22528, %s196_s13, [#allocation3], %s2632_s14, %s2632_s14, %s2633_s15  }
  0x15   : > { %2608 = dma.done.wait (%p2378_p9), [#allocation3], 22528  }
  0x16   : > { %2610 = vsyncadd (%p2378_p9), [#allocation3], 4294944768  ;;  %p260_p13 = scmp.lt.s32.totalorder %s2700_s25, 1  ;;  %vm287_vm0 = vcmask 523264   ;;  %v2634_v3 = vmov 64.0   ;;  %v327_v5 = vld [vmem:[#allocation2 + $0x4e0] sm:$0xff]  ;;  %v280_v41 = vlaneseq }
  0x17   : > { %2446 = vrcp.f32 %v2634_v3  ;;  %v328_v6 = vld [vmem:[#allocation2 + $0x4e8] sm:$0xff]  ;;  %340 = vmatpush.msra.mxu0 %v327_v5  ;;  %v325_v7 = vld [vmem:[#allocation2 + $0x430] sm:$0xff]  ;;  %v326_v8 = vld [vmem:[#allocation2 + $0x438] sm:$0xff]  ;;  %s2635_s29 = smov 64   ;;  %vm665_vm14 = vcmask 261120   ;;  %s2637_s19 = smov 112  }
  0x18   : > { %s261_s16 = scalar_select %p260_p13, %s2700_s25, 1  ;;  %360 = vmatpush.msra.mxu1 %v328_v6  ;;  %v323_v10 = vld [vmem:[#allocation2 + $0x380] sm:$0xff]  ;;  %v324_v11 = vld [vmem:[#allocation2 + $0x388] sm:$0xff]  ;;  %v321_v12 = vld [vmem:[#allocation2 + $0x2d0] sm:$0xff]  ;;  %v2764_v46 = vshrl.u32 %v280_v41, 7 }
  0x19   : > { %341 = vmatpush.msra.mxu0 %v325_v7  ;;  %v322_v13 = vld [vmem:[#allocation2 + $0x2d8] sm:$0xff]  ;;  %v319_v15 = vld [vmem:[#allocation2 + $0x220] sm:$0xff]  ;;  %v320_v16 = vld [vmem:[#allocation2 + $0x228] sm:$0xff]  ;;  %s2639_s26 = smov 96   ;;  %s3386_s28 = smov 32  }
  0x1a   : > { %s2307_s17 = sshll.u32 %s261_s16, 3  ;;  %361 = vmatpush.msra.mxu1 %v326_v8  ;;  %v317_v17 = vld [vmem:[#allocation2 + $0x170] sm:$0xff]  ;;  %v318_v18 = vld [vmem:[#allocation2 + $0x178] sm:$0xff]  ;;  %v315_v19 = vld [vmem:[#allocation2 + $0xc0] sm:$0xff]  ;;  %vm383_vm5 = vcmp.ge.s32.totalorder %v2764_v46, 3  ;;  %vm390_vm6 = vcmp.ge.s32.totalorder %v2764_v46, 2 }
  0x1b   : > { %s263_s20 = scalar_lea.vmem %s3377_s0, %s2307_s17  ;;  %342 = vmatpush.msra.mxu0 %v323_v10  ;;  %v316_v20 = vld [vmem:[#allocation2 + $0xc8] sm:$0xff]  ;;  %v313_v22 = vld [vmem:[#allocation2 + $0x10] sm:$0xff]  ;;  %v314_v23 = vld [vmem:[#allocation2 + $0x18] sm:$0xff]  ;;  %vm396_vm7 = vcmp.ge.s32.totalorder %v2764_v46, 1  ;;  %s2641_s9 = smov 80  }
  0x1c   : > { %v2742_v0 = vld [vmem:[%s263_s20] sm:$0xff]  ;;  %362 = vmatpush.msra.mxu1 %v324_v11  ;;  %v2772_v52 = vld [vmem:[%s3380_s3 + $0x8] sm:$0xff]  ;;  %v417_v7 = vld [vmem:[#allocation2 + $0x4f0] sm:$0xff]  ;;  %s2638_s20 = smov 48   ;;  %s3384_s10 = smov 16  }
  0x1d   : > { %v286_v1 = vmul.f32 %v2742_v0, %v2742_v0  ;;  %v2447_v4 = vpop.eup %2446  ;;  %343 = vmatpush.msra.mxu0 %v321_v12  ;;  %v2750_v25 = vld [vmem:[%s3380_s3] sm:$0xff]  ;;  %v393_v56 = vperm.slane %v2772_v52, 0  ;;  %v399_v60 = vperm.slane %v2772_v52, 1  ;;  %432 = vmatpush.msra.mxu2 %v417_v7  ;;  %v413_v11 = vld [vmem:[#allocation2 + $0x230] sm:$0xff]  ;;  %v483_v7 = vld [vmem:[%s3379_s2 + $0x18] sm:$0xff]  ;;  %s257_s14 = sand.u32 1, %s2621_s22  }
  0x1e   : > { %v292_v9 = vmul.f32 64.0, %v2447_v4  ;;  %363 = vmatpush.msra.mxu1 %v322_v13  ;;  %vm296_vm1 = vweird.f32 %v2447_v4  ;;  %v374_v26 = vperm.slane %v2750_v25, 3  ;;  %v311_v37 = vperm.slane %v2750_v25, 0  ;;  %v416_v8 = vld [vmem:[#allocation2 + $0x440] sm:$0xff]  ;;  %v411_v13 = vld [vmem:[#allocation2 + $0xd0] sm:$0xff]  ;;  %s2306_s15 = sshll.u32 %s257_s14, 1 }
  0x1f   : > { %v288_v2 = vsel %vm287_vm0, %v286_v1, 0.0  ;;  %344 = vmatpush.msra.mxu0 %v319_v15  ;;  %v372_v42 = vperm.slane %v2750_v25, 2  ;;  %v380_v43 = vperm.slane %v2750_v25, 4  ;;  %v386_v50 = vperm.slane %v2750_v25, 7  ;;  %433 = vmatpush.msra.mxu2 %v416_v8  ;;  %v414_v10 = vld [vmem:[#allocation2 + $0x2e0] sm:$0xff]  ;;  %v482_v8 = vld [vmem:[%s3379_s2 + $0x10] sm:$0xff] }
  0x20   : > { %289 = vadd.xlane.f32.xlu0 %v288_v2  ;;  %v293_v14 = vsub.f32 1.0, %v292_v9  ;;  %364 = vmatpush.msra.mxu1 %v320_v16  ;;  %v388_v55 = vperm.slane %v2750_v25, 5  ;;  %v402_v1 = vperm.slane %v2772_v52, 2  ;;  %v415_v9 = vld [vmem:[#allocation2 + $0x390] sm:$0xff]  ;;  %v412_v12 = vld [vmem:[#allocation2 + $0x180] sm:$0xff]  ;;  %s2361_s16 = sshll.u32 %s2700_s25, 1 }
  0x21   : > { %345 = vmatpush.msra.mxu0 %v317_v17  ;;  %434 = vmatpush.msra.mxu2 %v415_v9  ;;  %v481_v9 = vld [vmem:[%s3379_s2 + $0x8] sm:$0xff]  ;;  %s2224_s17 = scalar_lea.hbm %s3383_s6, %s2361_s16  ;;  %s259_s18 = scalar_lea.vmem [#allocation5], %s2306_s15 }
  0x22   : > { %v294_v21 = vmul.f32 %v2447_v4, %v293_v14  ;;  %365 = vmatpush.msra.mxu1 %v318_v18  ;;  %v410_v14 = vld [vmem:[#allocation2 + $0x20] sm:$0xff]  ;;  %s2226_s11 = sshll.u32 %s259_s18, 4  ;;  %s2228_s12 = sshll.u32 %s2224_s17, 4  ;;  %s2227_s11 = int_to_ptr.vmem [resolvable:$true] %s2226_s11  ;;  %s2229_s12 = int_to_ptr.hbm [resolvable:$true] %s2228_s12 }
  0x23   : > { %346 = vmatpush.msra.mxu0 %v315_v19  ;;  %435 = vmatpush.msra.mxu2 %v414_v10  ;;  %v480_v10 = vld [vmem:[%s3379_s2] sm:$0xff]  ;;  %s2577_s25 = sshra.s32 %s2229_s12, 4  ;;  %s2578_s25 = int_to_ptr.hbm [resolvable:$true] %s2577_s25 }
  0x24   : > { %366 = vmatpush.msra.mxu1 %v316_v20  ;;  %v295_v24 = vadd.f32 %v2447_v4, %v294_v21  ;;  %v418_v20 = vperm.slane %v2750_v25, 6  ;;  %p2584_p3 = scmp.lt.s32.totalorder %s2578_s25, %s3383_s6 }
  0x25   : > { %347 = vmatpush.msra.mxu0 %v313_v22  ;;  %436 = vmatpush.msra.mxu2 %v413_v11 }
  0x26   : > { %367 = vmatpush.msra.mxu1 %v314_v23  ;;  %v2754_v27 = vsel %vm296_vm1, %v2447_v4, %v295_v24 }
  0x27   : > { %437 = vmatpush.msra.mxu2 %v412_v12 }
  0x29   : > { %438 = vmatpush.msra.mxu2 %v411_v13 }
  0x2b   : > { %439 = vmatpush.msra.mxu2 %v410_v14 }
  0x34   : > { %376 = vrot.lane.b32.xlu0 %v374_v26, %s2635_s29 }
  0x93   : > { %v290_v28 = vpop.xlane.xlu0 %289 }
  0x94   : > { %v298_v29 = vmul.f32 %v2754_v27, %v290_v28  ;;  %v478_v28 = vld [vmem:[#allocation2 + $0x4d0] sm:$0xff] }
  0x95   : > { %507 = vmatpush.msra.mxu3 %v478_v28  ;;  %v592_v28 = vld [vmem:[#allocation2 + $0x458] sm:$0xff] }
  0x96   : > { %v299_v30 = vadd.f32 1e-06, %v298_v29  ;;  %v479_v29 = vld [vmem:[#allocation2 + $0x4d8] sm:$0xff] }
  0x97   : > { %527 = vmatpush.msrb.mxu0 %v479_v29  ;;  %v591_v29 = vld [vmem:[#allocation2 + $0x3a8] sm:$0xff] }
  0x98   : > { %2448 = vrsqrt.f32 %v299_v30  ;;  %vm306_vm3 = vweird.f32 %v299_v30 }
  0x9e   : > { %v2449_v31 = vpop.eup %2448 }
  0x9f   : > { %v301_v32 = vmul.f32 %v2449_v31, %v299_v30  ;;  %vm307_vm2 = vweird.f32 %v2449_v31  ;;  %v476_v30 = vld [vmem:[#allocation2 + $0x420] sm:$0xff] }
  0xa0   : > { %vm308_vm4 = vmor %vm306_vm3, %vm307_vm2  ;;  %508 = vmatpush.msra.mxu3 %v476_v30  ;;  %v590_v30 = vld [vmem:[#allocation2 + $0x2f8] sm:$0xff] }
  0xa1   : > { %v302_v33 = vmul.f32 %v2449_v31, %v301_v32  ;;  %v474_v32 = vld [vmem:[#allocation2 + $0x370] sm:$0xff] }
  0xa2   : > { %509 = vmatpush.msra.mxu3 %v474_v32  ;;  %v588_v32 = vld [vmem:[#allocation2 + $0x198] sm:$0xff] }
  0xa3   : > { %v303_v34 = vmul.f32 0.5, %v302_v33  ;;  %v475_v33 = vld [vmem:[#allocation2 + $0x378] sm:$0xff] }
  0xa5   : > { %v304_v35 = vsub.f32 1.5, %v303_v34  ;;  %v473_v34 = vld [vmem:[#allocation2 + $0x2c8] sm:$0xff] }
  0xa6   : > { %v377_v15 = vpop.permute.xlu0 %376 }
  0xa7   : > { %v305_v36 = vmul.f32 %v2449_v31, %v304_v35  ;;  %v470_v35 = vld [vmem:[#allocation2 + $0x210] sm:$0xff] }
  0xa9   : > { %v309_v38 = vsel %vm308_vm4, %v2449_v31, %v305_v36  ;;  %v477_v31 = vld [vmem:[#allocation2 + $0x428] sm:$0xff]  ;;  %v471_v36 = vld [vmem:[#allocation2 + $0x218] sm:$0xff] }
  0xaa   : > { %v310_v39 = vmul.f32 %v309_v38, %v2742_v0  ;;  %528 = vmatpush.msrb.mxu0 %v477_v31  ;;  %v469_v38 = vld [vmem:[#allocation2 + $0x168] sm:$0xff] }
  0xab   : > { %v589_v31 = vld [vmem:[#allocation2 + $0x248] sm:$0xff] }
  0xac   : > { %v312_v40 = vmul.f32 %v311_v37, %v310_v39  ;;  %529 = vmatpush.msrb.mxu0 %v475_v33  ;;  %v468_v37 = vld [vmem:[#allocation2 + $0x160] sm:$0xff]  ;;  %v466_v39 = vld [vmem:[#allocation2 + $0xb0] sm:$0xff]  ;;  %v586_v33 = vld [vmem:[#allocation2 + $0x38] sm:$0xff] }
  0xae   : > { %2308 = vmatmul.msk.f32.vlgmr.msra.gmra.mxu0 %vm287_vm0, %v312_v40  ;;  %2309 = vmatmul.msk.f32.vlgmr.msra.gmra.mxu1 %vm287_vm0, %v312_v40  ;;  %v467_v40 = vld [vmem:[#allocation2 + $0xb8] sm:$0xff] }
  0xaf   : > { %530 = vmatpush.msrb.mxu0 %v473_v34  ;;  %v277_v34 = vld [vmem:[%s3382_s5 + $0x30] sm:$0xff] }
  0xb1   : > { %531 = vmatpush.msrb.mxu0 %v471_v36  ;;  %v2866_v36 = vld [vmem:[%s3382_s5 + $0x28] sm:$0xff] }
  0xb3   : > { %532 = vmatpush.msrb.mxu0 %v469_v38  ;;  %v2874_v38 = vld [vmem:[%s3382_s5 + $0x20] sm:$0xff] }
  0xb5   : > { %533 = vmatpush.msrb.mxu0 %v467_v40 }
 0x12b   : > { %v349_v44 = vpop.f32.mrf.mxu0  ;;  %v369_v45 = vpop.f32.mrf.mxu1 }
 0x12c   : > { %v373_v47 = vadd.f32 %v372_v42, %v349_v44  ;;  %v381_v48 = vadd.f32 %v380_v43, %v369_v45  ;;  %v379_v16 = vadd.f32 %v377_v15, %v349_v44  ;;  %v464_v42 = vld [vmem:[#allocation2] sm:$0xff]  ;;  %v465_v43 = vld [vmem:[#allocation2 + $0x8] sm:$0xff] }
 0x12d   : > { %534 = vmatpush.msrb.mxu0 %v465_v43 }
 0x12e   : > { %v382_v49 = vmul.f32 %v381_v48, %v373_v47 }
 0x130   : > { %v384_v51 = vrot.slane %v382_v49, 5  ;;  %v391_v53 = vrot.slane %v382_v49, 6  ;;  %v397_v54 = vrot.slane %v382_v49, 7  ;;  %v403_v5 = vmul.f32 %v402_v1, %v382_v49  ;;  %v489_v1 = vld [vmem:[%s3379_s2 + $0x48] sm:$0xff] }
 0x132   : > { %v385_v57 = vsel %vm383_vm5, %v384_v51, 0.0  ;;  %v392_v58 = vsel %vm390_vm6, %v391_v53, 0.0  ;;  %v398_v61 = vsel %vm396_vm7, %v397_v54, 0.0 }
 0x133   : > { %v387_v59 = vmul.f32 %v386_v50, %v385_v57  ;;  %v394_v63 = vmul.f32 %v393_v56, %v392_v58  ;;  %v400_v3 = vmul.f32 %v399_v60, %v398_v61  ;;  %v494_v60 = vld [vmem:[%s3379_s2 + $0x70] sm:$0xff]  ;;  %v492_v61 = vld [vmem:[%s3379_s2 + $0x60] sm:$0xff] }
 0x135   : > { %v389_v62 = vadd.f32 %v388_v55, %v387_v59  ;;  %v462_v55 = vperm.slane %v2750_v25, 1  ;;  %v495_v59 = vld [vmem:[%s3379_s2 + $0x78] sm:$0xff]  ;;  %v493_v25 = vld [vmem:[%s3379_s2 + $0x68] sm:$0xff] }
 0x136   : > { %546 = vmatpush.msrb.mxu1 %v495_v59 }
 0x137   : > { %v395_v2 = vadd.f32 %v394_v63, %v389_v62  ;;  %v491_v62 = vld [vmem:[%s3379_s2 + $0x58] sm:$0xff]  ;;  %v490_v63 = vld [vmem:[%s3379_s2 + $0x50] sm:$0xff] }
 0x138   : > { %547 = vmatpush.msrb.mxu1 %v494_v60  ;;  %v705_v60 = vperm.slane %v2772_v52, 6 }
 0x139   : > { %v401_v4 = vadd.f32 %v400_v3, %v395_v2  ;;  %v488_v2 = vld [vmem:[%s3379_s2 + $0x40] sm:$0xff]  ;;  %v487_v3 = vld [vmem:[%s3379_s2 + $0x38] sm:$0xff] }
 0x13a   : > { %548 = vmatpush.msrb.mxu1 %v493_v25 }
 0x13b   : > { %v404_v6 = vadd.f32 %v403_v5, %v401_v4  ;;  %v486_v4 = vld [vmem:[%s3379_s2 + $0x30] sm:$0xff]  ;;  %v485_v5 = vld [vmem:[%s3379_s2 + $0x28] sm:$0xff] }
 0x13c   : > { %549 = vmatpush.msrb.mxu1 %v492_v61 }
 0x13d   : > { %406 = vrot.lane.b32.xlu1 %v404_v6, %s2635_s29  ;;  %v484_v6 = vld [vmem:[%s3379_s2 + $0x20] sm:$0xff] }
 0x13e   : > { %550 = vmatpush.msrb.mxu1 %v491_v62  ;;  %v2636_v62 = vmov 16.0  }
 0x140   : > { %551 = vmatpush.msrb.mxu1 %v490_v63 }
 0x142   : > { %552 = vmatpush.msrb.mxu1 %v489_v1 }
 0x144   : > { %553 = vmatpush.msrb.mxu1 %v488_v2 }
 0x146   : > { %554 = vmatpush.msrb.mxu1 %v487_v3 }
 0x148   : > { %555 = vmatpush.msrb.mxu1 %v486_v4 }
 0x14a   : > { %556 = vmatpush.msrb.mxu1 %v485_v5 }
 0x14c   : > { %557 = vmatpush.msrb.mxu1 %v484_v6 }
 0x14e   : > { %558 = vmatpush.msrb.mxu1 %v483_v7 }
 0x150   : > { %559 = vmatpush.msrb.mxu1 %v482_v8 }
 0x152   : > { %560 = vmatpush.msrb.mxu1 %v481_v9 }
 0x154   : > { %561 = vmatpush.msrb.mxu1 %v480_v10 }
 0x1af   : > { %v407_v17 = vpop.permute.xlu1 %406 }
 0x1b0   : > { %v409_v18 = vmul.f32 %v407_v17, %v379_v16 }
 0x1b2   : > { %420 = vrot.lane.b32.xlu1 %v409_v18, %s2635_s29 }
 0x224   : > { %v421_v19 = vpop.permute.xlu1 %420 }
 0x225   : > { %2310 = vmatmul.msk.f32.vlgmr.msra.gmra.mxu2 %vm287_vm0, %v421_v19 }
 0x2a8   : > { %v441_v21 = vpop.f32.mrf.mxu2 }
 0x2a9   : > { %v442_v22 = vadd.f32 %v441_v21, %v418_v20 }
 0x2ab   : > { %v2790_v23 = vadd.f32 %v442_v22, %v2742_v0  ;;  %v472_v0 = vld [vmem:[#allocation2 + $0x2c0] sm:$0xff] }
 0x2ac   : > { %510 = vmatpush.msra.mxu3 %v472_v0  ;;  %v278_v0 = vld [vmem:[%s3382_s5 + $0x38] sm:$0xff] }
 0x2ad   : > { %v445_v24 = vmul.f32 %v2790_v23, %v2790_v23  ;;  %v2436_v61 = vpack.i.bf16 %v277_v34, %v278_v0 }
 0x2ae   : > { %511 = vmatpush.msra.mxu3 %v470_v35  ;;  %v274_v35 = vld [vmem:[%s3382_s5 + $0x18] sm:$0xff] }
 0x2af   : > { %v446_v26 = vsel %vm287_vm0, %v445_v24, 0.0  ;;  %680 = vmatpush.msra.mxu0 %v274_v35 }
 0x2b0   : > { %447 = vadd.xlane.f32.xlu2 %v446_v26  ;;  %512 = vmatpush.msra.mxu3 %v468_v37  ;;  %v593_v26 = vld [vmem:[#allocation2 + $0x508] sm:$0xff]  ;;  %v273_v37 = vld [vmem:[%s3382_s5 + $0x10] sm:$0xff] }
 0x2b1   : > { %605 = vmatpush.msrb.mxu2 %v593_v26  ;;  %681 = vmatpush.msra.mxu0 %v273_v37  ;;  %v2426_v63 = vpack.i.bf16 %v273_v37, %v274_v35 }
 0x2b2   : > { %513 = vmatpush.msra.mxu3 %v466_v39 }
 0x2b3   : > { %606 = vmatpush.msrb.mxu2 %v592_v28  ;;  %2427 = vrot.lane.b32.xlu0 %v2426_v63, %s2635_s29 }
 0x2b4   : > { %514 = vmatpush.msra.mxu3 %v464_v42 }
 0x2b5   : > { %607 = vmatpush.msrb.mxu2 %v591_v29 }
 0x2b6   : > { %629 = vmatpush.msrb.mxu3 %v278_v0 }
 0x2b7   : > { %608 = vmatpush.msrb.mxu2 %v590_v30 }
 0x2b8   : > { %630 = vmatpush.msrb.mxu3 %v277_v34 }
 0x2b9   : > { %609 = vmatpush.msrb.mxu2 %v589_v31 }
 0x2ba   : > { %631 = vmatpush.msrb.mxu3 %v2866_v36 }
 0x2bb   : > { %610 = vmatpush.msrb.mxu2 %v588_v32 }
 0x2bc   : > { %632 = vmatpush.msrb.mxu3 %v2874_v38 }
 0x2be   : > { %633 = vmatpush.msrb.mxu3 %v274_v35 }
 0x2c0   : > { %634 = vmatpush.msrb.mxu3 %v273_v37 }
 0x323   : > { %v448_v44 = vpop.xlane.xlu2 %447 }
 0x324   : > { %v449_v45 = vmul.f32 %v448_v44, %v2754_v27 }
 0x325   : > { %v2428_v30 = vpop.permute.xlu0 %2427 }
 0x326   : > { %v450_v47 = vadd.f32 1e-06, %v449_v45  ;;  %v2916_v31 = vunpack.i.l.bf16 %v2428_v30  ;;  %v2918_v32 = vunpack.i.h.bf16 %v2428_v30 }
 0x328   : > { %2450 = vrsqrt.f32 %v450_v47  ;;  %vm457_vm9 = vweird.f32 %v450_v47 }
 0x32e   : > { %v2451_v48 = vpop.eup %2450 }
 0x32f   : > { %v452_v49 = vmul.f32 %v2451_v48, %v450_v47  ;;  %vm458_vm8 = vweird.f32 %v2451_v48 }
 0x330   : > { %vm459_vm10 = vmor %vm457_vm9, %vm458_vm8 }
 0x331   : > { %v453_v50 = vmul.f32 %v2451_v48, %v452_v49 }
 0x333   : > { %v454_v51 = vmul.f32 0.5, %v453_v50  ;;  %v584_v50 = vperm.slane %v2772_v52, 3 }
 0x335   : > { %v455_v53 = vsub.f32 1.5, %v454_v51 }
 0x337   : > { %v456_v54 = vmul.f32 %v2451_v48, %v455_v53 }
 0x339   : > { %v460_v56 = vsel %vm459_vm10, %v2451_v48, %v456_v54  ;;  %vm808_vm10 = vcmask 130048  }
 0x33a   : > { %v461_v57 = vmul.f32 %v460_v56, %v2790_v23  ;;  %v271_v56 = vld [vmem:[%s3382_s5] sm:$0xff] }
 0x33c   : > { %v463_v58 = vmul.f32 %v462_v55, %v461_v57  ;;  %v272_v55 = vld [vmem:[%s3382_s5 + $0x8] sm:$0xff] }
 0x33d   : > { %635 = vmatpush.msrb.mxu3 %v272_v55  ;;  %682 = vmatpush.msra.mxu0 %v272_v55  ;;  %v2431_v25 = vpack.i.bf16 %v271_v56, %v272_v55 }
 0x33e   : > { %2311 = vmatmul.msk.f32.vlgmr.msra.gmra.mxu3 %vm287_vm0, %v463_v58  ;;  %2312 = vmatmul.msk.f32.vlgmr.msrb.gmra.mxu0 %vm287_vm0, %v463_v58 }
 0x33f   : > { %636 = vmatpush.msrb.mxu3 %v271_v56  ;;  %683 = vmatpush.msra.mxu0 %v271_v56 }
 0x341   : > { %791 = vmatpush.msra.mxu3 %v2916_v31 }
 0x343   : > { %792 = vmatpush.msra.mxu3 %v2918_v32 }
 0x3bb   : > { %v536_v18 = vpop.f32.mrf.mxu0 }
 0x3c1   : > { %v516_v11 = vpop.f32.mrf.mxu3 }
 0x3c2   : > { %v539_v12 = vsub.f32 0.0, %v516_v11 }
 0x3c4   : > { %v540_v13 = vmul.f32 1.442695, %v539_v12 }
 0x3c6   : > { %2452 = vpow2.f32 %v540_v13 }
 0x3cc   : > { %v2453_v14 = vpop.eup %2452 }
 0x3cd   : > { %v542_v15 = vadd.f32 1.0, %v2453_v14 }
 0x3cf   : > { %2454 = vrcp.f32 %v542_v15 }
 0x3d5   : > { %v2455_v16 = vpop.eup %2454 }
 0x3d6   : > { %v544_v17 = vmul.f32 %v2455_v16, %v516_v11 }
 0x3d8   : > { %v545_v19 = vmul.f32 %v544_v17, %v536_v18  ;;  %v2441_v17 = vpack.i.bf16 %v2874_v38, %v2866_v36 }
 0x3da   : > { %562 = vmatmul.f32.vlgmr.msrb.gmra.mxu1 %v545_v19 }
 0x457   : > { %v563_v20 = vpop.f32.mrf.mxu1 }
 0x458   : > { %v2849_v21 = vadd.f32 %v563_v20, %v2790_v23  ;;  %v587_v23 = vld [vmem:[#allocation2 + $0xe8] sm:$0xff] }
 0x459   : > { %611 = vmatpush.msrb.mxu2 %v587_v23 }
 0x45a   : > { %v567_v22 = vmul.f32 %v2849_v21, %v2849_v21 }
 0x45b   : > { %612 = vmatpush.msrb.mxu2 %v586_v33 }
 0x45c   : > { %v568_v24 = vsel %vm287_vm0, %v567_v22, 0.0 }
 0x45d   : > { %569 = vadd.xlane.f32.xlu2 %v568_v24 }
 0x4d0   : > { %v570_v39 = vpop.xlane.xlu2 %569 }
 0x4d1   : > { %v571_v40 = vmul.f32 %v570_v39, %v2754_v27 }
 0x4d3   : > { %v572_v42 = vadd.f32 1e-06, %v571_v40 }
 0x4d5   : > { %2456 = vrsqrt.f32 %v572_v42  ;;  %vm579_vm12 = vweird.f32 %v572_v42 }
 0x4d6   : > { %2458 = vrcp.f32 %v2636_v62 }
 0x4db   : > { %v2457_v43 = vpop.eup %2456 }
 0x4dc   : > { %v574_v44 = vmul.f32 %v2457_v43, %v572_v42  ;;  %vm580_vm11 = vweird.f32 %v2457_v43  ;;  %v2459_v1 = vpop.eup %2458 }
 0x4dd   : > { %vm581_vm13 = vmor %vm579_vm12, %vm580_vm11  ;;  %v642_v2 = vmul.f32 16.0, %v2459_v1  ;;  %vm646_vm15 = vweird.f32 %v2459_v1  ;;  %vm836_vm12 = vcmask 64512  }
 0x4de   : > { %v575_v45 = vmul.f32 %v2457_v43, %v574_v44 }
 0x4df   : > { %v643_v3 = vsub.f32 1.0, %v642_v2 }
 0x4e0   : > { %v576_v47 = vmul.f32 0.5, %v575_v45 }
 0x4e1   : > { %v644_v4 = vmul.f32 %v2459_v1, %v643_v3 }
 0x4e2   : > { %v577_v48 = vsub.f32 1.5, %v576_v47  ;;  %v279_v47 = vld [vmem:[%s3381_s4] sm:$0xff] }
 0x4e3   : > { %v645_v5 = vadd.f32 %v2459_v1, %v644_v4 }
 0x4e4   : > { %v578_v49 = vmul.f32 %v2457_v43, %v577_v48 }
 0x4e5   : > { %v2900_v6 = vsel %vm646_vm15, %v2459_v1, %v645_v5 }
 0x4e6   : > { %v582_v51 = vsel %vm581_vm13, %v2457_v43, %v578_v49  ;;  %v661_v49 = vperm.slane %v2772_v52, 5  ;;  %vm1076_vm13 = vcmask 392192  }
 0x4e7   : > { %v583_v53 = vmul.f32 %v582_v51, %v2849_v21 }
 0x4e9   : > { %v585_v54 = vmul.f32 %v584_v50, %v583_v53 }
 0x4eb   : > { %2313 = vmatmul.msk.f32.vlgmr.msrb.gmra.mxu2 %vm287_vm0, %v585_v54 }
 0x56e   : > { %v2888_v57 = vpop.f32.mrf.mxu2 }
 0x56f   : > { %v617_v58 = vmul.f32 %v2888_v57, %v2888_v57 }
 0x571   : > { %663 = vrot.lane.b32.xlu1 %v617_v58, %s2635_s29  ;;  %2314 = vmatmul.msk.f32.vlgmr.msrb.gmra.mxu3 %vm287_vm0, %v617_v58 }
 0x579   : > { %707 = vrot.lane.b32.xlu1 %v705_v60, %s2635_s29 }
 0x581   : > { %2432 = vrot.lane.b32.xlu1 %v2431_v25, %s2635_s29 }
 0x589   : > { %2437 = vrot.lane.b32.xlu1 %v2436_v61, %s2635_s29 }
 0x5e3   : > { %v664_v59 = vpop.permute.xlu1 %663 }
 0x5e4   : > { %2315 = vmatmul.msk.f32.vlgmr.msra.gmra.mxu0 %vm665_vm14, %v664_v59 }
 0x5eb   : > { %v708_v18 = vpop.permute.xlu1 %707 }
 0x5f3   : > { %v2433_v19 = vpop.permute.xlu1 %2432 }
 0x5f4   : > { %v638_v22 = vpop.f32.mrf.mxu3  ;;  %v2921_v23 = vunpack.i.l.bf16 %v2433_v19  ;;  %v2924_v33 = vunpack.i.h.bf16 %v2433_v19 }
 0x5f5   : > { %v648_v28 = vmul.f32 %v2900_v6, %v638_v22 }
 0x5f6   : > { %793 = vmatpush.msra.mxu3 %v2921_v23 }
 0x5f7   : > { %v649_v29 = vadd.f32 1e-06, %v648_v28 }
 0x5f8   : > { %794 = vmatpush.msra.mxu3 %v2924_v33 }
 0x5f9   : > { %vm656_vm8 = vweird.f32 %v649_v29 }
 0x5fb   : > { %v2907_v20 = vpop.permute.xlu1 %2437 }
 0x5fc   : > { %v2440_v24 = vunpack.i.h.bf16 %v2907_v20  ;;  %v2439_v26 = vunpack.i.l.bf16 %v2907_v20 }
 0x5fe   : > { %755 = vmatpush.msra.mxu2 %v2439_v26 }
 0x600   : > { %756 = vmatpush.msra.mxu2 %v2440_v24 }
 0x661   : > { %v685_v7 = vpop.f32.mrf.mxu0 }
 0x662   : > { %v688_v8 = vmul.f32 %v685_v7, %v2900_v6  ;;  %v283_v7 = vand.u32 127, %v280_v41 }
 0x664   : > { %v689_v9 = vadd.f32 1e-06, %v688_v8  ;;  %vm284_vm11 = vcmp.gt.s32.totalorder %v283_v7, %v2764_v46  ;;  %v1348_v46 = vld [vmem:[#allocation2 + $0x280] sm:$0xff] }
 0x666   : > { %2460 = vrsqrt.f32 %v689_v9  ;;  %vm696_vm2 = vweird.f32 %v689_v9 }
 0x667   : > { %2462 = vrsqrt.f32 %v649_v29 }
 0x66c   : > { %v2461_v10 = vpop.eup %2460 }
 0x66d   : > { %v691_v11 = vmul.f32 %v2461_v10, %v689_v9  ;;  %vm697_vm1 = vweird.f32 %v2461_v10  ;;  %v2463_v0 = vpop.eup %2462  ;;  %v2642_v9 = vmov 0.0  }
 0x66e   : > { %vm698_vm3 = vmor %vm696_vm2, %vm697_vm1  ;;  %v651_v34 = vmul.f32 %v2463_v0, %v649_v29  ;;  %vm657_vm4 = vweird.f32 %v2463_v0 }
 0x66f   : > { %v692_v12 = vmul.f32 %v2461_v10, %v691_v11  ;;  %vm658_vm9 = vmor %vm656_vm8, %vm657_vm4 }
 0x670   : > { %v652_v35 = vmul.f32 %v2463_v0, %v651_v34 }
 0x671   : > { %v693_v13 = vmul.f32 0.5, %v692_v12 }
 0x672   : > { %v653_v37 = vmul.f32 0.5, %v652_v35 }
 0x673   : > { %v694_v14 = vsub.f32 1.5, %v693_v13 }
 0x674   : > { %v654_v40 = vsub.f32 1.5, %v653_v37 }
 0x675   : > { %v695_v15 = vmul.f32 %v2461_v10, %v694_v14 }
 0x676   : > { %v655_v43 = vmul.f32 %v2463_v0, %v654_v40 }
 0x677   : > { %v699_v16 = vsel %vm698_vm3, %v2461_v10, %v695_v15  ;;  %v2972_v10 = vsel %vm284_vm11, -1e+30, %v2642_v9 }
 0x678   : > { %701 = vrot.lane.b32.xlu2 %v699_v16, %s2635_s29  ;;  %v659_v48 = vsel %vm658_vm9, %v2463_v0, %v655_v43 }
 0x679   : > { %v660_v50 = vmul.f32 %v659_v48, %v2888_v57 }
 0x67b   : > { %v662_v51 = vmul.f32 %v661_v49, %v660_v50 }
 0x67d   : > { %v711_v56 = vmul.f32 %v662_v51, %v279_v47 }
 0x680   : > { %2442 = vrot.lane.b32.xlu2 %v2441_v17, %s2635_s29 }
 0x6d2   : > { %v702_v36 = vpop.permute.xlu2 %701 }
 0x6d3   : > { %v704_v38 = vmul.f32 %v702_v36, %v2888_v57 }
 0x6d5   : > { %v710_v39 = vmul.f32 %v708_v18, %v704_v38 }
 0x6d7   : > { %775 = vrot.lane.b32.xlu0 %v710_v39, %s2635_s29 }
 0x6da   : > { %v2930_v42 = vpop.permute.xlu2 %2442 }
 0x6db   : > { %v2445_v44 = vunpack.i.h.bf16 %v2930_v42  ;;  %v2444_v45 = vunpack.i.l.bf16 %v2930_v42  ;;  %v1265_v42 = vld [vmem:[#allocation2 + $0x530] sm:$0xff] }
 0x6dd   : > { %757 = vmatpush.msra.mxu2 %v2444_v45 }
 0x6df   : > { %768 = vrot.lane.b32.xlu0 %v279_v47, %s2635_s29  ;;  %758 = vmatpush.msra.mxu2 %v2445_v44 }
 0x6e1   : > { %759 = vmatpush.msra.mxu2 %v2916_v31 }
 0x6e3   : > { %760 = vmatpush.msra.mxu2 %v2918_v32 }
 0x6e5   : > { %761 = vmatpush.msra.mxu2 %v2921_v23 }
 0x6e7   : > { %762 = vmatpush.msra.mxu2 %v2924_v33 }
 0x6e8   : > { %2316 = vmatmul.msk.f32.vlgmr.msra.gmra.mxu2 %vm287_vm0, %v662_v51 }
 0x749   : > { %v776_v53 = vpop.permute.xlu0 %775 }
 0x74a   : > { %2317 = vmatmul.msk.f32.vlgmr.msra.gmra.mxu3 %vm665_vm14, %v776_v53 }
 0x751   : > { %v2950_v54 = vpop.permute.xlu0 %768 }
 0x752   : > { %v773_v61 = vmul.f32 %v2950_v54, %v710_v39 }
 0x76b   : > { %v764_v55 = vpop.f32.mrf.mxu2 }
 0x76c   : > { %v771_v58 = vmul.f32 %v2950_v54, %v764_v55 }
 0x76e   : > { %v772_v59 = vadd.f32 %v771_v58, %v711_v56 }
 0x770   : > { %875 = vrot.lane.b32.xlu0 %v772_v59, %s2637_s19 }
 0x7cd   : > { %v796_v60 = vpop.f32.mrf.mxu3 }
 0x7ce   : > { %v799_v25 = vmul.f32 %v796_v60, %v2950_v54 }
 0x7d0   : > { %801 = vrot.lane.b32.xlu1 %v799_v25, %s2635_s29 }
 0x7e2   : > { %v876_v2 = vpop.permute.xlu0 %875 }
 0x842   : > { %v802_v62 = vpop.permute.xlu1 %801 }
 0x843   : > { %v804_v63 = vadd.f32 %v802_v62, %v773_v61 }
 0x845   : > { %806 = vrot.lane.b32.xlu2 %v804_v63, %s2635_s29  ;;  %937 = vrot.lane.b32.xlu0 %v804_v63, %s2638_s20 }
 0x84d   : > { %935 = vrot.lane.b32.xlu0 %v772_v59, %s2639_s26 }
 0x855   : > { %849 = vrot.lane.b32.xlu0 %v2888_v57, %s3386_s28 }
 0x85d   : > { %1002 = vrot.lane.b32.xlu0 %v772_v59, %s2641_s9 }
 0x89f   : > { %v807_v1 = vpop.permute.xlu2 %806 }
 0x8a0   : > { %2318 = vmatpush.xpose.msk.msrb.mxu0 %vm808_vm10, %v807_v1 }
 0x8a3   : > { %2319 = vmatmul.msk.f32.vlgmr.msrb.gmra.mxu0 %vm808_vm10, %v772_v59 }
 0x8a4   : > { %2321 = vmatpush.xpose.msk.msra.mxu0 %vm808_vm10, %v807_v1 }
 0x8ab   : > { %2322 = vmatmul.msk.f32.vlgmr.msra.gmra.mxu0 %vm808_vm10, %v876_v2 }
 0x8b7   : > { %v938_v3 = vpop.permute.xlu0 %937 }
 0x8b8   : > { %2324 = vmatpush.xpose.msk.msrb.mxu2 %vm808_vm10, %v938_v3 }
 0x8bf   : > { %v936_v4 = vpop.permute.xlu0 %935 }
 0x8c0   : > { %2325 = vmatmul.msk.f32.vlgmr.msrb.gmra.mxu2 %vm808_vm10, %v936_v4 }
 0x8c7   : > { %v850_v5 = vpop.permute.xlu0 %849 }
 0x8c8   : > { %870 = vmatpush.msrb.mxu3 %v850_v5  ;;  %930 = vmatpush.msrb.mxu0 %v850_v5 }
 0x8ca   : > { %2327 = vmatpush.xpose.msk.msra.mxu0 %vm808_vm10, %v938_v3 }
 0x8cf   : > { %v1003_v18 = vpop.permute.xlu0 %1002 }
 0x920   : > { %v831_v8 = vpop.f32.mrf.mxu0 }
 0x921   : > { %v834_v11 = vmul.f32 0.25, %v831_v8 }
 0x923   : > { %v835_v12 = vadd.f32 %v834_v11, %v2972_v10 }
 0x925   : > { %v837_v13 = vsel %vm836_vm12, %v835_v12, -inf }
 0x926   : > { %838 = vmax.xlane.f32.xlu0 %v837_v13 }
 0x928   : > { %v896_v14 = vpop.f32.mrf.mxu0 }
 0x929   : > { %v899_v15 = vmul.f32 0.25, %v896_v14 }
 0x92b   : > { %v900_v16 = vadd.f32 %v899_v15, %v2972_v10 }
 0x92d   : > { %v901_v17 = vsel %vm836_vm12, %v900_v16, -inf }
 0x92e   : > { %902 = vmax.xlane.f32.xlu1 %v901_v17  ;;  %v1085_v17 = vld [vmem:[#allocation2 + $0x518] sm:$0xff] }
 0x92f   : > { %1097 = vmatpush.msra.mxu2 %v1085_v17 }
 0x943   : > { %v960_v30 = vpop.f32.mrf.mxu2 }
 0x944   : > { %v963_v35 = vmul.f32 0.25, %v960_v30  ;;  %v1079_v30 = vld [vmem:[#allocation2 + $0xf8] sm:$0xff] }
 0x946   : > { %v964_v38 = vadd.f32 %v963_v35, %v2972_v10 }
 0x948   : > { %v965_v39 = vsel %vm836_vm12, %v964_v38, -inf }
 0x999   : > { %v839_v29 = vpop.xlane.xlu0 %838 }
 0x99a   : > { %v840_v34 = vsub.f32 %v835_v12, %v839_v29  ;;  %v1080_v29 = vld [vmem:[#allocation2 + $0x1a8] sm:$0xff] }
 0x99c   : > { %v841_v37 = vmul.f32 1.442695, %v840_v34  ;;  %v1078_v34 = vld [vmem:[#allocation2 + $0x48] sm:$0xff] }
 0x9a1   : > { %v903_v19 = vpop.xlane.xlu1 %902 }
 0x9a2   : > { %v904_v22 = vsub.f32 %v900_v16, %v903_v19  ;;  %v1083_v19 = vld [vmem:[#allocation2 + $0x3b8] sm:$0xff] }
 0x9a4   : > { %v905_v28 = vmul.f32 1.442695, %v904_v22  ;;  %v1082_v22 = vld [vmem:[#allocation2 + $0x308] sm:$0xff] }
 0x9a6   : > { %2464 = vpow2.f32 %v905_v28  ;;  %v1081_v28 = vld [vmem:[#allocation2 + $0x258] sm:$0xff] }
 0x9a7   : > { %2466 = vpow2.f32 %v841_v37 }
 0x9ac   : > { %v2465_v0 = vpop.eup %2464 }
 0x9ad   : > { %v907_v36 = vsel %vm836_vm12, %v2465_v0, 0.0  ;;  %v2467_v40 = vpop.eup %2466 }
 0x9ae   : > { %908 = vadd.xlane.f32.xlu2 %v907_v36  ;;  %v843_v43 = vsel %vm836_vm12, %v2467_v40, 0.0 }
 0x9b6   : > { %966 = vmax.xlane.f32.xlu2 %v965_v39 }
 0x9be   : > { %844 = vadd.xlane.f32.xlu2 %v843_v43 }
 0xa21   : > { %v909_v47 = vpop.xlane.xlu2 %908 }
 0xa22   : > { %2468 = vrcp.f32 %v909_v47 }
 0xa28   : > { %v2469_v48 = vpop.eup %2468 }
 0xa29   : > { %v911_v49 = vmul.f32 %v2469_v48, %v2465_v0  ;;  %v967_v50 = vpop.xlane.xlu2 %966 }
 0xa2a   : > { %v968_v58 = vsub.f32 %v964_v38, %v967_v50  ;;  %v1143_v50 = vld [vmem:[#allocation2 + $0x4f8] sm:$0xff] }
 0xa2b   : > { %2323 = vmatmul.msk.f32.vlgmr.msrb.gmra.mxu0 %vm836_vm12, %v911_v49 }
 0xa2c   : > { %v969_v59 = vmul.f32 1.442695, %v968_v58  ;;  %v1140_v58 = vld [vmem:[#allocation2 + $0x3a0] sm:$0xff] }
 0xa31   : > { %v845_v51 = vpop.xlane.xlu2 %844 }
 0xa32   : > { %2470 = vrcp.f32 %v845_v51  ;;  %v1144_v51 = vld [vmem:[#allocation2 + $0x500] sm:$0xff] }
 0xa33   : > { %2328 = vmatmul.msk.f32.vlgmr.msra.gmra.mxu0 %vm808_vm10, %v1003_v18  ;;  %2472 = vpow2.f32 %v969_v59  ;;  %v1084_v18 = vld [vmem:[#allocation2 + $0x468] sm:$0xff]  ;;  %v1138_v59 = vld [vmem:[#allocation2 + $0x2f0] sm:$0xff] }
 0xa34   : > { %1098 = vmatpush.msra.mxu2 %v1084_v18  ;;  %1192 = vmatpush.msrb.mxu0 %v1144_v51  ;;  %v1525_v51 = vld [vmem:[#allocation2 + $0x348] sm:$0xff] }
 0xa36   : > { %1099 = vmatpush.msra.mxu2 %v1083_v19 }
 0xa38   : > { %v2471_v53 = vpop.eup %2470  ;;  %1100 = vmatpush.msra.mxu2 %v1082_v22 }
 0xa39   : > { %v847_v55 = vmul.f32 %v2471_v53, %v2467_v40  ;;  %v2473_v63 = vpop.eup %2472  ;;  %v1141_v53 = vld [vmem:[#allocation2 + $0x448] sm:$0xff] }
 0xa3a   : > { %v971_v1 = vsel %vm836_vm12, %v2473_v63, 0.0  ;;  %1101 = vmatpush.msra.mxu2 %v1081_v28 }
 0xa3b   : > { %2320 = vmatmul.msk.f32.vlgmr.msrb.gmra.mxu3 %vm836_vm12, %v847_v55  ;;  %v1142_v55 = vld [vmem:[#allocation2 + $0x450] sm:$0xff] }
 0xa3c   : > { %1102 = vmatpush.msra.mxu2 %v1080_v29  ;;  %1193 = vmatpush.msrb.mxu0 %v1142_v55  ;;  %v1127_v29 = vperm.slane %v2772_v52, 4  ;;  %v1150_v52 = vld [vmem:[%s3379_s2 + $0xa8] sm:$0xff] }
 0xa3d   : > { %v1523_v55 = vld [vmem:[#allocation2 + $0x1e8] sm:$0xff] }
 0xa3e   : > { %1103 = vmatpush.msra.mxu2 %v1079_v30  ;;  %1194 = vmatpush.msrb.mxu0 %v1140_v58  ;;  %v1521_v58 = vld [vmem:[#allocation2 + $0x88] sm:$0xff] }
 0xa40   : > { %1104 = vmatpush.msra.mxu2 %v1078_v34  ;;  %1195 = vmatpush.msrb.mxu0 %v1138_v59 }
 0xa42   : > { %1278 = vmatpush.msrb.mxu2 %v1265_v42 }
 0xaa8   : > { %v932_v56 = vpop.f32.mrf.mxu0 }
 0xab0   : > { %v1023_v60 = vpop.f32.mrf.mxu0 }
 0xab1   : > { %v1026_v25 = vmul.f32 0.25, %v1023_v60  ;;  %v1135_v60 = vld [vmem:[#allocation2 + $0x238] sm:$0xff] }
 0xab3   : > { %v1027_v61 = vadd.f32 %v1026_v25, %v2972_v10  ;;  %v1136_v25 = vld [vmem:[#allocation2 + $0x240] sm:$0xff] }
 0xab4   : > { %1196 = vmatpush.msrb.mxu0 %v1136_v25 }
 0xab5   : > { %v1028_v62 = vsel %vm836_vm12, %v1027_v61, -inf }
 0xab6   : > { %1029 = vmax.xlane.f32.xlu1 %v1028_v62  ;;  %v1134_v62 = vld [vmem:[#allocation2 + $0x190] sm:$0xff] }
 0xab7   : > { %1197 = vmatpush.msrb.mxu0 %v1134_v62 }
 0xabe   : > { %972 = vadd.xlane.f32.xlu1 %v971_v1  ;;  %v872_v15 = vpop.f32.mrf.mxu3  ;;  %v1132_v1 = vld [vmem:[#allocation2 + $0xe0] sm:$0xff] }
 0xabf   : > { %1198 = vmatpush.msrb.mxu0 %v1132_v1 }
 0xad7   : > { %976 = vrot.lane.b32.xlu1 %v2888_v57, %s3384_s10 }
 0xb29   : > { %v1030_v2 = vpop.xlane.xlu1 %1029 }
 0xb2a   : > { %v1031_v3 = vsub.f32 %v1027_v61, %v1030_v2  ;;  %v1133_v61 = vld [vmem:[#allocation2 + $0x188] sm:$0xff] }
 0xb2b   : > { %v1129_v2 = vld [vmem:[#allocation2 + $0x28] sm:$0xff] }
 0xb2c   : > { %v1032_v4 = vmul.f32 1.442695, %v1031_v3  ;;  %v1130_v3 = vld [vmem:[#allocation2 + $0x30] sm:$0xff] }
 0xb2d   : > { %1199 = vmatpush.msrb.mxu0 %v1130_v3 }
 0xb2e   : > { %2474 = vpow2.f32 %v1032_v4  ;;  %v1160_v4 = vld [vmem:[%s3379_s2 + $0xf8] sm:$0xff] }
 0xb31   : > { %v973_v8 = vpop.xlane.xlu1 %972 }
 0xb32   : > { %2476 = vrcp.f32 %v973_v8  ;;  %v1157_v8 = vld [vmem:[%s3379_s2 + $0xe0] sm:$0xff] }
 0xb34   : > { %v2475_v5 = vpop.eup %2474 }
 0xb35   : > { %v1034_v7 = vsel %vm836_vm12, %v2475_v5, 0.0 }
 0xb36   : > { %1035 = vadd.xlane.f32.xlu2 %v1034_v7  ;;  %v1158_v7 = vld [vmem:[%s3379_s2 + $0xe8] sm:$0xff] }
 0xb38   : > { %v2477_v9 = vpop.eup %2476 }
 0xb39   : > { %v975_v11 = vmul.f32 %v2477_v9, %v2473_v63  ;;  %v1131_v63 = vld [vmem:[#allocation2 + $0xd8] sm:$0xff] }
 0xb49   : > { %v977_v12 = vpop.permute.xlu1 %976 }
 0xb4a   : > { %997 = vmatpush.msra.mxu3 %v977_v12  ;;  %1057 = vmatpush.msra.mxu1 %v977_v12  ;;  %v1156_v12 = vld [vmem:[%s3379_s2 + $0xd8] sm:$0xff] }
 0xb4b   : > { %2326 = vmatmul.msk.f32.vlgmr.msra.gmra.mxu3 %vm836_vm12, %v975_v11 }
 0xb4c   : > { %1172 = vmatpush.msrb.mxu3 %v1143_v50  ;;  %1211 = vmatpush.msrb.mxu1 %v1160_v4  ;;  %v1526_v50 = vld [vmem:[#allocation2 + $0x3f8] sm:$0xff]  ;;  %v1264_v4 = vld [vmem:[#allocation2 + $0x488] sm:$0xff] }
 0xb4e   : > { %1063 = vrot.lane.b32.xlu2 %v932_v56, %s3384_s10  ;;  %1173 = vmatpush.msrb.mxu3 %v1141_v53  ;;  %v1139_v56 = vld [vmem:[#allocation2 + $0x398] sm:$0xff] }
 0xb4f   : > { %v1524_v53 = vld [vmem:[#allocation2 + $0x298] sm:$0xff] }
 0xb50   : > { %1174 = vmatpush.msrb.mxu3 %v1139_v56  ;;  %v1522_v56 = vld [vmem:[#allocation2 + $0x138] sm:$0xff] }
 0xba9   : > { %v1036_v57 = vpop.xlane.xlu2 %1035 }
 0xbaa   : > { %2478 = vrcp.f32 %v1036_v57 }
 0xbb0   : > { %v2479_v13 = vpop.eup %2478 }
 0xbb1   : > { %v1038_v14 = vmul.f32 %v2479_v13, %v2475_v5  ;;  %v1064_v35 = vpop.permute.xlu2 %1063  ;;  %v1159_v5 = vld [vmem:[%s3379_s2 + $0xf0] sm:$0xff] }
 0xbb2   : > { %v1074_v37 = vsel %vm808_vm10, %v872_v15, %v1064_v35  ;;  %1212 = vmatpush.msrb.mxu1 %v1159_v5  ;;  %v1155_v13 = vld [vmem:[%s3379_s2 + $0xd0] sm:$0xff]  ;;  %v1153_v15 = vld [vmem:[%s3379_s2 + $0xc0] sm:$0xff]  ;;  %v1152_v35 = vld [vmem:[%s3379_s2 + $0xb8] sm:$0xff] }
 0xbb3   : > { %2329 = vmatmul.msk.f32.vlgmr.msra.gmra.mxu1 %vm836_vm12, %v1038_v14  ;;  %v1154_v14 = vld [vmem:[%s3379_s2 + $0xc8] sm:$0xff]  ;;  %v1261_v5 = vld [vmem:[#allocation2 + $0x3d0] sm:$0xff] }
 0xbb4   : > { %1213 = vmatpush.msrb.mxu1 %v1158_v7  ;;  %v1262_v7 = vld [vmem:[#allocation2 + $0x3d8] sm:$0xff] }
 0xbb6   : > { %1214 = vmatpush.msrb.mxu1 %v1157_v8  ;;  %v1260_v8 = vld [vmem:[#allocation2 + $0x328] sm:$0xff] }
 0xbb8   : > { %1215 = vmatpush.msrb.mxu1 %v1156_v12  ;;  %v1255_v12 = vld [vmem:[#allocation2 + $0x1c0] sm:$0xff] }
 0xbba   : > { %1216 = vmatpush.msrb.mxu1 %v1155_v13  ;;  %v1253_v13 = vld [vmem:[#allocation2 + $0x110] sm:$0xff] }
 0xbbc   : > { %1217 = vmatpush.msrb.mxu1 %v1154_v14  ;;  %v1254_v14 = vld [vmem:[#allocation2 + $0x118] sm:$0xff] }
 0xbbe   : > { %1218 = vmatpush.msrb.mxu1 %v1153_v15  ;;  %v1251_v15 = vld [vmem:[#allocation2 + $0x60] sm:$0xff] }
 0xbc0   : > { %1219 = vmatpush.msrb.mxu1 %v1152_v35  ;;  %v3088_v35 = vld [vmem:[%s3380_s3 + $0x10] sm:$0xff] }
 0xbce   : > { %v999_v16 = vpop.f32.mrf.mxu3 }
 0xbcf   : > { %1067 = vrot.lane.b32.xlu0 %v999_v16, %s3386_s28 }
 0xc30   : > { %v1059_v0 = vpop.f32.mrf.mxu1 }
 0xc31   : > { %1071 = vrot.lane.b32.xlu1 %v1059_v0, %s2638_s20 }
 0xc41   : > { %v1068_v36 = vpop.permute.xlu0 %1067 }
 0xc42   : > { %v1075_v38 = vsel %vm665_vm14, %v1074_v37, %v1068_v36  ;;  %v1151_v36 = vld [vmem:[%s3379_s2 + $0xb0] sm:$0xff]  ;;  %v1149_v37 = vld [vmem:[%s3379_s2 + $0xa0] sm:$0xff] }
 0xc43   : > { %1220 = vmatpush.msrb.mxu1 %v1151_v36 }
 0xc45   : > { %1221 = vmatpush.msrb.mxu1 %v1150_v52 }
 0xc47   : > { %1222 = vmatpush.msrb.mxu1 %v1149_v37  ;;  %v1249_v37 = vperm.slane %v3088_v35, 6 }
 0xca3   : > { %v1072_v39 = vpop.permute.xlu1 %1071 }
 0xca4   : > { %v1077_v40 = vsel %vm1076_vm13, %v1075_v38, %v1072_v39  ;;  %v1148_v38 = vld [vmem:[%s3379_s2 + $0x98] sm:$0xff]  ;;  %v1147_v39 = vld [vmem:[%s3379_s2 + $0x90] sm:$0xff] }
 0xca5   : > { %2330 = vmatmul.msk.f32.vlgmr.msra.gmra.mxu2 %vm287_vm0, %v1077_v40  ;;  %1223 = vmatpush.msrb.mxu1 %v1148_v38  ;;  %v1146_v40 = vld [vmem:[%s3379_s2 + $0x88] sm:$0xff] }
 0xca7   : > { %1224 = vmatpush.msrb.mxu1 %v1147_v39 }
 0xca9   : > { %1225 = vmatpush.msrb.mxu1 %v1146_v40 }
 0xd28   : > { %v1106_v43 = vpop.f32.mrf.mxu2 }
 0xd29   : > { %v3001_v47 = vadd.f32 %v1106_v43, %v2849_v21  ;;  %v1137_v21 = vld [vmem:[#allocation2 + $0x2e8] sm:$0xff]  ;;  %v1145_v43 = vld [vmem:[%s3379_s2 + $0x80] sm:$0xff] }
 0xd2a   : > { %1175 = vmatpush.msrb.mxu3 %v1137_v21  ;;  %1226 = vmatpush.msrb.mxu1 %v1145_v43 }
 0xd2b   : > { %v1110_v48 = vmul.f32 %v3001_v47, %v3001_v47 }
 0xd2c   : > { %1176 = vmatpush.msrb.mxu3 %v1135_v60 }
 0xd2d   : > { %v1111_v49 = vsel %vm287_vm0, %v1110_v48, 0.0  ;;  %v1528_v48 = vld [vmem:[#allocation2 + $0x558] sm:$0xff] }
 0xd2e   : > { %1112 = vadd.xlane.f32.xlu2 %v1111_v49  ;;  %1177 = vmatpush.msrb.mxu3 %v1133_v61  ;;  %v1527_v49 = vld [vmem:[#allocation2 + $0x4a8] sm:$0xff] }
 0xd2f   : > { %1540 = vmatpush.msra.mxu1 %v1528_v48 }
 0xd30   : > { %1178 = vmatpush.msrb.mxu3 %v1131_v63 }
 0xd31   : > { %1541 = vmatpush.msra.mxu1 %v1527_v49 }
 0xd32   : > { %1179 = vmatpush.msrb.mxu3 %v1129_v2 }
 0xd33   : > { %1542 = vmatpush.msra.mxu1 %v1526_v50 }
 0xd35   : > { %1543 = vmatpush.msra.mxu1 %v1525_v51 }
 0xd37   : > { %1544 = vmatpush.msra.mxu1 %v1524_v53 }
 0xd39   : > { %1545 = vmatpush.msra.mxu1 %v1523_v55 }
 0xd3b   : > { %1546 = vmatpush.msra.mxu1 %v1522_v56 }
 0xd3d   : > { %1547 = vmatpush.msra.mxu1 %v1521_v58 }
 0xda1   : > { %v1113_v9 = vpop.xlane.xlu2 %1112 }
 0xda2   : > { %v1114_v11 = vmul.f32 %v1113_v9, %v2754_v27  ;;  %v1257_v9 = vld [vmem:[#allocation2 + $0x270] sm:$0xff] }
 0xda4   : > { %v1115_v57 = vadd.f32 1e-06, %v1114_v11  ;;  %v1258_v11 = vld [vmem:[#allocation2 + $0x278] sm:$0xff] }
 0xda6   : > { %2480 = vrsqrt.f32 %v1115_v57  ;;  %vm1122_vm1 = vweird.f32 %v1115_v57 }
 0xdac   : > { %v2481_v16 = vpop.eup %2480 }
 0xdad   : > { %v1117_v17 = vmul.f32 %v2481_v16, %v1115_v57  ;;  %vm1123_vm15 = vweird.f32 %v2481_v16  ;;  %v1256_v57 = vld [vmem:[#allocation2 + $0x1c8] sm:$0xff] }
 0xdae   : > { %vm1124_vm2 = vmor %vm1122_vm1, %vm1123_vm15 }
 0xdaf   : > { %v1118_v18 = vmul.f32 %v2481_v16, %v1117_v17  ;;  %v3080_v17 = vld [vmem:[%s3380_s3 + $0x18] sm:$0xff] }
 0xdb0   : > { %v1310_v43 = vperm.slane %v3080_v17, 0  ;;  %v1318_v48 = vperm.slane %v3080_v17, 2  ;;  %v1323_v56 = vperm.slane %v3080_v17, 5 }
 0xdb1   : > { %v1119_v19 = vmul.f32 0.5, %v1118_v18  ;;  %v1312_v18 = vperm.slane %v3080_v17, 1 }
 0xdb3   : > { %v1120_v22 = vsub.f32 1.5, %v1119_v19  ;;  %1314 = vrot.lane.b32.xlu0 %v1312_v18, %s2635_s29 }
 0xdb5   : > { %v1121_v28 = vmul.f32 %v2481_v16, %v1120_v22 }
 0xdb7   : > { %v1125_v30 = vsel %vm1124_vm2, %v2481_v16, %v1121_v28  ;;  %v1252_v16 = vld [vmem:[#allocation2 + $0x68] sm:$0xff] }
 0xdb8   : > { %v1126_v0 = vmul.f32 %v1125_v30, %v3001_v47 }
 0xdba   : > { %v1128_v34 = vmul.f32 %v1127_v29, %v1126_v0 }
 0xdbc   : > { %2331 = vmatmul.msk.f32.vlgmr.msrb.gmra.mxu3 %vm287_vm0, %v1128_v34  ;;  %2332 = vmatmul.msk.f32.vlgmr.msrb.gmra.mxu0 %vm287_vm0, %v1128_v34 }
 0xe39   : > { %v1201_v1 = vpop.f32.mrf.mxu0 }
 0xe3f   : > { %v1181_v21 = vpop.f32.mrf.mxu3 }
 0xe40   : > { %v1204_v59 = vsub.f32 0.0, %v1181_v21 }
 0xe42   : > { %v1205_v60 = vmul.f32 1.442695, %v1204_v59 }
 0xe44   : > { %2482 = vpow2.f32 %v1205_v60  ;;  %v1325_v60 = vperm.slane %v3080_v17, 3 }
 0xe4a   : > { %v2483_v25 = vpop.eup %2482 }
 0xe4b   : > { %v1207_v61 = vadd.f32 1.0, %v2483_v25  ;;  %v1329_v25 = vperm.slane %v3080_v17, 6 }
 0xe4d   : > { %2484 = vrcp.f32 %v1207_v61 }
 0xe53   : > { %v2485_v62 = vpop.eup %2484 }
 0xe54   : > { %v1209_v63 = vmul.f32 %v2485_v62, %v1181_v21  ;;  %v3104_v62 = vld [vmem:[%s3380_s3 + $0x20] sm:$0xff] }
 0xe55   : > { %v1337_v42 = vperm.slane %v3104_v62, 0 }
 0xe56   : > { %v1210_v2 = vmul.f32 %v1209_v63, %v1201_v1 }
 0xe58   : > { %1227 = vmatmul.f32.vlgmr.msrb.gmra.mxu1 %v1210_v2  ;;  %v1334_v2 = vperm.slane %v3080_v17, 7 }
 0xe59   : > { %1650 = vmatpush.msrb.mxu1 %v2439_v26 }
 0xe5b   : > { %1651 = vmatpush.msrb.mxu1 %v2440_v24 }
 0xe5d   : > { %1652 = vmatpush.msrb.mxu1 %v2444_v45  ;;  %v1263_v45 = vld [vmem:[#allocation2 + $0x480] sm:$0xff] }
 0xe5e   : > { %1279 = vmatpush.msrb.mxu2 %v1263_v45 }
 0xe5f   : > { %1653 = vmatpush.msrb.mxu1 %v2445_v44  ;;  %v1266_v44 = vld [vmem:[#allocation2 + $0x538] sm:$0xff] }
 0xe60   : > { %1298 = vmatpush.msra.mxu3 %v1266_v44  ;;  %1280 = vmatpush.msrb.mxu2 %v1261_v5 }
 0xe61   : > { %1654 = vmatpush.msrb.mxu1 %v2916_v31 }
 0xe62   : > { %1299 = vmatpush.msra.mxu3 %v1264_v4 }
 0xe63   : > { %1655 = vmatpush.msrb.mxu1 %v2918_v32 }
 0xe64   : > { %1300 = vmatpush.msra.mxu3 %v1262_v7 }
 0xe65   : > { %1656 = vmatpush.msrb.mxu1 %v2921_v23 }
 0xe66   : > { %1301 = vmatpush.msra.mxu3 %v1260_v8  ;;  %v1351_v8 = vld [vmem:[#allocation2 + $0x490] sm:$0xff] }
 0xe67   : > { %1657 = vmatpush.msrb.mxu1 %v2924_v33 }
 0xe68   : > { %1302 = vmatpush.msra.mxu3 %v1258_v11  ;;  %v1349_v11 = vld [vmem:[#allocation2 + $0x330] sm:$0xff] }
 0xe6a   : > { %1303 = vmatpush.msra.mxu3 %v1256_v57  ;;  %v1346_v57 = vld [vmem:[#allocation2 + $0x120] sm:$0xff] }
 0xe6c   : > { %1304 = vmatpush.msra.mxu3 %v1254_v14  ;;  %v1315_v14 = vpop.permute.xlu0 %1314 }
 0xe6e   : > { %1305 = vmatpush.msra.mxu3 %v1252_v16 }
 0xed5   : > { %v1228_v3 = vpop.f32.mrf.mxu1 }
 0xed6   : > { %v3072_v26 = vadd.f32 %v1228_v3, %v3001_v47  ;;  %v1259_v47 = vld [vmem:[#allocation2 + $0x320] sm:$0xff] }
 0xed7   : > { %1281 = vmatpush.msrb.mxu2 %v1259_v47  ;;  %v1352_v47 = vld [vmem:[#allocation2 + $0x540] sm:$0xff] }
 0xed8   : > { %v1232_v20 = vmul.f32 %v3072_v26, %v3072_v26  ;;  %1367 = vmatpush.msra.mxu0 %v1352_v47 }
 0xed9   : > { %1282 = vmatpush.msrb.mxu2 %v1257_v9  ;;  %v1350_v9 = vld [vmem:[#allocation2 + $0x3e0] sm:$0xff] }
 0xeda   : > { %v1233_v24 = vsel %vm287_vm0, %v1232_v20, 0.0  ;;  %1368 = vmatpush.msra.mxu0 %v1351_v8 }
 0xedb   : > { %1234 = vadd.xlane.f32.xlu1 %v1233_v24  ;;  %1283 = vmatpush.msrb.mxu2 %v1255_v12  ;;  %v1347_v12 = vld [vmem:[#allocation2 + $0x1d0] sm:$0xff] }
 0xedc   : > { %1369 = vmatpush.msra.mxu0 %v1350_v9  ;;  %v1397_v9 = vperm.slane %v3088_v35, 7  ;;  %v1427_v35 = vld [vmem:[%s3379_s2 + $0x160] sm:$0xff] }
 0xedd   : > { %1284 = vmatpush.msrb.mxu2 %v1253_v13  ;;  %v1345_v13 = vld [vmem:[#allocation2 + $0x70] sm:$0xff] }
 0xede   : > { %1370 = vmatpush.msra.mxu0 %v1349_v11 }
 0xedf   : > { %1285 = vmatpush.msrb.mxu2 %v1251_v15 }
 0xee0   : > { %1371 = vmatpush.msra.mxu0 %v1348_v46 }
 0xee2   : > { %1372 = vmatpush.msra.mxu0 %v1347_v12 }
 0xee4   : > { %1373 = vmatpush.msra.mxu0 %v1346_v57  ;;  %v1426_v57 = vld [vmem:[%s3379_s2 + $0x158] sm:$0xff] }
 0xee6   : > { %1374 = vmatpush.msra.mxu0 %v1345_v13  ;;  %v1421_v13 = vld [vmem:[%s3379_s2 + $0x130] sm:$0xff] }
 0xf4e   : > { %v1235_v19 = vpop.xlane.xlu1 %1234 }
 0xf4f   : > { %v1236_v22 = vmul.f32 %v1235_v19, %v2754_v27 }
 0xf51   : > { %v1237_v28 = vadd.f32 1e-06, %v1236_v22  ;;  %v1353_v22 = vperm.slane %v3080_v17, 4  ;;  %v1413_v17 = vld [vmem:[#allocation2 + $0x520] sm:$0xff] }
 0xf52   : > { %1442 = vmatpush.msra.mxu2 %v1413_v17 }
 0xf53   : > { %2486 = vrsqrt.f32 %v1237_v28  ;;  %vm1244_vm4 = vweird.f32 %v1237_v28 }
 0xf59   : > { %v2487_v29 = vpop.eup %2486 }
 0xf5a   : > { %v1239_v30 = vmul.f32 %v2487_v29, %v1237_v28  ;;  %vm1245_vm3 = vweird.f32 %v2487_v29 }
 0xf5b   : > { %vm1246_vm8 = vmor %vm1244_vm4, %vm1245_vm3 }
 0xf5c   : > { %v1240_v0 = vmul.f32 %v2487_v29, %v1239_v30 }
 0xf5e   : > { %v1241_v34 = vmul.f32 0.5, %v1240_v0 }
 0xf60   : > { %v1242_v36 = vsub.f32 1.5, %v1241_v34 }
 0xf62   : > { %v1243_v52 = vmul.f32 %v2487_v29, %v1242_v36  ;;  %v1414_v36 = vld [vmem:[#allocation2 + $0x528] sm:$0xff] }
 0xf63   : > { %1462 = vmatpush.msrb.mxu3 %v1414_v36 }
 0xf64   : > { %v1247_v38 = vsel %vm1246_vm8, %v2487_v29, %v1243_v52  ;;  %v1412_v52 = vld [vmem:[#allocation2 + $0x478] sm:$0xff] }
 0xf65   : > { %v1248_v39 = vmul.f32 %v1247_v38, %v3072_v26  ;;  %1463 = vmatpush.msrb.mxu3 %v1412_v52  ;;  %v1408_v38 = vld [vmem:[#allocation2 + $0x318] sm:$0xff] }
 0xf67   : > { %v1250_v40 = vmul.f32 %v1249_v37, %v1248_v39  ;;  %v1410_v37 = vld [vmem:[#allocation2 + $0x3c8] sm:$0xff] }
 0xf68   : > { %1464 = vmatpush.msrb.mxu3 %v1410_v37  ;;  %v1406_v39 = vld [vmem:[#allocation2 + $0x268] sm:$0xff] }
 0xf69   : > { %2333 = vmatmul.msk.f32.vlgmr.msrb.gmra.mxu2 %vm287_vm0, %v1250_v40  ;;  %2334 = vmatmul.msk.f32.vlgmr.msra.gmra.mxu3 %vm287_vm0, %v1250_v40  ;;  %v1404_v40 = vld [vmem:[#allocation2 + $0x1b8] sm:$0xff] }
 0xf6a   : > { %1465 = vmatpush.msrb.mxu3 %v1408_v38 }
 0xf6c   : > { %1466 = vmatpush.msrb.mxu3 %v1406_v39 }
 0xf6e   : > { %1467 = vmatpush.msrb.mxu3 %v1404_v40 }
 0xfec   : > { %v1287_v49 = vpop.f32.mrf.mxu2  ;;  %v1307_v50 = vpop.f32.mrf.mxu3 }
 0xfed   : > { %v1311_v51 = vadd.f32 %v1310_v43, %v1287_v49  ;;  %v1319_v53 = vadd.f32 %v1318_v48, %v1307_v50  ;;  %v1317_v15 = vadd.f32 %v1315_v14, %v1287_v49  ;;  %v1409_v43 = vld [vmem:[#allocation2 + $0x3c0] sm:$0xff]  ;;  %v1402_v48 = vld [vmem:[#allocation2 + $0x108] sm:$0xff]  ;;  %v1407_v49 = vld [vmem:[#allocation2 + $0x310] sm:$0xff] }
 0xfee   : > { %1468 = vmatpush.msrb.mxu3 %v1402_v48  ;;  %v1400_v50 = vld [vmem:[#allocation2 + $0x58] sm:$0xff]  ;;  %v1420_v14 = vld [vmem:[%s3379_s2 + $0x128] sm:$0xff] }
 0xfef   : > { %v1320_v55 = vmul.f32 %v1319_v53, %v1311_v51  ;;  %v1405_v51 = vld [vmem:[#allocation2 + $0x260] sm:$0xff]  ;;  %v2524_v53 = vld [vmem:[%s3382_s5 + $0x18] sm:$0xff] }
 0xff0   : > { %1469 = vmatpush.msrb.mxu3 %v1400_v50 }
 0xff1   : > { %v1321_v58 = vrot.slane %v1320_v55, 5  ;;  %v1327_v21 = vrot.slane %v1320_v55, 6  ;;  %v1332_v59 = vrot.slane %v1320_v55, 7  ;;  %v1338_v5 = vmul.f32 %v1337_v42, %v1320_v55  ;;  %v1403_v55 = vld [vmem:[#allocation2 + $0x1b0] sm:$0xff] }
 0xff2   : > { %1607 = vmatpush.msra.mxu3 %v2524_v53 }
 0xff3   : > { %v1322_v61 = vsel %vm383_vm5, %v1321_v58, 0.0  ;;  %v1328_v63 = vsel %vm390_vm6, %v1327_v21, 0.0  ;;  %v1333_v3 = vsel %vm396_vm7, %v1332_v59, 0.0  ;;  %v1401_v58 = vld [vmem:[#allocation2 + $0x100] sm:$0xff]  ;;  %v2526_v21 = vld [vmem:[%s3382_s5 + $0x8] sm:$0xff]  ;;  %v1399_v59 = vld [vmem:[#allocation2 + $0x50] sm:$0xff] }
 0xff4   : > { %v1324_v1 = vmul.f32 %v1323_v56, %v1322_v61  ;;  %v1330_v24 = vmul.f32 %v1329_v25, %v1328_v63  ;;  %v1335_v45 = vmul.f32 %v1334_v2, %v1333_v3  ;;  %v2525_v56 = vld [vmem:[%s3382_s5 + $0x10] sm:$0xff]  ;;  %v2528_v25 = vld [vmem:[%s3382_s5 + $0x38] sm:$0xff] }
 0xff5   : > { %1608 = vmatpush.msra.mxu3 %v2525_v56  ;;  %v2529_v61 = vld [vmem:[%s3382_s5 + $0x30] sm:$0xff]  ;;  %v1430_v3 = vld [vmem:[%s3379_s2 + $0x178] sm:$0xff] }
 0xff6   : > { %v1326_v20 = vadd.f32 %v1325_v60, %v1324_v1  ;;  %v2527_v60 = vld [vmem:[%s3382_s5] sm:$0xff]  ;;  %v2530_v1 = vld [vmem:[%s3382_s5 + $0x28] sm:$0xff]  ;;  %1481 = vmatpush.msrb.mxu0 %v1430_v3 }
 0xff7   : > { %1609 = vmatpush.msra.mxu3 %v2526_v21 }
 0xff8   : > { %v1331_v44 = vadd.f32 %v1330_v24, %v1326_v20  ;;  %v1429_v20 = vld [vmem:[%s3379_s2 + $0x170] sm:$0xff]  ;;  %v2531_v24 = vld [vmem:[%s3382_s5 + $0x20] sm:$0xff] }
 0xff9   : > { %1610 = vmatpush.msra.mxu3 %v2527_v60  ;;  %1482 = vmatpush.msrb.mxu0 %v1429_v20 }
 0xffa   : > { %v1336_v4 = vadd.f32 %v1335_v45, %v1331_v44  ;;  %v1428_v44 = vld [vmem:[%s3379_s2 + $0x168] sm:$0xff] }
 0xffb   : > { %1483 = vmatpush.msrb.mxu0 %v1428_v44 }
 0xffc   : > { %v1339_v7 = vadd.f32 %v1338_v5, %v1336_v4 }
 0xffd   : > { %1484 = vmatpush.msrb.mxu0 %v1427_v35 }
 0xffe   : > { %1341 = vrot.lane.b32.xlu0 %v1339_v7, %s2635_s29 }
 0xfff   : > { %1485 = vmatpush.msrb.mxu0 %v1426_v57 }
0x1070   : > { %v1342_v16 = vpop.permute.xlu0 %1341 }
0x1071   : > { %v1344_v18 = vmul.f32 %v1342_v16, %v1317_v15  ;;  %v1419_v15 = vld [vmem:[%s3379_s2 + $0x120] sm:$0xff]  ;;  %v1418_v16 = vld [vmem:[%s3379_s2 + $0x118] sm:$0xff] }
0x1073   : > { %1355 = vrot.lane.b32.xlu0 %v1344_v18, %s2635_s29  ;;  %v1417_v18 = vld [vmem:[%s3379_s2 + $0x110] sm:$0xff] }
0x10e5   : > { %v1356_v19 = vpop.permute.xlu0 %1355 }
0x10e6   : > { %2335 = vmatmul.msk.f32.vlgmr.msra.gmra.mxu0 %vm287_vm0, %v1356_v19  ;;  %v1416_v19 = vld [vmem:[%s3379_s2 + $0x108] sm:$0xff] }
0x1163   : > { %v1376_v28 = vpop.f32.mrf.mxu0 }
0x1164   : > { %v1377_v29 = vadd.f32 %v1376_v28, %v1353_v22  ;;  %v1415_v22 = vld [vmem:[%s3379_s2 + $0x100] sm:$0xff] }
0x1166   : > { %v3117_v30 = vadd.f32 %v1377_v29, %v3072_v26  ;;  %v1411_v26 = vld [vmem:[#allocation2 + $0x470] sm:$0xff] }
0x1167   : > { %1443 = vmatpush.msra.mxu2 %v1411_v26 }
0x1168   : > { %v1380_v0 = vmul.f32 %v3117_v30, %v3117_v30 }
0x1169   : > { %1444 = vmatpush.msra.mxu2 %v1409_v43 }
0x116a   : > { %v1381_v34 = vsel %vm287_vm0, %v1380_v0, 0.0 }
0x116b   : > { %1382 = vadd.xlane.f32.xlu0 %v1381_v34  ;;  %1445 = vmatpush.msra.mxu2 %v1407_v49 }
0x116d   : > { %1446 = vmatpush.msra.mxu2 %v1405_v51 }
0x116f   : > { %1447 = vmatpush.msra.mxu2 %v1403_v55 }
0x1171   : > { %1448 = vmatpush.msra.mxu2 %v1401_v58 }
0x1173   : > { %1449 = vmatpush.msra.mxu2 %v1399_v59 }
0x1175   : > { %1564 = vmatpush.msrb.mxu2 %v2528_v25 }
0x1177   : > { %1565 = vmatpush.msrb.mxu2 %v2529_v61 }
0x1179   : > { %1566 = vmatpush.msrb.mxu2 %v2530_v1 }
0x117b   : > { %1567 = vmatpush.msrb.mxu2 %v2531_v24 }
0x117d   : > { %1568 = vmatpush.msrb.mxu2 %v2524_v53 }
0x117f   : > { %1569 = vmatpush.msrb.mxu2 %v2525_v56 }
0x1181   : > { %1570 = vmatpush.msrb.mxu2 %v2526_v21 }
0x1183   : > { %1571 = vmatpush.msrb.mxu2 %v2527_v60 }
0x11de   : > { %v1383_v63 = vpop.xlane.xlu0 %1382 }
0x11df   : > { %v1384_v2 = vmul.f32 %v1383_v63, %v2754_v27 }
0x11e1   : > { %v1385_v42 = vadd.f32 1e-06, %v1384_v2 }
0x11e3   : > { %2488 = vrsqrt.f32 %v1385_v42  ;;  %vm1392_vm6 = vweird.f32 %v1385_v42 }
0x11e9   : > { %v2489_v45 = vpop.eup %2488 }
0x11ea   : > { %v1387_v4 = vmul.f32 %v2489_v45, %v1385_v42  ;;  %vm1393_vm5 = vweird.f32 %v2489_v45 }
0x11eb   : > { %vm1394_vm7 = vmor %vm1392_vm6, %vm1393_vm5 }
0x11ec   : > { %v1388_v5 = vmul.f32 %v2489_v45, %v1387_v4 }
0x11ee   : > { %v1389_v7 = vmul.f32 0.5, %v1388_v5 }
0x11f0   : > { %v1390_v47 = vsub.f32 1.5, %v1389_v7  ;;  %v1589_v7 = vperm.slane %v3104_v62, 3 }
0x11f2   : > { %v1391_v8 = vmul.f32 %v2489_v45, %v1390_v47 }
0x11f4   : > { %v1395_v11 = vsel %vm1394_vm7, %v2489_v45, %v1391_v8 }
0x11f5   : > { %v1396_v46 = vmul.f32 %v1395_v11, %v3117_v30  ;;  %v1632_v11 = vperm.slane %v3104_v62, 4 }
0x11f7   : > { %v1398_v12 = vmul.f32 %v1397_v9, %v1396_v46 }
0x11f9   : > { %2336 = vmatmul.msk.f32.vlgmr.msra.gmra.mxu2 %vm287_vm0, %v1398_v12  ;;  %2337 = vmatmul.msk.f32.vlgmr.msrb.gmra.mxu3 %vm287_vm0, %v1398_v12 }
0x11fa   : > { %1682 = vmatpush.msrb.mxu3 %v2916_v31  ;;  %v1425_v31 = vld [vmem:[%s3379_s2 + $0x150] sm:$0xff] }
0x11fb   : > { %1486 = vmatpush.msrb.mxu0 %v1425_v31 }
0x11fc   : > { %1683 = vmatpush.msrb.mxu3 %v2918_v32  ;;  %v1424_v32 = vld [vmem:[%s3379_s2 + $0x148] sm:$0xff] }
0x11fd   : > { %1487 = vmatpush.msrb.mxu0 %v1424_v32 }
0x11fe   : > { %1684 = vmatpush.msrb.mxu3 %v2921_v23  ;;  %v1423_v23 = vld [vmem:[%s3379_s2 + $0x140] sm:$0xff] }
0x11ff   : > { %1488 = vmatpush.msrb.mxu0 %v1423_v23 }
0x1200   : > { %1685 = vmatpush.msrb.mxu3 %v2924_v33  ;;  %v1422_v33 = vld [vmem:[%s3379_s2 + $0x138] sm:$0xff] }
0x1201   : > { %1489 = vmatpush.msrb.mxu0 %v1422_v33 }
0x1203   : > { %1490 = vmatpush.msrb.mxu0 %v1421_v13 }
0x1205   : > { %1491 = vmatpush.msrb.mxu0 %v1420_v14 }
0x1207   : > { %1492 = vmatpush.msrb.mxu0 %v1419_v15 }
0x1209   : > { %1493 = vmatpush.msrb.mxu0 %v1418_v16 }
0x120b   : > { %1494 = vmatpush.msrb.mxu0 %v1417_v18 }
0x120d   : > { %1495 = vmatpush.msrb.mxu0 %v1416_v19 }
0x120f   : > { %1496 = vmatpush.msrb.mxu0 %v1415_v22 }
0x127c   : > { %v1451_v28 = vpop.f32.mrf.mxu2  ;;  %v1471_v38 = vpop.f32.mrf.mxu3 }
0x127d   : > { %v1474_v29 = vsub.f32 0.0, %v1451_v28 }
0x127f   : > { %v1475_v0 = vmul.f32 1.442695, %v1474_v29 }
0x1281   : > { %2490 = vpow2.f32 %v1475_v0 }
0x1287   : > { %v2491_v34 = vpop.eup %2490 }
0x1288   : > { %v1477_v36 = vadd.f32 1.0, %v2491_v34 }
0x128a   : > { %2492 = vrcp.f32 %v1477_v36 }
0x1290   : > { %v2493_v52 = vpop.eup %2492 }
0x1291   : > { %v1479_v37 = vmul.f32 %v2493_v52, %v1451_v28 }
0x1293   : > { %v1480_v17 = vmul.f32 %v1479_v37, %v1471_v38  ;;  %v2532_v37 = vld [vmem:[%s3381_s4] sm:$0xff] }
0x1295   : > { %1497 = vmatmul.f32.vlgmr.msrb.gmra.mxu0 %v1480_v17 }
0x1312   : > { %v1498_v39 = vpop.f32.mrf.mxu0 }
0x1313   : > { %v3204_v26 = vadd.f32 %v1498_v39, %v3117_v30  ;;  %v1519_v30 = vperm.slane %v3104_v62, 1 }
0x1315   : > { %v1502_v40 = vmul.f32 %v3204_v26, %v3204_v26 }
0x1317   : > { %v1503_v43 = vsel %vm287_vm0, %v1502_v40, 0.0 }
0x1318   : > { %1504 = vadd.xlane.f32.xlu2 %v1503_v43 }
0x138b   : > { %v1505_v48 = vpop.xlane.xlu2 %1504 }
0x138c   : > { %v1506_v49 = vmul.f32 %v1505_v48, %v2754_v27 }
0x138e   : > { %v1507_v50 = vadd.f32 1e-06, %v1506_v49 }
0x1390   : > { %2494 = vrsqrt.f32 %v1507_v50  ;;  %vm1514_vm11 = vweird.f32 %v1507_v50 }
0x1396   : > { %v2495_v51 = vpop.eup %2494 }
0x1397   : > { %v1509_v53 = vmul.f32 %v2495_v51, %v1507_v50  ;;  %vm1515_vm9 = vweird.f32 %v2495_v51 }
0x1398   : > { %vm1516_vm15 = vmor %vm1514_vm11, %vm1515_vm9  ;;  %vm2205_vm11 = vcmask 1040384  }
0x1399   : > { %v1510_v55 = vmul.f32 %v2495_v51, %v1509_v53 }
0x139b   : > { %v1511_v56 = vmul.f32 0.5, %v1510_v55 }
0x139d   : > { %v1512_v58 = vsub.f32 1.5, %v1511_v56 }
0x139f   : > { %v1513_v21 = vmul.f32 %v2495_v51, %v1512_v58 }
0x13a1   : > { %v1517_v59 = vsel %vm1516_vm15, %v2495_v51, %v1513_v21  ;;  %vm2210_vm15 = vcmp.lt.s32.totalorder %v280_v41, 256 }
0x13a2   : > { %v1518_v60 = vmul.f32 %v1517_v59, %v3204_v26 }
0x13a4   : > { %v1520_v25 = vmul.f32 %v1519_v30, %v1518_v60 }
0x13a6   : > { %2338 = vmatmul.msk.f32.vlgmr.msra.gmra.mxu1 %vm287_vm0, %v1520_v25 }
0x1423   : > { %v3213_v61 = vpop.f32.mrf.mxu1 }
0x1424   : > { %v1552_v63 = vmul.f32 %v3213_v61, %v3213_v61 }
0x1426   : > { %1591 = vrot.lane.b32.xlu1 %v1552_v63, %s2635_s29  ;;  %2339 = vmatmul.msk.f32.vlgmr.msrb.gmra.mxu2 %vm287_vm0, %v1552_v63 }
0x142e   : > { %1634 = vrot.lane.b32.xlu1 %v1632_v11, %s2635_s29 }
0x1498   : > { %v1592_v1 = vpop.permute.xlu1 %1591 }
0x1499   : > { %2340 = vmatmul.msk.f32.vlgmr.msra.gmra.mxu3 %vm665_vm14, %v1592_v1 }
0x14a0   : > { %v1635_v16 = vpop.permute.xlu1 %1634 }
0x14a9   : > { %v1573_v2 = vpop.f32.mrf.mxu2 }
0x14aa   : > { %v1576_v3 = vmul.f32 %v1573_v2, %v2900_v6 }
0x14ac   : > { %v1577_v20 = vadd.f32 1e-06, %v1576_v3 }
0x14ae   : > { %2496 = vrsqrt.f32 %v1577_v20  ;;  %vm1584_vm2 = vweird.f32 %v1577_v20 }
0x14b4   : > { %v2497_v24 = vpop.eup %2496 }
0x14b5   : > { %v1579_v42 = vmul.f32 %v2497_v24, %v1577_v20  ;;  %vm1585_vm1 = vweird.f32 %v2497_v24 }
0x14b6   : > { %vm1586_vm3 = vmor %vm1584_vm2, %vm1585_vm1 }
0x14b7   : > { %v1580_v44 = vmul.f32 %v2497_v24, %v1579_v42 }
0x14b9   : > { %v1581_v45 = vmul.f32 0.5, %v1580_v44 }
0x14bb   : > { %v1582_v4 = vsub.f32 1.5, %v1581_v45 }
0x14bd   : > { %v1583_v5 = vmul.f32 %v2497_v24, %v1582_v4 }
0x14bf   : > { %v1587_v47 = vsel %vm1586_vm3, %v2497_v24, %v1583_v5 }
0x14c0   : > { %v1588_v8 = vmul.f32 %v1587_v47, %v3213_v61 }
0x14c2   : > { %v1590_v9 = vmul.f32 %v1589_v7, %v1588_v8 }
0x14c4   : > { %2341 = vmatmul.msk.f32.vlgmr.msrb.gmra.mxu1 %vm287_vm0, %v1590_v9  ;;  %v1638_v38 = vmul.f32 %v2532_v37, %v1590_v9 }
0x151c   : > { %v1612_v46 = vpop.f32.mrf.mxu3 }
0x151d   : > { %v1615_v12 = vmul.f32 %v1612_v46, %v2900_v6 }
0x151f   : > { %v1616_v35 = vadd.f32 1e-06, %v1615_v12 }
0x1521   : > { %2498 = vrsqrt.f32 %v1616_v35  ;;  %vm1623_vm8 = vweird.f32 %v1616_v35 }
0x1527   : > { %v2499_v57 = vpop.eup %2498 }
0x1528   : > { %v1618_v31 = vmul.f32 %v2499_v57, %v1616_v35  ;;  %vm1624_vm4 = vweird.f32 %v2499_v57 }
0x1529   : > { %vm1625_vm5 = vmor %vm1623_vm8, %vm1624_vm4 }
0x152a   : > { %v1619_v32 = vmul.f32 %v2499_v57, %v1618_v31 }
0x152c   : > { %v1620_v23 = vmul.f32 0.5, %v1619_v32 }
0x152e   : > { %v1621_v33 = vsub.f32 1.5, %v1620_v23 }
0x1530   : > { %v1622_v13 = vmul.f32 %v2499_v57, %v1621_v33 }
0x1532   : > { %v1626_v14 = vsel %vm1625_vm5, %v2499_v57, %v1622_v13 }
0x1533   : > { %1628 = vrot.lane.b32.xlu2 %v1626_v14, %s2635_s29 }
0x1541   : > { %v1659_v36 = vpop.f32.mrf.mxu1 }
0x1542   : > { %v1662_v52 = vmul.f32 %v1659_v36, %v2950_v54 }
0x1544   : > { %v1663_v17 = vadd.f32 %v1662_v52, %v1638_v38 }
0x158d   : > { %v1629_v15 = vpop.permute.xlu2 %1628 }
0x158e   : > { %v1631_v18 = vmul.f32 %v1629_v15, %v3213_v61 }
0x1590   : > { %v1637_v19 = vmul.f32 %v1635_v16, %v1631_v18 }
0x1592   : > { %1666 = vrot.lane.b32.xlu2 %v1637_v19, %s2635_s29  ;;  %v1664_v29 = vmul.f32 %v1637_v19, %v2950_v54 }
0x15ec   : > { %v1667_v6 = vpop.permute.xlu2 %1666 }
0x15ed   : > { %2342 = vmatmul.msk.f32.vlgmr.msrb.gmra.mxu3 %vm665_vm14, %v1667_v6 }
0x1670   : > { %v1687_v22 = vpop.f32.mrf.mxu3 }
0x1671   : > { %v1690_v28 = vmul.f32 %v1687_v22, %v2950_v54 }
0x1673   : > { %1692 = vrot.lane.b32.xlu0 %v1690_v28, %s2635_s29 }
0x16e5   : > { %v1693_v0 = vpop.permute.xlu0 %1692 }
0x16e6   : > { %v1695_v34 = vadd.f32 %v1693_v0, %v1664_v29 }
0x16e8   : > { %1826 = vrot.lane.b32.xlu2 %v1695_v34, %s2638_s20  ;;  %1697 = vrot.lane.b32.xlu1 %v1695_v34, %s2635_s29  ;;  %s3390_s29 = smov 32  }
0x16f0   : > { %1764 = vrot.lane.b32.xlu2 %v1663_v17, %s2637_s19  ;;  %1824 = vrot.lane.b32.xlu1 %v1663_v17, %s2639_s26  ;;  %s3391_s19 = smov 16  }
0x16f8   : > { %1891 = vrot.lane.b32.xlu1 %v1663_v17, %s2641_s9  ;;  %s2583_s9 = scalar_lea.hbm %s3383_s6, 4 }
0x1742   : > { %v1827_v39 = vpop.permute.xlu2 %1826 }
0x174a   : > { %v1765_v54 = vpop.permute.xlu2 %1764 }
0x175a   : > { %v1698_v40 = vpop.permute.xlu1 %1697 }
0x175b   : > { %2343 = vmatpush.xpose.msk.msra.mxu2 %vm808_vm10, %v1698_v40  ;;  %2346 = vmatpush.xpose.msk.msra.mxu0 %vm808_vm10, %v1698_v40  ;;  %v1971_v40 = vld [vmem:[#allocation2 + $0x408] sm:$0xff] }
0x175e   : > { %2344 = vmatmul.msk.f32.vlgmr.msra.gmra.mxu2 %vm808_vm10, %v1663_v17  ;;  %2347 = vmatmul.msk.f32.vlgmr.msra.gmra.mxu0 %vm808_vm10, %v1765_v54  ;;  %v1973_v17 = vld [vmem:[#allocation2 + $0x568] sm:$0xff]  ;;  %v1970_v54 = vld [vmem:[#allocation2 + $0x358] sm:$0xff] }
0x175f   : > { %2349 = vmatpush.xpose.msk.msrb.mxu2 %vm808_vm10, %v1827_v39  ;;  %2352 = vmatpush.xpose.msk.msrb.mxu0 %vm808_vm10, %v1827_v39  ;;  %v1972_v39 = vld [vmem:[#allocation2 + $0x4b8] sm:$0xff] }
0x1762   : > { %v1825_v43 = vpop.permute.xlu1 %1824 }
0x1763   : > { %1985 = vmatpush.msra.mxu2 %v1973_v17  ;;  %v2033_v17 = vld [vmem:[%s3379_s2 + $0x180] sm:$0xff] }
0x1765   : > { %1986 = vmatpush.msra.mxu2 %v1972_v39 }
0x1766   : > { %2350 = vmatmul.msk.f32.vlgmr.msrb.gmra.mxu2 %vm808_vm10, %v1825_v43  ;;  %v1969_v43 = vld [vmem:[#allocation2 + $0x2a8] sm:$0xff] }
0x1767   : > { %1987 = vmatpush.msra.mxu2 %v1971_v40 }
0x1769   : > { %1988 = vmatpush.msra.mxu2 %v1970_v54 }
0x176a   : > { %v1892_v48 = vpop.permute.xlu1 %1891 }
0x176b   : > { %2353 = vmatmul.msk.f32.vlgmr.msrb.gmra.mxu0 %vm808_vm10, %v1892_v48  ;;  %v1968_v48 = vld [vmem:[#allocation2 + $0x1f8] sm:$0xff]  ;;  %1989 = vmatpush.msra.mxu2 %v1969_v43 }
0x176d   : > { %1990 = vmatpush.msra.mxu2 %v1968_v48 }
0x17db   : > { %v1785_v49 = vpop.f32.mrf.mxu0 }
0x17dc   : > { %v1788_v50 = vmul.f32 0.25, %v1785_v49  ;;  %v1967_v49 = vld [vmem:[#allocation2 + $0x148] sm:$0xff] }
0x17dd   : > { %1991 = vmatpush.msra.mxu2 %v1967_v49 }
0x17de   : > { %v1789_v51 = vadd.f32 %v1788_v50, %v2972_v10  ;;  %v1966_v50 = vld [vmem:[#allocation2 + $0x98] sm:$0xff] }
0x17df   : > { %1992 = vmatpush.msra.mxu2 %v1966_v50 }
0x17e0   : > { %v1790_v53 = vsel %vm836_vm12, %v1789_v51, -inf }
0x17e1   : > { %1791 = vmax.xlane.f32.xlu2 %v1790_v53  ;;  %v1721_v55 = vpop.f32.mrf.mxu2 }
0x17e2   : > { %v1724_v56 = vmul.f32 0.25, %v1721_v55 }
0x17e4   : > { %v1725_v58 = vadd.f32 %v1724_v56, %v2972_v10 }
0x17e6   : > { %v1726_v21 = vsel %vm836_vm12, %v1725_v58, -inf }
0x17e7   : > { %1727 = vmax.xlane.f32.xlu0 %v1726_v21 }
0x17e8   : > { %v1912_v30 = vpop.f32.mrf.mxu0 }
0x17e9   : > { %v1915_v59 = vmul.f32 0.25, %v1912_v30  ;;  %v1849_v60 = vpop.f32.mrf.mxu2 }
0x17ea   : > { %v1852_v25 = vmul.f32 0.25, %v1849_v60 }
0x17eb   : > { %v1916_v63 = vadd.f32 %v1915_v59, %v2972_v10 }
0x17ec   : > { %v1853_v1 = vadd.f32 %v1852_v25, %v2972_v10 }
0x17ed   : > { %v1917_v2 = vsel %vm836_vm12, %v1916_v63, -inf }
0x17ee   : > { %v1854_v3 = vsel %vm836_vm12, %v1853_v1, -inf }
0x17ef   : > { %1855 = vmax.xlane.f32.xlu1 %v1854_v3  ;;  %1918 = vmax.xlane.f32.xlu0 %v1917_v2  ;;  %v2029_v2 = vld [vmem:[#allocation2 + $0x498] sm:$0xff]  ;;  %v2030_v3 = vld [vmem:[#allocation2 + $0x4a0] sm:$0xff] }
0x1854   : > { %v1792_v20 = vpop.xlane.xlu2 %1791 }
0x1855   : > { %v1793_v24 = vsub.f32 %v1789_v51, %v1792_v20  ;;  %v2027_v20 = vld [vmem:[#allocation2 + $0x3e8] sm:$0xff] }
0x1857   : > { %v1794_v42 = vmul.f32 1.442695, %v1793_v24  ;;  %v2028_v24 = vld [vmem:[#allocation2 + $0x3f0] sm:$0xff] }
0x1859   : > { %2500 = vpow2.f32 %v1794_v42  ;;  %v2026_v42 = vld [vmem:[#allocation2 + $0x340] sm:$0xff] }
0x185a   : > { %v1728_v44 = vpop.xlane.xlu0 %1727 }
0x185b   : > { %v1729_v45 = vsub.f32 %v1725_v58, %v1728_v44  ;;  %v2023_v44 = vld [vmem:[#allocation2 + $0x288] sm:$0xff] }
0x185d   : > { %v1730_v4 = vmul.f32 1.442695, %v1729_v45  ;;  %v2024_v45 = vld [vmem:[#allocation2 + $0x290] sm:$0xff] }
0x185f   : > { %v2501_v5 = vpop.eup %2500  ;;  %2502 = vpow2.f32 %v1730_v4  ;;  %v2021_v4 = vld [vmem:[#allocation2 + $0x1d8] sm:$0xff] }
0x1860   : > { %v1796_v7 = vsel %vm836_vm12, %v2501_v5, 0.0 }
0x1861   : > { %1797 = vadd.xlane.f32.xlu1 %v1796_v7  ;;  %v2019_v7 = vld [vmem:[#allocation2 + $0x128] sm:$0xff] }
0x1862   : > { %v1856_v47 = vpop.xlane.xlu1 %1855  ;;  %v1919_v10 = vpop.xlane.xlu0 %1918 }
0x1863   : > { %v1857_v8 = vsub.f32 %v1853_v1, %v1856_v47  ;;  %v1920_v9 = vsub.f32 %v1916_v63, %v1919_v10  ;;  %v2031_v63 = vld [vmem:[#allocation2 + $0x548] sm:$0xff]  ;;  %v2032_v1 = vld [vmem:[#allocation2 + $0x550] sm:$0xff]  ;;  %v2017_v10 = vld [vmem:[#allocation2 + $0x78] sm:$0xff] }
0x1864   : > { %2080 = vmatpush.msra.mxu0 %v2032_v1  ;;  %v2020_v47 = vld [vmem:[#allocation2 + $0x130] sm:$0xff] }
0x1865   : > { %v2503_v11 = vpop.eup %2502  ;;  %v1858_v46 = vmul.f32 1.442695, %v1857_v8  ;;  %v1921_v12 = vmul.f32 1.442695, %v1920_v9  ;;  %v2018_v8 = vld [vmem:[#allocation2 + $0x80] sm:$0xff]  ;;  %v2152_v1 = vld [vmem:[#allocation2 + $0x410] sm:$0xff] }
0x1866   : > { %v1732_v35 = vsel %vm836_vm12, %v2503_v11, 0.0  ;;  %2081 = vmatpush.msra.mxu0 %v2030_v3  ;;  %v2150_v3 = vld [vmem:[#allocation2 + $0x360] sm:$0xff] }
0x1867   : > { %2504 = vpow2.f32 %v1858_v46  ;;  %1733 = vadd.xlane.f32.xlu2 %v1732_v35 }
0x1868   : > { %2506 = vpow2.f32 %v1921_v12  ;;  %2082 = vmatpush.msra.mxu0 %v2028_v24  ;;  %v2149_v24 = vld [vmem:[#allocation2 + $0x2b8] sm:$0xff] }
0x186a   : > { %2083 = vmatpush.msra.mxu0 %v2026_v42  ;;  %v2147_v42 = vld [vmem:[#allocation2 + $0x208] sm:$0xff] }
0x186c   : > { %2084 = vmatpush.msra.mxu0 %v2024_v45  ;;  %v2145_v45 = vld [vmem:[#allocation2 + $0x158] sm:$0xff] }
0x186d   : > { %v2505_v57 = vpop.eup %2504 }
0x186e   : > { %v2507_v31 = vpop.eup %2506  ;;  %v1860_v32 = vsel %vm836_vm12, %v2505_v57, 0.0 }
0x186f   : > { %1861 = vadd.xlane.f32.xlu0 %v1860_v32  ;;  %v1923_v23 = vsel %vm836_vm12, %v2507_v31, 0.0 }
0x1870   : > { %1924 = vadd.xlane.f32.xlu1 %v1923_v23 }
0x187f   : > { %1738 = vrot.lane.b32.xlu2 %v3213_v61, %s3390_s29 }
0x1883   : > { %1865 = vrot.lane.b32.xlu0 %v3213_v61, %s3391_s19 }
0x18d4   : > { %v1798_v33 = vpop.xlane.xlu1 %1797 }
0x18d5   : > { %2508 = vrcp.f32 %v1798_v33  ;;  %v2015_v33 = vperm.slane %v3104_v62, 2  ;;  %v2046_v62 = vld [vmem:[%s3379_s2 + $0x1e8] sm:$0xff] }
0x18da   : > { %v1734_v13 = vpop.xlane.xlu2 %1733 }
0x18db   : > { %2510 = vrcp.f32 %v1734_v13  ;;  %v2509_v14 = vpop.eup %2508 }
0x18dc   : > { %v1800_v16 = vmul.f32 %v2509_v14, %v2501_v5  ;;  %v2022_v5 = vld [vmem:[#allocation2 + $0x1e0] sm:$0xff] }
0x18dd   : > { %2085 = vmatpush.msra.mxu0 %v2022_v5  ;;  %v2143_v5 = vld [vmem:[#allocation2 + $0xa8] sm:$0xff] }
0x18df   : > { %2086 = vmatpush.msra.mxu0 %v2020_v47 }
0x18e1   : > { %v2511_v15 = vpop.eup %2510  ;;  %2087 = vmatpush.msra.mxu0 %v2018_v8 }
0x18e2   : > { %v1736_v18 = vmul.f32 %v2511_v15, %v2503_v11  ;;  %v1739_v19 = vpop.permute.xlu2 %1738  ;;  %v1862_v6 = vpop.xlane.xlu0 %1861 }
0x18e3   : > { %1759 = vmatpush.msra.mxu3 %v1739_v19  ;;  %1819 = vmatpush.msra.mxu1 %v1739_v19  ;;  %v1925_v22 = vpop.xlane.xlu1 %1924  ;;  %2512 = vrcp.f32 %v1862_v6  ;;  %v2045_v19 = vld [vmem:[%s3379_s2 + $0x1e0] sm:$0xff]  ;;  %v2044_v6 = vld [vmem:[%s3379_s2 + $0x1d8] sm:$0xff] }
0x18e4   : > { %2345 = vmatmul.msk.f32.vlgmr.msra.gmra.mxu3 %vm836_vm12, %v1736_v18  ;;  %2348 = vmatmul.msk.f32.vlgmr.msra.gmra.mxu1 %vm836_vm12, %v1800_v16  ;;  %2514 = vrcp.f32 %v1925_v22  ;;  %v2048_v16 = vld [vmem:[%s3379_s2 + $0x1f8] sm:$0xff]  ;;  %v2047_v18 = vld [vmem:[%s3379_s2 + $0x1f0] sm:$0xff] }
0x18e5   : > { %v2043_v22 = vld [vmem:[%s3379_s2 + $0x1d0] sm:$0xff] }
0x18e9   : > { %v2513_v61 = vpop.eup %2512 }
0x18ea   : > { %v2515_v28 = vpop.eup %2514  ;;  %v1864_v0 = vmul.f32 %v2513_v61, %v2505_v57  ;;  %v2042_v61 = vld [vmem:[%s3379_s2 + $0x1c8] sm:$0xff] }
0x18eb   : > { %v1927_v29 = vmul.f32 %v2515_v28, %v2507_v31  ;;  %v2041_v28 = vld [vmem:[%s3379_s2 + $0x1c0] sm:$0xff] }
0x18f5   : > { %v1866_v34 = vpop.permute.xlu0 %1865 }
0x18f6   : > { %1886 = vmatpush.msrb.mxu3 %v1866_v34  ;;  %1946 = vmatpush.msrb.mxu1 %v1866_v34  ;;  %v2038_v34 = vld [vmem:[%s3379_s2 + $0x1a8] sm:$0xff] }
0x18f7   : > { %2351 = vmatmul.msk.f32.vlgmr.msrb.gmra.mxu3 %vm836_vm12, %v1864_v0  ;;  %2354 = vmatmul.msk.f32.vlgmr.msrb.gmra.mxu1 %vm836_vm12, %v1927_v29  ;;  %v2040_v29 = vld [vmem:[%s3379_s2 + $0x1b8] sm:$0xff]  ;;  %v2039_v0 = vld [vmem:[%s3379_s2 + $0x1b0] sm:$0xff] }
0x18f8   : > { %2060 = vmatpush.msra.mxu3 %v2031_v63  ;;  %2099 = vmatpush.msra.mxu1 %v2048_v16  ;;  %v2155_v63 = vld [vmem:[#allocation2 + $0x4c8] sm:$0xff] }
0x18fa   : > { %2061 = vmatpush.msra.mxu3 %v2029_v2  ;;  %2100 = vmatpush.msra.mxu1 %v2047_v18  ;;  %v2153_v2 = vld [vmem:[#allocation2 + $0x418] sm:$0xff] }
0x18fc   : > { %2062 = vmatpush.msra.mxu3 %v2027_v20  ;;  %2101 = vmatpush.msra.mxu1 %v2046_v62  ;;  %v2151_v20 = vld [vmem:[#allocation2 + $0x368] sm:$0xff] }
0x18fe   : > { %2102 = vmatpush.msra.mxu1 %v2045_v19 }
0x1900   : > { %2103 = vmatpush.msra.mxu1 %v2044_v6 }
0x1902   : > { %2104 = vmatpush.msra.mxu1 %v2043_v22 }
0x1904   : > { %2105 = vmatpush.msra.mxu1 %v2042_v61 }
0x1906   : > { %2106 = vmatpush.msra.mxu1 %v2041_v28 }
0x1908   : > { %2107 = vmatpush.msra.mxu1 %v2040_v29 }
0x190a   : > { %2108 = vmatpush.msra.mxu1 %v2039_v0 }
0x190c   : > { %2109 = vmatpush.msra.mxu1 %v2038_v34 }
0x1961   : > { %v1821_v36 = vpop.f32.mrf.mxu1 }
0x1962   : > { %1952 = vrot.lane.b32.xlu1 %v1821_v36, %s3391_s19  ;;  %v2037_v36 = vld [vmem:[%s3379_s2 + $0x1a0] sm:$0xff]  ;;  %s2579_s19 = scalar_lea.hbm %s2578_s25, 2 }
0x1963   : > { %2110 = vmatpush.msra.mxu1 %v2037_v36  ;;  %p2580_p0 = scmp.ne.s32.totalorder %s2578_s25, %s2579_s19  ;;  %p2585_p4 = scmp.lt.s32.totalorder %s2583_s9, %s2579_s19 }
0x1965   : > { %p2581_p1 = pnand %p2580_p0, %p2717_p5  ;;  %p2586_p7 = por %p2585_p4, %p2584_p3 }
0x1967   : > { %v1761_v52 = vpop.f32.mrf.mxu3  ;;  %p2582_p2 = pneg %p2581_p1 }
0x1969   : > { %p2587_p8 = pnand %p2586_p7, %p2582_p2 }
0x1974   : > { %v1948_v37 = vpop.f32.mrf.mxu1 }
0x1975   : > { %1960 = vrot.lane.b32.xlu0 %v1948_v37, %s2638_s20  ;;  %v2035_v37 = vld [vmem:[%s3379_s2 + $0x190] sm:$0xff] }
0x197a   : > { %v1888_v38 = vpop.f32.mrf.mxu3 }
0x197b   : > { %1956 = vrot.lane.b32.xlu2 %v1888_v38, %s3390_s29  ;;  %v2034_v38 = vld [vmem:[%s3379_s2 + $0x188] sm:$0xff]  ;;  %s2214_s29 = scalar_lea.sflag [#allocation4], %s257_s14 }
0x19d4   : > { %v1953_v51 = vpop.permute.xlu1 %1952 }
0x19d5   : > { %v1963_v53 = vsel %vm808_vm10, %v1761_v52, %v1953_v51  ;;  %v1957_v55 = vpop.permute.xlu2 %1956  ;;  %v2036_v52 = vld [vmem:[%s3379_s2 + $0x198] sm:$0xff] }
0x19d6   : > { %v1964_v56 = vsel %vm665_vm14, %v1963_v53, %v1957_v55  ;;  %2111 = vmatpush.msra.mxu1 %v2036_v52 }
0x19d8   : > { %2112 = vmatpush.msra.mxu1 %v2035_v37 }
0x19da   : > { %2113 = vmatpush.msra.mxu1 %v2034_v38 }
0x19dc   : > { %2114 = vmatpush.msra.mxu1 %v2033_v17 }
0x19e7   : > { %v1961_v58 = vpop.permute.xlu0 %1960 }
0x19e8   : > { %v1965_v21 = vsel %vm1076_vm13, %v1964_v56, %v1961_v58  ;;  %vm2121_vm13 = vcmask 523271  }
0x19e9   : > { %2355 = vmatmul.msk.f32.vlgmr.msra.gmra.mxu2 %vm287_vm0, %v1965_v21 }
0x1a6c   : > { %v1994_v30 = vpop.f32.mrf.mxu2 }
0x1a6d   : > { %v3279_v59 = vadd.f32 %v1994_v30, %v3204_v26  ;;  %v2025_v26 = vld [vmem:[#allocation2 + $0x338] sm:$0xff]  ;;  %v2156_v30 = vld [vmem:[#allocation2 + $0x570] sm:$0xff] }
0x1a6e   : > { %2063 = vmatpush.msra.mxu3 %v2025_v26  ;;  %2170 = vmatpush.msrb.mxu2 %v2156_v30  ;;  %v2146_v26 = vld [vmem:[#allocation2 + $0x200] sm:$0xff] }
0x1a6f   : > { %v1998_v60 = vmul.f32 %v3279_v59, %v3279_v59 }
0x1a70   : > { %2064 = vmatpush.msra.mxu3 %v2023_v44  ;;  %v2144_v44 = vld [vmem:[#allocation2 + $0x150] sm:$0xff] }
0x1a71   : > { %v1999_v25 = vsel %vm287_vm0, %v1998_v60, 0.0  ;;  %v2157_v60 = vld [vmem:[#allocation2 + $0x578] sm:$0xff] }
0x1a72   : > { %2000 = vadd.xlane.f32.xlu2 %v1999_v25  ;;  %2065 = vmatpush.msra.mxu3 %v2021_v4  ;;  %v2154_v25 = vld [vmem:[#allocation2 + $0x4c0] sm:$0xff] }
0x1a73   : > { %2171 = vmatpush.msrb.mxu2 %v2154_v25  ;;  %v2142_v4 = vld [vmem:[#allocation2 + $0xa0] sm:$0xff] }
0x1a74   : > { %2066 = vmatpush.msra.mxu3 %v2019_v7 }
0x1a75   : > { %2172 = vmatpush.msrb.mxu2 %v2152_v1 }
0x1a76   : > { %2067 = vmatpush.msra.mxu3 %v2017_v10 }
0x1a77   : > { %2173 = vmatpush.msrb.mxu2 %v2150_v3 }
0x1a78   : > { %2190 = vmatpush.msrb.mxu3 %v2157_v60 }
0x1a7a   : > { %2191 = vmatpush.msrb.mxu3 %v2155_v63 }
0x1a7c   : > { %2192 = vmatpush.msrb.mxu3 %v2153_v2 }
0x1a7e   : > { %2193 = vmatpush.msrb.mxu3 %v2151_v20 }
0x1a80   : > { %2194 = vmatpush.msrb.mxu3 %v2149_v24 }
0x1a82   : > { %2195 = vmatpush.msrb.mxu3 %v2147_v42 }
0x1a84   : > { %2196 = vmatpush.msrb.mxu3 %v2145_v45 }
0x1a86   : > { %2197 = vmatpush.msrb.mxu3 %v2143_v5 }
0x1ae5   : > { %v2001_v9 = vpop.xlane.xlu2 %2000 }
0x1ae6   : > { %v2002_v11 = vmul.f32 %v2001_v9, %v2754_v27 }
0x1ae8   : > { %v2003_v46 = vadd.f32 1e-06, %v2002_v11 }
0x1aea   : > { %2516 = vrsqrt.f32 %v2003_v46  ;;  %vm2010_vm10 = vweird.f32 %v2003_v46 }
0x1af0   : > { %v2517_v12 = vpop.eup %2516 }
0x1af1   : > { %v2005_v35 = vmul.f32 %v2517_v12, %v2003_v46  ;;  %vm2011_vm14 = vweird.f32 %v2517_v12 }
0x1af2   : > { %vm2012_vm12 = vmor %vm2010_vm10, %vm2011_vm14 }
0x1af3   : > { %v2006_v57 = vmul.f32 %v2517_v12, %v2005_v35 }
0x1af5   : > { %v2007_v31 = vmul.f32 0.5, %v2006_v57 }
0x1af7   : > { %v2008_v32 = vsub.f32 1.5, %v2007_v31 }
0x1af9   : > { %v2009_v23 = vmul.f32 %v2517_v12, %v2008_v32 }
0x1afb   : > { %v2013_v13 = vsel %vm2012_vm12, %v2517_v12, %v2009_v23  ;;  %v270_v12 = vld [vmem:[%s3380_s3 + $0x28] sm:$0x1f] }
0x1afc   : > { %v2014_v14 = vmul.f32 %v2013_v13, %v3279_v59  ;;  %v2139_v31 = vrot.slane %v270_v12, 5 }
0x1afe   : > { %v2016_v15 = vmul.f32 %v2015_v33, %v2014_v14 }
0x1b00   : > { %2356 = vmatmul.msk.f32.vlgmr.msra.gmra.mxu3 %vm287_vm0, %v2016_v15  ;;  %2357 = vmatmul.msk.f32.vlgmr.msra.gmra.mxu0 %vm287_vm0, %v2016_v15 }
0x1b7d   : > { %v2089_v51 = vpop.f32.mrf.mxu0 }
0x1b83   : > { %v2069_v39 = vpop.f32.mrf.mxu3 }
0x1b84   : > { %v2092_v40 = vsub.f32 0.0, %v2069_v39 }
0x1b86   : > { %v2093_v54 = vmul.f32 1.442695, %v2092_v40 }
0x1b88   : > { %2518 = vpow2.f32 %v2093_v54 }
0x1b8e   : > { %v2519_v43 = vpop.eup %2518 }
0x1b8f   : > { %v2095_v48 = vadd.f32 1.0, %v2519_v43 }
0x1b91   : > { %2520 = vrcp.f32 %v2095_v48 }
0x1b97   : > { %v2521_v49 = vpop.eup %2520 }
0x1b98   : > { %v2097_v50 = vmul.f32 %v2521_v49, %v2069_v39 }
0x1b9a   : > { %v2098_v53 = vmul.f32 %v2097_v50, %v2089_v51 }
0x1b9c   : > { %2115 = vmatmul.f32.vlgmr.msra.gmra.mxu1 %v2098_v53 }
0x1c19   : > { %v2116_v55 = vpop.f32.mrf.mxu1 }
0x1c1a   : > { %v2119_v56 = vadd.f32 %v2116_v55, %v3279_v59  ;;  %v2148_v59 = vld [vmem:[#allocation2 + $0x2b0] sm:$0xff] }
0x1c1b   : > { %2174 = vmatpush.msrb.mxu2 %v2148_v59 }
0x1c1c   : > { %v2120_v58 = vmul.f32 %v2119_v56, %v2119_v56 }
0x1c1d   : > { %2175 = vmatpush.msrb.mxu2 %v2146_v26 }
0x1c1e   : > { %v2122_v21 = vsel %vm2121_vm13, %v2120_v58, 0.0 }
0x1c1f   : > { %2123 = vadd.xlane.f32.xlu0 %v2122_v21  ;;  %2176 = vmatpush.msrb.mxu2 %v2144_v44 }
0x1c21   : > { %2177 = vmatpush.msrb.mxu2 %v2142_v4 }
0x1c92   : > { %v2124_v7 = vpop.xlane.xlu0 %2123 }
0x1c93   : > { %v2125_v47 = vmul.f32 %v2124_v7, %v2754_v27 }
0x1c95   : > { %v2126_v10 = vadd.f32 1e-06, %v2125_v47 }
0x1c97   : > { %2522 = vrsqrt.f32 %v2126_v10  ;;  %vm2133_vm7 = vweird.f32 %v2126_v10 }
0x1c9d   : > { %v2523_v8 = vpop.eup %2522 }
0x1c9e   : > { %v2128_v9 = vmul.f32 %v2523_v8, %v2126_v10  ;;  %vm2134_vm6 = vweird.f32 %v2523_v8 }
0x1c9f   : > { %vm2135_vm9 = vmor %vm2133_vm7, %vm2134_vm6 }
0x1ca0   : > { %v2129_v11 = vmul.f32 %v2523_v8, %v2128_v9 }
0x1ca2   : > { %v2130_v46 = vmul.f32 0.5, %v2129_v11 }
0x1ca4   : > { %v2131_v35 = vsub.f32 1.5, %v2130_v46 }
0x1ca6   : > { %v2132_v57 = vmul.f32 %v2523_v8, %v2131_v35 }
0x1ca8   : > { %v2136_v32 = vsel %vm2135_vm9, %v2523_v8, %v2132_v57 }
0x1ca9   : > { %v2137_v27 = vmul.f32 %v2136_v32, %v2119_v56 }
0x1cab   : > { %v2141_v23 = vmul.f32 %v2139_v31, %v2137_v27 }
0x1cad   : > { %v2159_v33 = vrot.slane %v2141_v23, 7 }
0x1caf   : > { %2358 = vmatmul.msk.f32.vlgmr.msrb.gmra.mxu2 %vm287_vm0, %v2159_v33  ;;  %2359 = vmatmul.msk.f32.vlgmr.msrb.gmra.mxu3 %vm287_vm0, %v2159_v33 }
0x1d32   : > { %v2199_v13 = vpop.f32.mrf.mxu3  ;;  %v2179_v15 = vpop.f32.mrf.mxu2 }
0x1d33   : > { %v2204_v14 = vrot.slane %v2199_v13, 7 }
0x1d35   : > { %v2206_v16 = vsel %vm2205_vm11, %v2179_v15, %v2204_v14 }
0x1d36   : > { %2212 = vst.msk [vmem:[%s259_s18] sm:$0x3] %vm2210_vm15, %v2206_v16 }
0x1d37   : > { %2590 = shalt.err (!%p2587_p8)
}
0x1d38   : > { %2368 = dma.vmem_to_hbm [thread:$0]  (%p2717_p5), %s2227_s11, 32, %s2229_s12, %s2214_s29  }
0x1d39 PF: > { %p2380_p9 = scmp.ge.s32.totalorder %s2629_s24, 2  ;;  %s2240_s14 = sand.u32 1, %s2617_s21  }
0x1d3a   : > { %s2241_s16 = scalar_lea.sflag [#allocation4], %s2240_s14 }
0x1d3b   : > { %p2375_p10 = pnand %p2380_p9, %p2721_p6 }
0x1d3d   : > { %p2376_p11 = pneg %p2375_p10 }
0x1d3f   : > { %2612 = dma.done.wait (%p2376_p11), %s2241_s16, 32  }
0x1d40   : > { %2614 = vsyncadd (%p2376_p11), %s2241_s16, 4294967264  ;;  %p17_p12 = scmp.ge.s32.totalorder %s2704_s27, 4   ;;  %s3392_s21 = smov %s2621_s22 }
0x1d41   : > { %s3393_s22 = smov %s2625_s23  ;;  %s3394_s23 = smov %s2715_s30 }
0x1d42   : > { %s3395_s24 = smov %s2704_s27  ;;  %19 = sbr.rel (!%p17_p12) target bundleno = 4 (0x4), region = 84 }
0x1d47   :  { %2247 = vsyncpa [#allocation3], 1 }
0x1d48   :  { %2249 = vsyncpa [#allocation3 + $0x1], 1 }
0x1d49   :  { %2250 = vsyncpa [#allocation4], 1 }
0x1d4a   :  { %2252 = vsyncpa [#allocation4 + $0x1], 1 }

</bundles_post_ra>
